<compile_context>
chip_gen: v6e
topology: v6e:2x2x1
jax: 0.10.0
libtpu: 0.0.40
codegen_flags: <defaults>
</compile_context>

<pallas_src>
import functools

import jax
import jax.numpy as jnp
from jax import lax
from jax.experimental import pallas as pl
from jax.experimental.pallas import tpu as pltpu

_LANE = 128


def _round_up(x, m):
    return (x + m - 1) // m * m


# ---------------------------------------------------------------------------
# Fused Pallas kernel: conv1+BN1+ReLU -> conv2+BN2 -> shortcut -> add -> ReLU
# ---------------------------------------------------------------------------
def _basic_block_kernel(xph_ref, w1_ref, b1_ref, w2_ref, b2_ref, *rest,
                        stride, Ho, Wo, has_proj):
    if has_proj:
        ws_ref, bs_ref, o_ref, y1_ref = rest
    else:
        o_ref, y1_ref = rest

    Wp = Wo + 2                      # padded frame width
    Lph = (Ho + 4) * Wp              # flat length of one phase / of y1 frame
    M = Ho * Wp                      # rows computed per conv (all frame cols)
    row0 = 2 * Wp                    # flat index of frame row 2 (first valid)
    cout_p = w1_ref.shape[2]

    # ---- conv1 (3x3, stride s) + BN1 + ReLU: 9 shifted-tap MXU matmuls -----
    acc1 = jnp.zeros((M, cout_p), jnp.float32)
    for kh in range(3):
        qh, a = divmod(kh - 1, stride)
        for kw in range(3):
            qw, b = divmod(kw - 1, stride)
            start = (a * stride + b) * Lph + row0 + qh * Wp + qw
            acc1 += jnp.dot(xph_ref[0, pl.ds(start, M), :], w1_ref[kh * 3 + kw],
                            preferred_element_type=jnp.float32)

    # Wrap-column mask built in-kernel (no HBM mask input / extra DMA).
    # Frame column of flat row r is r % Wp, computed with exact small-int
    # float arithmetic (avoids vector integer div/rem).
    r = lax.broadcasted_iota(jnp.int32, (M, 1), 0).astype(jnp.float32)
    q = jnp.floor((r + 0.5) * (1.0 / Wp))
    col = r - q * Wp
    keep = jnp.logical_and(col > 0.5, col < Wo + 0.5)
    y1 = jnp.where(keep, jnp.maximum(acc1 + b1_ref[...], 0.0), 0.0)

    # y1 stays in VMEM in the same padded flat frame so conv2 reuses the
    # shifted-slice trick.  Only the halo rows are (re)zeroed -- cheap and
    # correct even if the batch grid axis is split across TensorCores.
    y1_ref[pl.ds(0, row0), :] = jnp.zeros((row0, cout_p), y1_ref.dtype)
    y1_ref[pl.ds(row0 + M, 2 * Wp), :] = jnp.zeros((2 * Wp, cout_p), y1_ref.dtype)
    y1_ref[pl.ds(row0, M), :] = y1.astype(y1_ref.dtype)

    # ---- conv2 (3x3, stride 1) + BN2 + shortcut + add + ReLU ---------------
    acc2 = jnp.zeros((M, cout_p), jnp.float32)
    for kh in range(3):
        for kw in range(3):
            start = row0 + (kh - 1) * Wp + (kw - 1)
            acc2 += jnp.dot(y1_ref[pl.ds(start, M), :], w2_ref[kh * 3 + kw],
                            preferred_element_type=jnp.float32)
    acc2 += b2_ref[...]

    if has_proj:
        # 1x1 stride-s conv + BN: exactly the phase-(0,0) rows at the output
        # grid positions, so it reuses the already-resident input block.
        sc = jnp.dot(xph_ref[0, pl.ds(row0, M), :], ws_ref[...],
                     preferred_element_type=jnp.float32) + bs_ref[...]
    else:
        sc = xph_ref[0, pl.ds(row0, M), :].astype(jnp.float32)

    # bf16 output store: halves HBM write traffic and the output double buffer.
    o_ref[0, :, :] = jnp.maximum(acc2 + sc, 0.0).astype(o_ref.dtype)


# ---------------------------------------------------------------------------
# Parameter / input preparation (plain JAX glue, fused under jit)
# ---------------------------------------------------------------------------
def _build_phases(x_nhwc, stride, cin_p, Ho, Wo):
    """Zero-padded, channel-padded, phase-split, flattened input (bf16)."""
    N, _, _, C = x_nhwc.shape
    Hp, Wp = Ho + 4, Wo + 2
    xc = jnp.pad(x_nhwc, ((0, 0), (0, 0), (0, 0), (0, cin_p - C)))
    phases = []
    for a in range(stride):
        for b in range(stride):
            ph = xc[:, a::stride, b::stride, :]
            ci, cj = ph.shape[1], ph.shape[2]
            ph = jnp.pad(ph, ((0, 0), (2, Hp - 2 - ci), (1, Wp - 1 - cj), (0, 0)))
            phases.append(ph.reshape(N, Hp * Wp, cin_p))
    xph = phases[0] if len(phases) == 1 else jnp.concatenate(phases, axis=1)
    return xph.astype(jnp.bfloat16)


def _prep_w3x3(w_oihw, scale, cin_p, cout_p):
    # PyTorch (Cout, Cin, kh, kw) -> (9, cin_p, cout_p), BN scale folded in.
    co, ci = w_oihw.shape[0], w_oihw.shape[1]
    w = jnp.transpose(w_oihw, (2, 3, 1, 0)).reshape(9, ci, co)
    w = w * scale[None, None, :]
    w = jnp.pad(w, ((0, 0), (0, cin_p - ci), (0, cout_p - co)))
    return w.astype(jnp.bfloat16)


def _prep_w1x1(w_oi11, scale, cin_p, cout_p):
    co, ci = w_oi11.shape[0], w_oi11.shape[1]
    w = jnp.transpose(w_oi11.reshape(co, ci), (1, 0)) * scale[None, :]
    w = jnp.pad(w, ((0, cin_p - ci), (0, cout_p - co)))
    return w.astype(jnp.bfloat16)


def _prep_bias(bias, cout_p):
    return jnp.pad(bias, (0, cout_p - bias.shape[0])).reshape(1, cout_p).astype(jnp.float32)


def _compiler_params(footprint_bytes):
    try:
        cap = int(pltpu.get_tpu_info().vmem_capacity_bytes)
    except Exception:
        cap = 128 * 1024 * 1024
    # Footprint-derived limit with headroom, clamped to 3/4 of physical VMEM
    # (<=48 MiB on v7x, up to 96 MiB on v5e/v6e when a stage needs it).
    limit = max(32 * 1024 * 1024, int(1.25 * footprint_bytes) + (4 << 20))
    limit = min(limit, (3 * cap) // 4)
    return pltpu.CompilerParams(dimension_semantics=("parallel",),
                                vmem_limit_bytes=limit)


@functools.partial(jax.jit, static_argnames=("stride",))
def basic_block_forward(x_nchw, params, *, stride):
    """Pallas implementation of BasicBlock.forward (input NCHW like PyTorch)."""
    N, Cin, H, W = x_nchw.shape
    Cout = params["w1"].shape[0]
    cin_p = _round_up(Cin, _LANE)
    cout_p = _round_up(Cout, _LANE)
    Ho = (H - 1) // stride + 1
    Wo = (W - 1) // stride + 1
    Wp = Wo + 2
    Lph = (Ho + 4) * Wp
    M = Ho * Wp
    has_proj = "ws" in params
    if not has_proj:
        assert stride == 1 and cin_p == cout_p, "identity path needs same shape"

    xh = jnp.transpose(x_nchw, (0, 2, 3, 1))              # NCHW -> NHWC
    xph = _build_phases(xh, stride, cin_p, Ho, Wo)        # (N, s*s*Lph, cin_p)

    w1 = _prep_w3x3(params["w1"], params["scale1"], cin_p, cout_p)
    b1 = _prep_bias(params["bias1"], cout_p)
    w2 = _prep_w3x3(params["w2"], params["scale2"], cout_p, cout_p)
    b2 = _prep_bias(params["bias2"], cout_p)

    # Grid-invariant operands: unblocked, resident in VMEM (single-buffered,
    # no per-step double buffering / re-DMA).
    resident = lambda: pl.BlockSpec(memory_space=pltpu.MemorySpace.VMEM)

    args = [xph, w1, b1, w2, b2]
    in_specs = [
        pl.BlockSpec((1, stride * stride * Lph, cin_p), lambda n: (n, 0, 0)),
        resident(),   # w1
        resident(),   # b1
        resident(),   # w2
        resident(),   # b2
    ]
    if has_proj:
        args += [_prep_w1x1(params["ws"], params["scales"], cin_p, cout_p),
                 _prep_bias(params["biass"], cout_p)]
        in_specs += [resident(), resident()]

    # Per-step VMEM footprint estimate (double-buffered image in/out, single
    # weights, y1 scratch, f32 accumulator temps).
    xph_blk = stride * stride * Lph * cin_p * 2
    out_blk = M * cout_p * 2
    w_bytes = (9 * cin_p * cout_p + 9 * cout_p * cout_p) * 2 + 2 * cout_p * 4
    if has_proj:
        w_bytes += cin_p * cout_p * 2 + cout_p * 4
    footprint = 2 * (xph_blk + out_blk) + w_bytes + Lph * cout_p * 2 \
        + 2 * M * cout_p * 4

    kernel = functools.partial(_basic_block_kernel, stride=stride,
                               Ho=Ho, Wo=Wo, has_proj=has_proj)
    out = pl.pallas_call(
        kernel,
        out_shape=jax.ShapeDtypeStruct((N, M, cout_p), jnp.bfloat16),
        grid=(N,),
        in_specs=in_specs,
        out_specs=pl.BlockSpec((1, M, cout_p), lambda n: (n, 0, 0)),
        scratch_shapes=[pltpu.VMEM((Lph, cout_p), jnp.bfloat16)],
        compiler_params=_compiler_params(footprint),
    )(*args)

    # Crop padded frame columns / channels and return to NCHW (bf16).
    out = out.reshape(N, Ho, Wp, cout_p)[:, :, 1:Wo + 1, :Cout]
    return jnp.transpose(out, (0, 3, 1, 2))


# ---------------------------------------------------------------------------
# Deterministic parameter init + pure-JAX reference for checking
# ---------------------------------------------------------------------------
def _bn_fold(k, c):
    k1, k2, k3, k4 = jax.random.split(k, 4)
    gamma = 1.0 + 0.1 * jax.random.normal(k1, (c,), jnp.float32)
    beta = 0.1 * jax.random.normal(k2, (c,), jnp.float32)
    mean = 0.1 * jax.random.normal(k3, (c,), jnp.float32)
    var = 0.5 + jax.random.uniform(k4, (c,), jnp.float32)
    eps = 1e-5
    scale = gamma / jnp.sqrt(var + eps)
    bias = beta - mean * scale
    return scale, bias


def init_params(key, cin, cout, stride):
    k = jax.random.split(key, 6)
    params = {
        "w1": 0.1 * jax.random.normal(k[0], (cout, cin, 3, 3), jnp.float32),
        "w2": 0.1 * jax.random.normal(k[1], (cout, cout, 3, 3), jnp.float32),
    }
    params["scale1"], params["bias1"] = _bn_fold(k[2], cout)
    params["scale2"], params["bias2"] = _bn_fold(k[3], cout)
    if stride != 1 or cin != cout:
        params["ws"] = 0.1 * jax.random.normal(k[4], (cout, cin, 1, 1), jnp.float32)
        params["scales"], params["biass"] = _bn_fold(k[5], cout)
    return params


def reference_forward(x, params, stride):
    dn = ("NCHW", "OIHW", "NCHW")
    y = lax.conv_general_dilated(x, params["w1"], (stride, stride),
                                 ((1, 1), (1, 1)), dimension_numbers=dn)
    y = y * params["scale1"][None, :, None, None] + params["bias1"][None, :, None, None]
    y = jnp.maximum(y, 0.0)
    y = lax.conv_general_dilated(y, params["w2"], (1, 1),
                                 ((1, 1), (1, 1)), dimension_numbers=dn)
    y = y * params["scale2"][None, :, None, None] + params["bias2"][None, :, None, None]
    if "ws" in params:
        s = lax.conv_general_dilated(x, params["ws"], (stride, stride),
                                     ((0, 0), (0, 0)), dimension_numbers=dn)
        s = s * params["scales"][None, :, None, None] + params["biass"][None, :, None, None]
    else:
        s = x
    return jnp.maximum(y + s, 0.0)


if __name__ == "__main__":
    key = jax.random.PRNGKey(0)
    kx1, kx2, kp1, kp2 = jax.random.split(key, 4)

    # Config A: projection shortcut (stride=2, in_channel != out_channel)
    x_a = jax.random.normal(kx1, (2, 4, 16, 16), jnp.float32)
    params_a = init_params(kp1, cin=4, cout=8, stride=2)
    out_a = basic_block_forward(x_a, params_a, stride=2)
    ref_a = reference_forward(x_a, params_a, stride=2)

    # Config B: identity shortcut (stride=1, in_channel == out_channel)
    x_b = jax.random.normal(kx2, (2, 8, 16, 16), jnp.float32)
    params_b = init_params(kp2, cin=8, cout=8, stride=1)
    out_b = basic_block_forward(x_b, params_b, stride=1)
    ref_b = reference_forward(x_b, params_b, stride=1)

    jax.block_until_ready((out_a, out_b, ref_a, ref_b))

    assert out_a.shape == (2, 8, 8, 8), out_a.shape
    assert out_b.shape == (2, 8, 16, 16), out_b.shape
    # bf16 matmul operands + bf16 output (f32 accumulation) -> relative check.
    oa, ob = out_a.astype(jnp.float32), out_b.astype(jnp.float32)
    rel_a = float(jnp.max(jnp.abs(oa - ref_a)) / (jnp.max(jnp.abs(ref_a)) + 1e-6))
    rel_b = float(jnp.max(jnp.abs(ob - ref_b)) / (jnp.max(jnp.abs(ref_b)) + 1e-6))
    assert rel_a < 5e-2, f"projection path mismatch, max rel err {rel_a}"
    assert rel_b < 5e-2, f"identity path mismatch, max rel err {rel_b}"

    print("KERNEL_OK")
</pallas_src>

<mosaic_0001>
module attributes {stable_mosaic.version = 11 : i64} {
  func.func @_basic_block_kernel(%arg0: i32, %arg1: memref<1x480x128xbf16, #tpu.memory_space<vmem>>, %arg2: memref<9x128x128xbf16, #tpu.memory_space<vmem>>, %arg3: memref<1x128xf32, #tpu.memory_space<vmem>>, %arg4: memref<9x128x128xbf16, #tpu.memory_space<vmem>>, %arg5: memref<1x128xf32, #tpu.memory_space<vmem>>, %arg6: memref<128x128xbf16, #tpu.memory_space<vmem>>, %arg7: memref<1x128xf32, #tpu.memory_space<vmem>>, %arg8: memref<1x80x128xbf16, #tpu.memory_space<vmem>>, %arg9: memref<120x128xbf16, #tpu.memory_space<vmem>>) attributes {dimension_semantics = [#tpu.dimension_semantics<parallel>], iteration_bounds = array<i64: 2>, scalar_prefetch = 0 : i64, scratch_operands = 1 : i64, tpu.core_type = #tpu.core_type<tc>, window_params = [{transform_indices = @transform_0, window_bounds = array<i64: 1, 480, 128>}, {pipeline_mode = #tpu.pipeline_mode<synchronous>, transform_indices = @transform_1, window_bounds = array<i64: 9, 128, 128>}, {pipeline_mode = #tpu.pipeline_mode<synchronous>, transform_indices = @transform_2, window_bounds = array<i64: 1, 128>}, {pipeline_mode = #tpu.pipeline_mode<synchronous>, transform_indices = @transform_3, window_bounds = array<i64: 9, 128, 128>}, {pipeline_mode = #tpu.pipeline_mode<synchronous>, transform_indices = @transform_4, window_bounds = array<i64: 1, 128>}, {pipeline_mode = #tpu.pipeline_mode<synchronous>, transform_indices = @transform_5, window_bounds = array<i64: 128, 128>}, {pipeline_mode = #tpu.pipeline_mode<synchronous>, transform_indices = @transform_6, window_bounds = array<i64: 1, 128>}, {transform_indices = @transform_7, window_bounds = array<i64: 1, 80, 128>}]} {
    %cst = arith.constant 0.000000e+00 : f32
    %0 = vector.broadcast %cst : f32 to vector<80x128xf32>
    %c0 = arith.constant 0 : index
    %c369 = arith.constant 369 : index
    %c0_0 = arith.constant 0 : index
    %1 = vector.load %arg1[%c0, %c369, %c0_0] : memref<1x480x128xbf16, #tpu.memory_space<vmem>>, vector<1x80x128xbf16>
    %2 = vector.shape_cast %1 : vector<1x80x128xbf16> to vector<80x128xbf16>
    %c0_1 = arith.constant 0 : index
    %c0_2 = arith.constant 0 : index
    %c0_3 = arith.constant 0 : index
    %3 = vector.load %arg2[%c0_1, %c0_2, %c0_3] : memref<9x128x128xbf16, #tpu.memory_space<vmem>>, vector<1x128x128xbf16>
    %4 = vector.shape_cast %3 : vector<1x128x128xbf16> to vector<128x128xbf16>
    %cst_4 = arith.constant dense<0.000000e+00> : vector<80x128xf32>
    %5 = tpu.matmul %2, %4, %cst_4 {dimension_numbers = #tpu.dot_dimension_numbers<[1], [0], [0], [1], [0, 0, 1, 1], [], []>} : vector<80x128xbf16>, vector<128x128xbf16>, vector<80x128xf32> -> vector<80x128xf32>
    %6 = arith.addf %0, %5 : vector<80x128xf32>
    %c0_5 = arith.constant 0 : index
    %c250 = arith.constant 250 : index
    %c0_6 = arith.constant 0 : index
    %7 = vector.load %arg1[%c0_5, %c250, %c0_6] : memref<1x480x128xbf16, #tpu.memory_space<vmem>>, vector<1x80x128xbf16>
    %8 = vector.shape_cast %7 : vector<1x80x128xbf16> to vector<80x128xbf16>
    %c1 = arith.constant 1 : index
    %c0_7 = arith.constant 0 : index
    %c0_8 = arith.constant 0 : index
    %9 = vector.load %arg2[%c1, %c0_7, %c0_8] : memref<9x128x128xbf16, #tpu.memory_space<vmem>>, vector<1x128x128xbf16>
    %10 = vector.shape_cast %9 : vector<1x128x128xbf16> to vector<128x128xbf16>
    %cst_9 = arith.constant dense<0.000000e+00> : vector<80x128xf32>
    %11 = tpu.matmul %8, %10, %cst_9 {dimension_numbers = #tpu.dot_dimension_numbers<[1], [0], [0], [1], [0, 0, 1, 1], [], []>} : vector<80x128xbf16>, vector<128x128xbf16>, vector<80x128xf32> -> vector<80x128xf32>
    %12 = arith.addf %6, %11 : vector<80x128xf32>
    %c0_10 = arith.constant 0 : index
    %c370 = arith.constant 370 : index
    %c0_11 = arith.constant 0 : index
    %13 = vector.load %arg1[%c0_10, %c370, %c0_11] : memref<1x480x128xbf16, #tpu.memory_space<vmem>>, vector<1x80x128xbf16>
    %14 = vector.shape_cast %13 : vector<1x80x128xbf16> to vector<80x128xbf16>
    %c2 = arith.constant 2 : index
    %c0_12 = arith.constant 0 : index
    %c0_13 = arith.constant 0 : index
    %15 = vector.load %arg2[%c2, %c0_12, %c0_13] : memref<9x128x128xbf16, #tpu.memory_space<vmem>>, vector<1x128x128xbf16>
    %16 = vector.shape_cast %15 : vector<1x128x128xbf16> to vector<128x128xbf16>
    %cst_14 = arith.constant dense<0.000000e+00> : vector<80x128xf32>
    %17 = tpu.matmul %14, %16, %cst_14 {dimension_numbers = #tpu.dot_dimension_numbers<[1], [0], [0], [1], [0, 0, 1, 1], [], []>} : vector<80x128xbf16>, vector<128x128xbf16>, vector<80x128xf32> -> vector<80x128xf32>
    %18 = arith.addf %12, %17 : vector<80x128xf32>
    %c0_15 = arith.constant 0 : index
    %c139 = arith.constant 139 : index
    %c0_16 = arith.constant 0 : index
    %19 = vector.load %arg1[%c0_15, %c139, %c0_16] : memref<1x480x128xbf16, #tpu.memory_space<vmem>>, vector<1x80x128xbf16>
    %20 = vector.shape_cast %19 : vector<1x80x128xbf16> to vector<80x128xbf16>
    %c3 = arith.constant 3 : index
    %c0_17 = arith.constant 0 : index
    %c0_18 = arith.constant 0 : index
    %21 = vector.load %arg2[%c3, %c0_17, %c0_18] : memref<9x128x128xbf16, #tpu.memory_space<vmem>>, vector<1x128x128xbf16>
    %22 = vector.shape_cast %21 : vector<1x128x128xbf16> to vector<128x128xbf16>
    %cst_19 = arith.constant dense<0.000000e+00> : vector<80x128xf32>
    %23 = tpu.matmul %20, %22, %cst_19 {dimension_numbers = #tpu.dot_dimension_numbers<[1], [0], [0], [1], [0, 0, 1, 1], [], []>} : vector<80x128xbf16>, vector<128x128xbf16>, vector<80x128xf32> -> vector<80x128xf32>
    %24 = arith.addf %18, %23 : vector<80x128xf32>
    %c0_20 = arith.constant 0 : index
    %c20 = arith.constant 20 : index
    %c0_21 = arith.constant 0 : index
    %25 = vector.load %arg1[%c0_20, %c20, %c0_21] : memref<1x480x128xbf16, #tpu.memory_space<vmem>>, vector<1x80x128xbf16>
    %26 = vector.shape_cast %25 : vector<1x80x128xbf16> to vector<80x128xbf16>
    %c4 = arith.constant 4 : index
    %c0_22 = arith.constant 0 : index
    %c0_23 = arith.constant 0 : index
    %27 = vector.load %arg2[%c4, %c0_22, %c0_23] : memref<9x128x128xbf16, #tpu.memory_space<vmem>>, vector<1x128x128xbf16>
    %28 = vector.shape_cast %27 : vector<1x128x128xbf16> to vector<128x128xbf16>
    %cst_24 = arith.constant dense<0.000000e+00> : vector<80x128xf32>
    %29 = tpu.matmul %26, %28, %cst_24 {dimension_numbers = #tpu.dot_dimension_numbers<[1], [0], [0], [1], [0, 0, 1, 1], [], []>} : vector<80x128xbf16>, vector<128x128xbf16>, vector<80x128xf32> -> vector<80x128xf32>
    %30 = arith.addf %24, %29 : vector<80x128xf32>
    %c0_25 = arith.constant 0 : index
    %c140 = arith.constant 140 : index
    %c0_26 = arith.constant 0 : index
    %31 = vector.load %arg1[%c0_25, %c140, %c0_26] : memref<1x480x128xbf16, #tpu.memory_space<vmem>>, vector<1x80x128xbf16>
    %32 = vector.shape_cast %31 : vector<1x80x128xbf16> to vector<80x128xbf16>
    %c5 = arith.constant 5 : index
    %c0_27 = arith.constant 0 : index
    %c0_28 = arith.constant 0 : index
    %33 = vector.load %arg2[%c5, %c0_27, %c0_28] : memref<9x128x128xbf16, #tpu.memory_space<vmem>>, vector<1x128x128xbf16>
    %34 = vector.shape_cast %33 : vector<1x128x128xbf16> to vector<128x128xbf16>
    %cst_29 = arith.constant dense<0.000000e+00> : vector<80x128xf32>
    %35 = tpu.matmul %32, %34, %cst_29 {dimension_numbers = #tpu.dot_dimension_numbers<[1], [0], [0], [1], [0, 0, 1, 1], [], []>} : vector<80x128xbf16>, vector<128x128xbf16>, vector<80x128xf32> -> vector<80x128xf32>
    %36 = arith.addf %30, %35 : vector<80x128xf32>
    %c0_30 = arith.constant 0 : index
    %c379 = arith.constant 379 : index
    %c0_31 = arith.constant 0 : index
    %37 = vector.load %arg1[%c0_30, %c379, %c0_31] : memref<1x480x128xbf16, #tpu.memory_space<vmem>>, vector<1x80x128xbf16>
    %38 = vector.shape_cast %37 : vector<1x80x128xbf16> to vector<80x128xbf16>
    %c6 = arith.constant 6 : index
    %c0_32 = arith.constant 0 : index
    %c0_33 = arith.constant 0 : index
    %39 = vector.load %arg2[%c6, %c0_32, %c0_33] : memref<9x128x128xbf16, #tpu.memory_space<vmem>>, vector<1x128x128xbf16>
    %40 = vector.shape_cast %39 : vector<1x128x128xbf16> to vector<128x128xbf16>
    %cst_34 = arith.constant dense<0.000000e+00> : vector<80x128xf32>
    %41 = tpu.matmul %38, %40, %cst_34 {dimension_numbers = #tpu.dot_dimension_numbers<[1], [0], [0], [1], [0, 0, 1, 1], [], []>} : vector<80x128xbf16>, vector<128x128xbf16>, vector<80x128xf32> -> vector<80x128xf32>
    %42 = arith.addf %36, %41 : vector<80x128xf32>
    %c0_35 = arith.constant 0 : index
    %c260 = arith.constant 260 : index
    %c0_36 = arith.constant 0 : index
    %43 = vector.load %arg1[%c0_35, %c260, %c0_36] : memref<1x480x128xbf16, #tpu.memory_space<vmem>>, vector<1x80x128xbf16>
    %44 = vector.shape_cast %43 : vector<1x80x128xbf16> to vector<80x128xbf16>
    %c7 = arith.constant 7 : index
    %c0_37 = arith.constant 0 : index
    %c0_38 = arith.constant 0 : index
    %45 = vector.load %arg2[%c7, %c0_37, %c0_38] : memref<9x128x128xbf16, #tpu.memory_space<vmem>>, vector<1x128x128xbf16>
    %46 = vector.shape_cast %45 : vector<1x128x128xbf16> to vector<128x128xbf16>
    %cst_39 = arith.constant dense<0.000000e+00> : vector<80x128xf32>
    %47 = tpu.matmul %44, %46, %cst_39 {dimension_numbers = #tpu.dot_dimension_numbers<[1], [0], [0], [1], [0, 0, 1, 1], [], []>} : vector<80x128xbf16>, vector<128x128xbf16>, vector<80x128xf32> -> vector<80x128xf32>
    %48 = arith.addf %42, %47 : vector<80x128xf32>
    %c0_40 = arith.constant 0 : index
    %c380 = arith.constant 380 : index
    %c0_41 = arith.constant 0 : index
    %49 = vector.load %arg1[%c0_40, %c380, %c0_41] : memref<1x480x128xbf16, #tpu.memory_space<vmem>>, vector<1x80x128xbf16>
    %50 = vector.shape_cast %49 : vector<1x80x128xbf16> to vector<80x128xbf16>
    %c8 = arith.constant 8 : index
    %c0_42 = arith.constant 0 : index
    %c0_43 = arith.constant 0 : index
    %51 = vector.load %arg2[%c8, %c0_42, %c0_43] : memref<9x128x128xbf16, #tpu.memory_space<vmem>>, vector<1x128x128xbf16>
    %52 = vector.shape_cast %51 : vector<1x128x128xbf16> to vector<128x128xbf16>
    %cst_44 = arith.constant dense<0.000000e+00> : vector<80x128xf32>
    %53 = tpu.matmul %50, %52, %cst_44 {dimension_numbers = #tpu.dot_dimension_numbers<[1], [0], [0], [1], [0, 0, 1, 1], [], []>} : vector<80x128xbf16>, vector<128x128xbf16>, vector<80x128xf32> -> vector<80x128xf32>
    %54 = arith.addf %48, %53 : vector<80x128xf32>
    %55 = tpu.iota {dimensions = array<i32: 0>} : vector<80x1xi32>
    %56 = arith.sitofp %55 : vector<80x1xi32> to vector<80x1xf32>
    %cst_45 = arith.constant 5.000000e-01 : f32
    %57 = vector.broadcast %cst_45 : f32 to vector<80x1xf32>
    %58 = arith.addf %56, %57 : vector<80x1xf32>
    %cst_46 = arith.constant 1.000000e-01 : f32
    %59 = vector.broadcast %cst_46 : f32 to vector<80x1xf32>
    %60 = arith.mulf %58, %59 : vector<80x1xf32>
    %61 = math.floor %60 : vector<80x1xf32>
    %cst_47 = arith.constant 1.000000e+01 : f32
    %62 = vector.broadcast %cst_47 : f32 to vector<80x1xf32>
    %63 = arith.mulf %61, %62 : vector<80x1xf32>
    %64 = arith.subf %56, %63 : vector<80x1xf32>
    %cst_48 = arith.constant 5.000000e-01 : f32
    %65 = vector.broadcast %cst_48 : f32 to vector<80x1xf32>
    %66 = arith.cmpf ogt, %64, %65 : vector<80x1xf32>
    %cst_49 = arith.constant 8.500000e+00 : f32
    %67 = vector.broadcast %cst_49 : f32 to vector<80x1xf32>
    %68 = arith.cmpf olt, %64, %67 : vector<80x1xf32>
    %69 = arith.andi %66, %68 : vector<80x1xi1>
    %c0_50 = arith.constant 0 : index
    %c0_51 = arith.constant 0 : index
    %70 = vector.load %arg3[%c0_50, %c0_51] : memref<1x128xf32, #tpu.memory_space<vmem>>, vector<1x128xf32>
    %71 = vector.broadcast %70 : vector<1x128xf32> to vector<80x128xf32>
    %72 = arith.addf %54, %71 : vector<80x128xf32>
    %cst_52 = arith.constant 0.000000e+00 : f32
    %73 = vector.broadcast %cst_52 : f32 to vector<80x128xf32>
    %74 = arith.maximumf %72, %73 : vector<80x128xf32>
    %cst_53 = arith.constant 0.000000e+00 : f32
    %75 = vector.shape_cast %69 : vector<80x1xi1> to vector<80x1xi1>
    %76 = vector.broadcast %75 : vector<80x1xi1> to vector<80x128xi1>
    %77 = vector.broadcast %cst_53 : f32 to vector<80x128xf32>
    %78 = arith.select %76, %74, %77 : vector<80x128xi1>, vector<80x128xf32>
    %cst_54 = arith.constant 0.000000e+00 : bf16
    %79 = vector.broadcast %cst_54 : bf16 to vector<20x128xbf16>
    %c0_55 = arith.constant 0 : index
    %c0_56 = arith.constant 0 : index
    %80 = vector.load %arg9[%c0_55, %c0_56] : memref<120x128xbf16, #tpu.memory_space<vmem>>, vector<20x128xbf16>
    tpu.vector_store %arg9[%c0_55, %c0_56], %79 {strides = array<i32>} : memref<120x128xbf16, #tpu.memory_space<vmem>>, vector<20x128xbf16>,
    %cst_57 = arith.constant 0.000000e+00 : bf16
    %81 = vector.broadcast %cst_57 : bf16 to vector<20x128xbf16>
    %c100 = arith.constant 100 : index
    %c0_58 = arith.constant 0 : index
    %82 = vector.load %arg9[%c100, %c0_58] : memref<120x128xbf16, #tpu.memory_space<vmem>>, vector<20x128xbf16>
    tpu.vector_store %arg9[%c100, %c0_58], %81 {strides = array<i32>} : memref<120x128xbf16, #tpu.memory_space<vmem>>, vector<20x128xbf16>,
    %83 = arith.truncf %78 : vector<80x128xf32> to vector<80x128xbf16>
    %c20_59 = arith.constant 20 : index
    %c0_60 = arith.constant 0 : index
    %84 = vector.load %arg9[%c20_59, %c0_60] : memref<120x128xbf16, #tpu.memory_space<vmem>>, vector<80x128xbf16>
    tpu.vector_store %arg9[%c20_59, %c0_60], %83 {strides = array<i32>} : memref<120x128xbf16, #tpu.memory_space<vmem>>, vector<80x128xbf16>,
    %cst_61 = arith.constant 0.000000e+00 : f32
    %85 = vector.broadcast %cst_61 : f32 to vector<80x128xf32>
    %c9 = arith.constant 9 : index
    %c0_62 = arith.constant 0 : index
    %86 = vector.load %arg9[%c9, %c0_62] : memref<120x128xbf16, #tpu.memory_space<vmem>>, vector<80x128xbf16>
    %c0_63 = arith.constant 0 : index
    %c0_64 = arith.constant 0 : index
    %c0_65 = arith.constant 0 : index
    %87 = vector.load %arg4[%c0_63, %c0_64, %c0_65] : memref<9x128x128xbf16, #tpu.memory_space<vmem>>, vector<1x128x128xbf16>
    %88 = vector.shape_cast %87 : vector<1x128x128xbf16> to vector<128x128xbf16>
    %cst_66 = arith.constant dense<0.000000e+00> : vector<80x128xf32>
    %89 = tpu.matmul %86, %88, %cst_66 {dimension_numbers = #tpu.dot_dimension_numbers<[1], [0], [0], [1], [0, 0, 1, 1], [], []>} : vector<80x128xbf16>, vector<128x128xbf16>, vector<80x128xf32> -> vector<80x128xf32>
    %90 = arith.addf %85, %89 : vector<80x128xf32>
    %c10 = arith.constant 10 : index
    %c0_67 = arith.constant 0 : index
    %91 = vector.load %arg9[%c10, %c0_67] : memref<120x128xbf16, #tpu.memory_space<vmem>>, vector<80x128xbf16>
    %c1_68 = arith.constant 1 : index
    %c0_69 = arith.constant 0 : index
    %c0_70 = arith.constant 0 : index
    %92 = vector.load %arg4[%c1_68, %c0_69, %c0_70] : memref<9x128x128xbf16, #tpu.memory_space<vmem>>, vector<1x128x128xbf16>
    %93 = vector.shape_cast %92 : vector<1x128x128xbf16> to vector<128x128xbf16>
    %cst_71 = arith.constant dense<0.000000e+00> : vector<80x128xf32>
    %94 = tpu.matmul %91, %93, %cst_71 {dimension_numbers = #tpu.dot_dimension_numbers<[1], [0], [0], [1], [0, 0, 1, 1], [], []>} : vector<80x128xbf16>, vector<128x128xbf16>, vector<80x128xf32> -> vector<80x128xf32>
    %95 = arith.addf %90, %94 : vector<80x128xf32>
    %c11 = arith.constant 11 : index
    %c0_72 = arith.constant 0 : index
    %96 = vector.load %arg9[%c11, %c0_72] : memref<120x128xbf16, #tpu.memory_space<vmem>>, vector<80x128xbf16>
    %c2_73 = arith.constant 2 : index
    %c0_74 = arith.constant 0 : index
    %c0_75 = arith.constant 0 : index
    %97 = vector.load %arg4[%c2_73, %c0_74, %c0_75] : memref<9x128x128xbf16, #tpu.memory_space<vmem>>, vector<1x128x128xbf16>
    %98 = vector.shape_cast %97 : vector<1x128x128xbf16> to vector<128x128xbf16>
    %cst_76 = arith.constant dense<0.000000e+00> : vector<80x128xf32>
    %99 = tpu.matmul %96, %98, %cst_76 {dimension_numbers = #tpu.dot_dimension_numbers<[1], [0], [0], [1], [0, 0, 1, 1], [], []>} : vector<80x128xbf16>, vector<128x128xbf16>, vector<80x128xf32> -> vector<80x128xf32>
    %100 = arith.addf %95, %99 : vector<80x128xf32>
    %c19 = arith.constant 19 : index
    %c0_77 = arith.constant 0 : index
    %101 = vector.load %arg9[%c19, %c0_77] : memref<120x128xbf16, #tpu.memory_space<vmem>>, vector<80x128xbf16>
    %c3_78 = arith.constant 3 : index
    %c0_79 = arith.constant 0 : index
    %c0_80 = arith.constant 0 : index
    %102 = vector.load %arg4[%c3_78, %c0_79, %c0_80] : memref<9x128x128xbf16, #tpu.memory_space<vmem>>, vector<1x128x128xbf16>
    %103 = vector.shape_cast %102 : vector<1x128x128xbf16> to vector<128x128xbf16>
    %cst_81 = arith.constant dense<0.000000e+00> : vector<80x128xf32>
    %104 = tpu.matmul %101, %103, %cst_81 {dimension_numbers = #tpu.dot_dimension_numbers<[1], [0], [0], [1], [0, 0, 1, 1], [], []>} : vector<80x128xbf16>, vector<128x128xbf16>, vector<80x128xf32> -> vector<80x128xf32>
    %105 = arith.addf %100, %104 : vector<80x128xf32>
    %c20_82 = arith.constant 20 : index
    %c0_83 = arith.constant 0 : index
    %106 = vector.load %arg9[%c20_82, %c0_83] : memref<120x128xbf16, #tpu.memory_space<vmem>>, vector<80x128xbf16>
    %c4_84 = arith.constant 4 : index
    %c0_85 = arith.constant 0 : index
    %c0_86 = arith.constant 0 : index
    %107 = vector.load %arg4[%c4_84, %c0_85, %c0_86] : memref<9x128x128xbf16, #tpu.memory_space<vmem>>, vector<1x128x128xbf16>
    %108 = vector.shape_cast %107 : vector<1x128x128xbf16> to vector<128x128xbf16>
    %cst_87 = arith.constant dense<0.000000e+00> : vector<80x128xf32>
    %109 = tpu.matmul %106, %108, %cst_87 {dimension_numbers = #tpu.dot_dimension_numbers<[1], [0], [0], [1], [0, 0, 1, 1], [], []>} : vector<80x128xbf16>, vector<128x128xbf16>, vector<80x128xf32> -> vector<80x128xf32>
    %110 = arith.addf %105, %109 : vector<80x128xf32>
    %c21 = arith.constant 21 : index
    %c0_88 = arith.constant 0 : index
    %111 = vector.load %arg9[%c21, %c0_88] : memref<120x128xbf16, #tpu.memory_space<vmem>>, vector<80x128xbf16>
    %c5_89 = arith.constant 5 : index
    %c0_90 = arith.constant 0 : index
    %c0_91 = arith.constant 0 : index
    %112 = vector.load %arg4[%c5_89, %c0_90, %c0_91] : memref<9x128x128xbf16, #tpu.memory_space<vmem>>, vector<1x128x128xbf16>
    %113 = vector.shape_cast %112 : vector<1x128x128xbf16> to vector<128x128xbf16>
    %cst_92 = arith.constant dense<0.000000e+00> : vector<80x128xf32>
    %114 = tpu.matmul %111, %113, %cst_92 {dimension_numbers = #tpu.dot_dimension_numbers<[1], [0], [0], [1], [0, 0, 1, 1], [], []>} : vector<80x128xbf16>, vector<128x128xbf16>, vector<80x128xf32> -> vector<80x128xf32>
    %115 = arith.addf %110, %114 : vector<80x128xf32>
    %c29 = arith.constant 29 : index
    %c0_93 = arith.constant 0 : index
    %116 = vector.load %arg9[%c29, %c0_93] : memref<120x128xbf16, #tpu.memory_space<vmem>>, vector<80x128xbf16>
    %c6_94 = arith.constant 6 : index
    %c0_95 = arith.constant 0 : index
    %c0_96 = arith.constant 0 : index
    %117 = vector.load %arg4[%c6_94, %c0_95, %c0_96] : memref<9x128x128xbf16, #tpu.memory_space<vmem>>, vector<1x128x128xbf16>
    %118 = vector.shape_cast %117 : vector<1x128x128xbf16> to vector<128x128xbf16>
    %cst_97 = arith.constant dense<0.000000e+00> : vector<80x128xf32>
    %119 = tpu.matmul %116, %118, %cst_97 {dimension_numbers = #tpu.dot_dimension_numbers<[1], [0], [0], [1], [0, 0, 1, 1], [], []>} : vector<80x128xbf16>, vector<128x128xbf16>, vector<80x128xf32> -> vector<80x128xf32>
    %120 = arith.addf %115, %119 : vector<80x128xf32>
    %c30 = arith.constant 30 : index
    %c0_98 = arith.constant 0 : index
    %121 = vector.load %arg9[%c30, %c0_98] : memref<120x128xbf16, #tpu.memory_space<vmem>>, vector<80x128xbf16>
    %c7_99 = arith.constant 7 : index
    %c0_100 = arith.constant 0 : index
    %c0_101 = arith.constant 0 : index
    %122 = vector.load %arg4[%c7_99, %c0_100, %c0_101] : memref<9x128x128xbf16, #tpu.memory_space<vmem>>, vector<1x128x128xbf16>
    %123 = vector.shape_cast %122 : vector<1x128x128xbf16> to vector<128x128xbf16>
    %cst_102 = arith.constant dense<0.000000e+00> : vector<80x128xf32>
    %124 = tpu.matmul %121, %123, %cst_102 {dimension_numbers = #tpu.dot_dimension_numbers<[1], [0], [0], [1], [0, 0, 1, 1], [], []>} : vector<80x128xbf16>, vector<128x128xbf16>, vector<80x128xf32> -> vector<80x128xf32>
    %125 = arith.addf %120, %124 : vector<80x128xf32>
    %c31 = arith.constant 31 : index
    %c0_103 = arith.constant 0 : index
    %126 = vector.load %arg9[%c31, %c0_103] : memref<120x128xbf16, #tpu.memory_space<vmem>>, vector<80x128xbf16>
    %c8_104 = arith.constant 8 : index
    %c0_105 = arith.constant 0 : index
    %c0_106 = arith.constant 0 : index
    %127 = vector.load %arg4[%c8_104, %c0_105, %c0_106] : memref<9x128x128xbf16, #tpu.memory_space<vmem>>, vector<1x128x128xbf16>
    %128 = vector.shape_cast %127 : vector<1x128x128xbf16> to vector<128x128xbf16>
    %cst_107 = arith.constant dense<0.000000e+00> : vector<80x128xf32>
    %129 = tpu.matmul %126, %128, %cst_107 {dimension_numbers = #tpu.dot_dimension_numbers<[1], [0], [0], [1], [0, 0, 1, 1], [], []>} : vector<80x128xbf16>, vector<128x128xbf16>, vector<80x128xf32> -> vector<80x128xf32>
    %130 = arith.addf %125, %129 : vector<80x128xf32>
    %c0_108 = arith.constant 0 : index
    %c0_109 = arith.constant 0 : index
    %131 = vector.load %arg5[%c0_108, %c0_109] : memref<1x128xf32, #tpu.memory_space<vmem>>, vector<1x128xf32>
    %132 = vector.broadcast %131 : vector<1x128xf32> to vector<80x128xf32>
    %133 = arith.addf %130, %132 : vector<80x128xf32>
    %c0_110 = arith.constant 0 : index
    %c20_111 = arith.constant 20 : index
    %c0_112 = arith.constant 0 : index
    %134 = vector.load %arg1[%c0_110, %c20_111, %c0_112] : memref<1x480x128xbf16, #tpu.memory_space<vmem>>, vector<1x80x128xbf16>
    %135 = vector.shape_cast %134 : vector<1x80x128xbf16> to vector<80x128xbf16>
    %c0_113 = arith.constant 0 : index
    %c0_114 = arith.constant 0 : index
    %136 = vector.load %arg6[%c0_113, %c0_114] : memref<128x128xbf16, #tpu.memory_space<vmem>>, vector<128x128xbf16>
    %cst_115 = arith.constant dense<0.000000e+00> : vector<80x128xf32>
    %137 = tpu.matmul %135, %136, %cst_115 {dimension_numbers = #tpu.dot_dimension_numbers<[1], [0], [0], [1], [0, 0, 1, 1], [], []>} : vector<80x128xbf16>, vector<128x128xbf16>, vector<80x128xf32> -> vector<80x128xf32>
    %c0_116 = arith.constant 0 : index
    %c0_117 = arith.constant 0 : index
    %138 = vector.load %arg7[%c0_116, %c0_117] : memref<1x128xf32, #tpu.memory_space<vmem>>, vector<1x128xf32>
    %139 = vector.broadcast %138 : vector<1x128xf32> to vector<80x128xf32>
    %140 = arith.addf %137, %139 : vector<80x128xf32>
    %141 = arith.addf %133, %140 : vector<80x128xf32>
    %cst_118 = arith.constant 0.000000e+00 : f32
    %142 = vector.broadcast %cst_118 : f32 to vector<80x128xf32>
    %143 = arith.maximumf %141, %142 : vector<80x128xf32>
    %144 = arith.truncf %143 : vector<80x128xf32> to vector<80x128xbf16>
    %c0_119 = arith.constant 0 : index
    %c0_120 = arith.constant 0 : index
    %c0_121 = arith.constant 0 : index
    %145 = vector.load %arg8[%c0_119, %c0_120, %c0_121] : memref<1x80x128xbf16, #tpu.memory_space<vmem>>, vector<1x80x128xbf16>
    %146 = vector.shape_cast %145 : vector<1x80x128xbf16> to vector<80x128xbf16>
    %147 = vector.shape_cast %144 : vector<80x128xbf16> to vector<1x80x128xbf16>
    tpu.vector_store %arg8[%c0_119, %c0_120, %c0_121], %147 {strides = array<i32>} : memref<1x80x128xbf16, #tpu.memory_space<vmem>>, vector<1x80x128xbf16>,
    return
  }
  func.func @transform_0(%arg0: i32) -> (i32, i32, i32) {
    %c0_i32 = arith.constant 0 : i32
    %c0_i32_0 = arith.constant 0 : i32
    %c0_i32_1 = arith.constant 0 : i32
    return %arg0, %c0_i32, %c0_i32_0 : i32, i32, i32
  }
  func.func @transform_1(%arg0: i32) -> (i32, i32, i32) {
    %c0_i32 = arith.constant 0 : i32
    %c0_i32_0 = arith.constant 0 : i32
    %c0_i32_1 = arith.constant 0 : i32
    %c0_i32_2 = arith.constant 0 : i32
    return %c0_i32, %c0_i32_0, %c0_i32_1 : i32, i32, i32
  }
  func.func @transform_2(%arg0: i32) -> (i32, i32) {
    %c0_i32 = arith.constant 0 : i32
    %c0_i32_0 = arith.constant 0 : i32
    %c0_i32_1 = arith.constant 0 : i32
    return %c0_i32, %c0_i32_0 : i32, i32
  }
  func.func @transform_3(%arg0: i32) -> (i32, i32, i32) {
    %c0_i32 = arith.constant 0 : i32
    %c0_i32_0 = arith.constant 0 : i32
    %c0_i32_1 = arith.constant 0 : i32
    %c0_i32_2 = arith.constant 0 : i32
    return %c0_i32, %c0_i32_0, %c0_i32_1 : i32, i32, i32
  }
  func.func @transform_4(%arg0: i32) -> (i32, i32) {
    %c0_i32 = arith.constant 0 : i32
    %c0_i32_0 = arith.constant 0 : i32
    %c0_i32_1 = arith.constant 0 : i32
    return %c0_i32, %c0_i32_0 : i32, i32
  }
  func.func @transform_5(%arg0: i32) -> (i32, i32) {
    %c0_i32 = arith.constant 0 : i32
    %c0_i32_0 = arith.constant 0 : i32
    %c0_i32_1 = arith.constant 0 : i32
    return %c0_i32, %c0_i32_0 : i32, i32
  }
  func.func @transform_6(%arg0: i32) -> (i32, i32) {
    %c0_i32 = arith.constant 0 : i32
    %c0_i32_0 = arith.constant 0 : i32
    %c0_i32_1 = arith.constant 0 : i32
    return %c0_i32, %c0_i32_0 : i32, i32
  }
  func.func @transform_7(%arg0: i32) -> (i32, i32, i32) {
    %c0_i32 = arith.constant 0 : i32
    %c0_i32_0 = arith.constant 0 : i32
    %c0_i32_1 = arith.constant 0 : i32
    return %arg0, %c0_i32, %c0_i32_0 : i32, i32, i32
  }
}

</mosaic_0001>

<bundles_post_ra>
// kernel: basic_block_forward.1
= control target key start
LH: loop header
LB: loop body
LE: loop exit
PB: predicated region body
PF: predicated region fallthrough
CT: control target
= control target key end

     0   :  { %s6263_s24 = smov 0   ;;  %s8060_s0 = inlined_call_operand.vmem [shape: bf16[2,480,128], index: 0, kind: input, shape index: {}]   ;;  %s8061_s1 = inlined_call_operand.vmem [shape: bf16[9,128,128], index: 1, kind: input, shape index: {}]   ;;  %s8062_s2 = inlined_call_operand.vmem [shape: f32[1,128], index: 2, kind: input, shape index: {}]   ;;  %s8063_s3 = inlined_call_operand.vmem [shape: bf16[9,128,128], index: 3, kind: input, shape index: {}]   ;;  %s8064_s4 = inlined_call_operand.vmem [shape: f32[1,128], index: 4, kind: input, shape index: {}]   ;;  %s8065_s5 = inlined_call_operand.vmem [shape: bf16[128,128], index: 5, kind: input, shape index: {}]   ;;  %s8066_s6 = inlined_call_operand.vmem [shape: f32[1,128], index: 6, kind: input, shape index: {}]   ;;  %s8067_s7 = inlined_call_operand.vmem [shape: bf16[2,80,128], index: 7, kind: output, shape index: {}]  }
   0x1 LB: > { %s4473_s25 = sadd.s32 4294967295, %s6218_s24   ;;  %p4477_p0 = scmp.ge.s32.totalorder %s6218_s24, 1  ;;  %s6218_s24 = sphi %s6263_s24, %s17_s24  }
   0x2   : > { %p237_p1 = scmp.lt.s32.totalorder %s6218_s24, 3 }
   0x4   : > { %p238_p2 = pnand %p4477_p0, %p237_p1 }
   0x5   : > { %p269_p3 = scmp.lt.s32.totalorder (!%p238_p2), %s4473_s25, 1 }
   0x6   : > { %241 = sbr.rel (%p238_p2) target bundleno = 842 (0x34a), region = 48 }
   0xb   : > { %v5991_v0 = vld [vmem:[%s8061_s1 + $0x78] sm:$0xff]   ;;  %v6220_v1 = vmov 0.0   ;;  %v5993_v3 = vld [vmem:[%s8061_s1 + $0x70] sm:$0xff]   ;;  %vm6221_vm0 = vmmov 0   ;;  %v5995_v5 = vld [vmem:[%s8061_s1 + $0x68] sm:$0xff]   ;;  %s8087_s25 = smov (!%p269_p3, %s4473_s25), 1 }
   0xc   : > { %5278 = vmatprep.subr.bf16.mxu0 %v6220_v1  ;;  %5314 = vmatprep.subr.bf16.mxu1 %v6220_v1  ;;  %v5992_v2 = vld [vmem:[%s8061_s1 + $0x38] sm:$0xff]   ;;  %v5994_v4 = vld [vmem:[%s8061_s1 + $0x30] sm:$0xff]   ;;  %v5996_v6 = vld [vmem:[%s8061_s1 + $0x28] sm:$0xff]   ;;  %s5978_s19 = smul.u32 240, %s8087_s25  ;;  %vm363_vm1 = vcmask 1046528   ;;  %vm1170_vm4 = vcmask 1045504  }
   0xd   : > { %5279 = vmatpush3.bf16.msra.mxu0 %v5991_v0  ;;  %5294 = vmatprep.mubr.msk.bf16.mxu0 %vm6221_vm0, %v6220_v1  ;;  %v5997_v7 = vld [vmem:[%s8061_s1 + $0x60] sm:$0xff]   ;;  %v5999_v9 = vld [vmem:[%s8061_s1 + $0x58] sm:$0xff]   ;;  %v6001_v11 = vld [vmem:[%s8061_s1 + $0x50] sm:$0xff]   ;;  %vm529_vm2 = vsmask.f32 7424  ;;  %vm2296_vm10 = vcmask 1041408  }
   0xe   : > { %5315 = vmatpush3.bf16.msra.mxu1 %v5992_v2  ;;  %5280 = vmatprep.subr.bf16.mxu0 %v6220_v1  ;;  %v5998_v8 = vld [vmem:[%s8061_s1 + $0x20] sm:$0xff]   ;;  %v6000_v10 = vld [vmem:[%s8061_s1 + $0x18] sm:$0xff]   ;;  %s6320_s28 = scalar_lea.vmem %s8060_s0, %s5978_s19  ;;  %v6002_v14 = vld [vmem:[%s8061_s1 + $0x10] sm:$0xff]   ;;  %vm924_vm3 = vsmask.f32 6400  ;;  %vm2297_vm11 = vcmask 1045508  }
   0xf   : > { %5316 = vmatprep.subr.bf16.mxu1 %v6220_v1  ;;  %5330 = vmatprep.mubr.msk.bf16.mxu1 %vm6221_vm0, %v6220_v1  ;;  %v280_v12 = vld [vmem:[%s6320_s28 + $0xb8] sm:$0xf]  ;;  %v6328_v13 = vld [vmem:[%s6320_s28 + $0xbc] sm:$0xf]  ;;  %v6336_v16 = vld [vmem:[%s6320_s28 + $0xc0] sm:$0xff]   ;;  %s5979_s15 = smul.u32 40, %s8087_s25 }
  0x10   : > { %v4510_v15 = vcombine.low %v280_v12, %v6328_v13  ;;  %v6003_v17 = vld [vmem:[%s8061_s1 + $0x48] sm:$0xff]   ;;  %v6007_v18 = vld [vmem:[%s6320_s28 + $0x7c] sm:$0xfe]   ;;  %v538_v24 = vshll.u32 %v6336_v16, 16  ;;  %v542_v36 = vshrl.u32 %v6336_v16, 16  ;;  %v6012_v39 = vld [vmem:[%s8061_s1 + $0xb0] sm:$0xff]  }
  0x11   : > { %5281 = vmatpush3.bf16.msra.mxu0 %v5993_v3  ;;  %v6008_v19 = vld [vmem:[%s6320_s28 + $0x84] sm:$0xff]   ;;  %v364_v27 = vrot.slane %v6007_v18, 1  ;;  %v6011_v32 = vld [vmem:[%s8061_s1 + $0xb8] sm:$0xff]   ;;  %v6013_v34 = vld [vmem:[%s6320_s28 + $0x8c] sm:$0xff]   ;;  %s8020_s18 = scalar_lea.vmem %s8067_s7, %s5979_s15 }
  0x12   : > { %5317 = vmatpush3.bf16.msra.mxu1 %v5994_v4  ;;  %5282 = vmatprep.subr.bf16.mxu0 %v6220_v1  ;;  %v533_v20 = vshll.u32 %v4510_v15, 16  ;;  %v6004_v21 = vld [vmem:[%s8061_s1 + $0x8] sm:$0xff]   ;;  %v531_v22 = vshrl.u32 %v4510_v15, 16  ;;  %v6005_v25 = vld [vmem:[%s8061_s1 + $0x40] sm:$0xff]   ;;  %v365_v28 = vrot.slane %v6008_v19, 1  ;;  %v540_v30 = vrot.slane %v538_v24, 1 }
  0x13   : > { %5318 = vmatprep.subr.bf16.mxu1 %v6220_v1  ;;  %v6006_v26 = vld [vmem:[%s8061_s1] sm:$0xff]   ;;  %v6358_v31 = vld [vmem:[%s6320_s28 + $0xc8] sm:$0xff]   ;;  %v6016_v38 = vld [vmem:[%s8061_s1 + $0xf8] sm:$0xff]   ;;  %v367_v40 = vrot.slane %v6013_v34, 1 }
  0x14   : > { %v535_v23 = vrot.slane %v533_v20, 1  ;;  %v366_v33 = vsel %vm363_vm1, %v364_v27, %v365_v28  ;;  %v546_v37 = vshll.u32 %v6358_v31, 16  ;;  %v544_v41 = vor.u32 %v542_v36, %v540_v30  ;;  %v6381_v43 = vld [vmem:[%s6320_s28 + $0xd0] sm:$0xff]   ;;  %v6015_v45 = vld [vmem:[%s8061_s1 + $0xa8] sm:$0xff]   ;;  %v6020_v53 = vld [vmem:[%s8061_s1 + $0xa0] sm:$0xff]  }
  0x15   : > { %5283 = vmatpush3.bf16.msra.mxu0 %v5995_v5  ;;  %v6017_v44 = vld [vmem:[%s8061_s1 + $0xf0] sm:$0xff]   ;;  %v368_v46 = vsel %vm363_vm1, %v365_v28, %v367_v40  ;;  %v550_v49 = vshrl.u32 %v6358_v31, 16  ;;  %v554_v50 = vshll.u32 %v6381_v43, 16  ;;  %v6021_v51 = vld [vmem:[%s8061_s1 + $0xe8] sm:$0xff]   ;;  %v6410_v56 = vld [vmem:[%s6320_s28 + $0xd8] sm:$0xff]   ;;  %v558_v62 = vshrl.u32 %v6381_v43, 16 }
  0x16   : > { %5319 = vmatpush3.bf16.msra.mxu1 %v5996_v6  ;;  %5284 = vmatprep.subr.bf16.mxu0 %v6220_v1  ;;  %v536_v29 = vor.u32 %v535_v23, %v531_v22  ;;  %v548_v42 = vrot.slane %v546_v37, 1  ;;  %v6018_v47 = vld [vmem:[%s6320_s28 + $0x94] sm:$0xff]   ;;  %v6023_v57 = vld [vmem:[%s8061_s1 + $0xe0] sm:$0xff]   ;;  %v562_v63 = vshll.u32 %v6410_v56, 16  ;;  %v566_v5 = vshrl.u32 %v6410_v56, 16  ;;  %v6460_v19 = vld [vmem:[%s6320_s28 + $0x4c] sm:$0xff]  }
  0x17   : > { %5320 = vmatprep.subr.bf16.mxu1 %v6220_v1  ;;  %v369_v52 = vrot.slane %v6018_v47, 1  ;;  %v556_v55 = vrot.slane %v554_v50, 1  ;;  %v6024_v58 = vld [vmem:[%s6320_s28 + $0x9c] sm:$0xff]   ;;  %v6026_v4 = vld [vmem:[%s8061_s1 + $0x90] sm:$0xff]   ;;  %v6032_v20 = vld [vmem:[%s8061_s1 + $0xc8] sm:$0xff]  }
  0x18   : > { %v541_v35 = vsel %vm529_vm2, %v536_v29, %v540_v30  ;;  %v549_v48 = vsel %vm529_vm2, %v544_v41, %v548_v42  ;;  %v552_v54 = vor.u32 %v550_v49, %v548_v42  ;;  %v6022_v60 = vld [vmem:[%s8061_s1 + $0x98] sm:$0xff]   ;;  %v371_v2 = vrot.slane %v6024_v58, 1  ;;  %v6431_v3 = vld [vmem:[%s6320_s28 + $0xe0] ss:$0 sps:$4 sm:$0x11]   ;;  %v6043_v58 = vld [vmem:[%s8061_s1 + $0x170] sm:$0xff]  }
  0x19   : > { %5285 = vmatpush3.bf16.msra.mxu0 %v5997_v7  ;;  %v370_v59 = vsel %vm363_vm1, %v367_v40, %v369_v52  ;;  %v6027_v0 = vld [vmem:[%s8061_s1 + $0xd8] sm:$0xff]   ;;  %v560_v6 = vor.u32 %v558_v62, %v556_v55  ;;  %v564_v7 = vrot.slane %v562_v63, 1  ;;  %v6030_v12 = vld [vmem:[%s6320_s28 + $0xa4] ss:$0 sps:$4 sm:$0x11]   ;;  %v934_v29 = vshrl.u32 %v6460_v19, 16 }
  0x1a   : > { %5321 = vmatpush3.bf16.msra.mxu1 %v5998_v8  ;;  %5286 = vmatprep.subr.bf16.mxu0 %v6220_v1  ;;  %v557_v61 = vsel %vm529_vm2, %v552_v54, %v556_v55  ;;  %v6029_v8 = vld [vmem:[%s8061_s1 + $0xd0] sm:$0xff]   ;;  %v372_v15 = vsel %vm363_vm1, %v369_v52, %v371_v2  ;;  %v6033_v23 = vld [vmem:[%s8061_s1 + $0x80] sm:$0xff]   ;;  %v700_v24 = vld [vmem:[%s6320_s28 + $0xb8] sm:$0xe]  ;;  %v937_v30 = vshll.u32 %v6460_v19, 16  ;;  %v722_v41 = vrot.slane %v6336_v16, 1 }
  0x1b   : > { %5322 = vmatprep.subr.bf16.mxu1 %v6220_v1  ;;  %v6036_v47 = vld [vmem:[%s8061_s1 + $0x138] sm:$0xff]   ;;  %v6039_v52 = vld [vmem:[%s8061_s1 + $0x130] sm:$0xff]  }
  0x1c   : > { %v6502_v50 = vld [vmem:[%s6320_s28 + $0x5c] sm:$0xff]  }
  0x1d   : > { %5287 = vmatpush3.bf16.msra.mxu0 %v5999_v9  ;;  %v868_v9 = vld [vmem:[%s6320_s28 + $0x44] sm:$0xe]  ;;  %v952_v55 = vshrl.u32 %v6502_v50, 16 }
  0x1e   : > { %5323 = vmatpush3.bf16.msra.mxu1 %v6000_v10  ;;  %5288 = vmatprep.subr.bf16.mxu0 %v6220_v1  ;;  %v6447_v10 = vld [vmem:[%s6320_s28 + $0x48] sm:$0xf] }
  0x1f   : > { %5324 = vmatprep.subr.bf16.mxu1 %v6220_v1  ;;  %v4565_v18 = vcombine.low %v868_v9, %v6447_v10  ;;  %v954_v62 = vrot.slane %v952_v55, 1 }
  0x21   : > { %5289 = vmatpush3.bf16.msra.mxu0 %v6001_v11  ;;  %v6028_v11 = vld [vmem:[%s8061_s1 + $0x88] sm:$0xff]   ;;  %v926_v27 = vshrl.u32 %v4565_v18, 16  ;;  %v929_v28 = vshll.u32 %v4565_v18, 16  ;;  %v728_v18 = vrot.slane %v6410_v56, 1 }
  0x22   : > { %5325 = vmatpush3.bf16.msra.mxu1 %v6002_v14  ;;  %5290 = vmatprep.subr.bf16.mxu0 %v6220_v1  ;;  %v570_v14 = vshll.u32 %v6431_v3, 16 }
  0x23   : > { %5326 = vmatprep.subr.bf16.mxu1 %v6220_v1  ;;  %v928_v36 = vrot.slane %v926_v27, 1  ;;  %v931_v37 = vrot.slane %v929_v28, 2  ;;  %v6585_v27 = vld [vmem:[%s6320_s28 + $0xc0] sm:$0xf] }
  0x24   : > { %v572_v22 = vrot.slane %v570_v14, 1 }
  0x25   : > { %5291 = vmatpush3.bf16.msra.mxu0 %v6003_v17  ;;  %v565_v17 = vsel %vm529_vm2, %v560_v6, %v564_v7 }
  0x26   : > { %5327 = vmatpush3.bf16.msra.mxu1 %v6004_v21  ;;  %5292 = vmatprep.subr.bf16.mxu0 %v6220_v1  ;;  %v373_v21 = vrot.slane %v6030_v12, 1  ;;  %v6051_v12 = vld [vmem:[%s8061_s1 + $0x158] sm:$0xff]  }
  0x27   : > { %5328 = vmatprep.subr.bf16.mxu1 %v6220_v1 }
  0x29   : > { %5293 = vmatpush3.bf16.msra.mxu0 %v6005_v25  ;;  %v568_v25 = vor.u32 %v566_v5, %v564_v7 }
  0x2a   : > { %5329 = vmatpush3.bf16.msra.mxu1 %v6006_v26  ;;  %5350 = vmatprep.subr.bf16.mxu0 %v6220_v1  ;;  %v6034_v26 = vld [vmem:[%s8061_s1 + $0xc0] sm:$0xff]  }
  0x2b   : > { %5386 = vmatprep.subr.bf16.mxu1 %v6220_v1  ;;  %v573_v34 = vsel %vm529_vm2, %v568_v25, %v572_v22  ;;  %v730_v22 = vrot.slane %v6431_v3, 1  ;;  %v1318_v25 = vld [vmem:[%s6320_s28 + $0x44] sm:$0xc]  ;;  %v6052_v3 = vld [vmem:[%s8061_s1 + $0x108] sm:$0xff]  }
  0x2c   : > { %5295 = vmatmul.mubr.bf16.vlgmr.msra.gmra.mxu0 %v366_v33  ;;  %v374_v33 = vsel %vm363_vm1, %v371_v2, %v373_v21  ;;  %v726_v2 = vrot.slane %v6381_v43, 1  ;;  %v6048_v43 = vld [vmem:[%s8061_s1 + $0x160] sm:$0xff]   ;;  %v6053_v21 = vld [vmem:[%s8061_s1 + $0x150] sm:$0xff]  }
  0x2d   : > { %5331 = vmatmul.mubr.bf16.vlgmr.msra.gmra.mxu1 %v541_v35  ;;  %5351 = vmatpush3.bf16.msra.mxu0 %v6011_v32  ;;  %v6482_v32 = vld [vmem:[%s6320_s28 + $0x54] sm:$0xff]   ;;  %v4540_v35 = vcombine.low %v700_v24, %v6328_v13  ;;  %v932_v13 = vor.u32 %v931_v37, %v928_v36  ;;  %v731_v55 = vsel %vm363_vm1, %v728_v18, %v730_v22 }
  0x2e   : > { %5352 = vmatprep.subr.bf16.mxu0 %v6220_v1  ;;  %5298 = vmatprep.mubr.msk.bf16.mxu0 %vm6221_vm0, %v6220_v1  ;;  %v729_v28 = vsel %vm363_vm1, %v726_v2, %v728_v18  ;;  %v6597_v36 = vld [vmem:[%s6320_s28 + $0x10] sm:$0xff]   ;;  %v6600_v37 = vld [vmem:[%s6320_s28 + $0x18] sm:$0xff]  }
  0x2f   : > { %5334 = vmatprep.mubr.msk.bf16.mxu1 %vm6221_vm0, %v6220_v1  ;;  %5387 = vmatpush3.bf16.msra.mxu1 %v6016_v38  ;;  %v936_v38 = vrot.slane %v934_v29, 1  ;;  %v721_v40 = vrot.slane %v4540_v35, 1  ;;  %v6055_v29 = vld [vmem:[%s8061_s1 + $0x148] sm:$0xff]   ;;  %v6060_v22 = vld [vmem:[%s8061_s1 + $0x1b8] sm:$0xff]  }
  0x30   : > { %5388 = vmatprep.subr.bf16.mxu1 %v6220_v1  ;;  %v6594_v35 = vld [vmem:[%s6320_s28 + $0x8] sm:$0xfc]  }
  0x31   : > { %5353 = vmatpush3.bf16.msra.mxu0 %v6012_v39  ;;  %v939_v39 = vrot.slane %v937_v30, 2 }
  0x32   : > { %5354 = vmatprep.subr.bf16.mxu0 %v6220_v1 }
  0x33   : > { %5389 = vmatpush3.bf16.msra.mxu1 %v6017_v44  ;;  %v940_v42 = vor.u32 %v939_v39, %v936_v38  ;;  %v943_v44 = vshrl.u32 %v6482_v32, 16  ;;  %v4625_v38 = vcombine.low %v1318_v25, %v6447_v10  ;;  %v1340_v39 = vrot.slane %v6460_v19, 2  ;;  %v6057_v10 = vld [vmem:[%s8061_s1 + $0x140] sm:$0xff]   ;;  %v6070_v19 = vld [vmem:[%s8061_s1 + $0x198] sm:$0xff]  }
  0x34   : > { %5299 = vmatmul.mubr.bf16.gmra.mxu0 %v368_v46  ;;  %5390 = vmatprep.subr.bf16.mxu1 %v6220_v1  ;;  %v723_v46 = vsel %vm363_vm1, %v721_v40, %v722_v41  ;;  %v6605_v40 = vld [vmem:[%s6320_s28 + $0x20] sm:$0xff]  }
  0x35   : > { %5335 = vmatmul.mubr.bf16.gmra.mxu1 %v549_v48  ;;  %5355 = vmatpush3.bf16.msra.mxu0 %v6015_v45  ;;  %v946_v45 = vshll.u32 %v6482_v32, 16  ;;  %v941_v48 = vsel %vm924_vm3, %v932_v13, %v940_v42  ;;  %v945_v49 = vrot.slane %v943_v44, 1  ;;  %v1342_v44 = vrot.slane %v6482_v32, 2  ;;  %v6075_v32 = vld [vmem:[%s8061_s1 + $0x188] sm:$0xff]  }
  0x36   : > { %5302 = vmatprep.mubr.msk.bf16.mxu0 %vm6221_vm0, %v6220_v1  ;;  %5338 = vmatprep.mubr.msk.bf16.mxu1 %vm6221_vm0, %v6220_v1 }
  0x37   : > { %5356 = vmatprep.subr.bf16.mxu0 %v6220_v1  ;;  %5391 = vmatpush3.bf16.msra.mxu1 %v6021_v51  ;;  %v948_v16 = vrot.slane %v946_v45, 2  ;;  %v6042_v51 = vld [vmem:[%s8061_s1 + $0x178] sm:$0xff]   ;;  %v6617_v45 = vld [vmem:[%s6320_s28 + $0x28] sm:$0xff]  }
  0x38   : > { %5392 = vmatprep.subr.bf16.mxu1 %v6220_v1 }
  0x39   : > { %5357 = vmatpush3.bf16.msra.mxu0 %v6020_v53  ;;  %v724_v53 = vrot.slane %v6358_v31, 1  ;;  %v949_v54 = vor.u32 %v948_v16, %v945_v49  ;;  %v6041_v31 = vld [vmem:[%s8061_s1 + $0x128] sm:$0xff]   ;;  %v1171_v49 = vrot.slane %v6594_v35, 2 }
  0x3a   : > { %5358 = vmatprep.subr.bf16.mxu0 %v6220_v1 }
  0x3b   : > { %5393 = vmatpush3.bf16.msra.mxu1 %v6023_v57  ;;  %v955_v57 = vshll.u32 %v6502_v50, 16  ;;  %v727_v9 = vsel %vm363_vm1, %v724_v53, %v726_v2  ;;  %v6645_v2 = vld [vmem:[%s6320_s28 + $0xcc] sm:$0xff]  }
  0x3c   : > { %5303 = vmatmul.mubr.bf16.gmra.mxu0 %v370_v59  ;;  %5394 = vmatprep.subr.bf16.mxu1 %v6220_v1  ;;  %v725_v59 = vsel %vm363_vm1, %v722_v41, %v724_v53  ;;  %v6608_v41 = vld [vmem:[%s6320_s28 + $0x30] ss:$0 sps:$4 sm:$0x33]  }
  0x3d   : > { %5339 = vmatmul.mubr.bf16.gmra.mxu1 %v557_v61  ;;  %5359 = vmatpush3.bf16.msra.mxu0 %v6022_v60  ;;  %v6527_v60 = vld [vmem:[%s6320_s28 + $0x64] sm:$0xff]   ;;  %v950_v61 = vsel %vm924_vm3, %v940_v42, %v949_v54  ;;  %v957_v63 = vrot.slane %v955_v57, 2  ;;  %v1174_v57 = vrot.slane %v6600_v37, 2  ;;  %v6073_v37 = vld [vmem:[%s8061_s1 + $0x190] sm:$0xff]  }
  0x3e   : > { %5306 = vmatprep.mubr.msk.bf16.mxu0 %vm6221_vm0, %v6220_v1  ;;  %5342 = vmatprep.mubr.msk.bf16.mxu1 %vm6221_vm0, %v6220_v1  ;;  %v961_v5 = vshrl.u32 %v6527_v60, 16  ;;  %v964_v7 = vshll.u32 %v6527_v60, 16  ;;  %v6056_v42 = vld [vmem:[%s8061_s1 + $0x100] sm:$0xff]   ;;  %v1346_v16 = vrot.slane %v6527_v60, 2  ;;  %v6083_v60 = vld [vmem:[%s8061_s1 + $0x238] sm:$0xff]  }
  0x3f   : > { %5360 = vmatprep.subr.bf16.mxu0 %v6220_v1  ;;  %5395 = vmatpush3.bf16.msra.mxu1 %v6027_v0  ;;  %v6046_v0 = vld [vmem:[%s8061_s1 + $0x168] sm:$0xff]   ;;  %v958_v6 = vor.u32 %v957_v63, %v954_v62 }
  0x40   : > { %5396 = vmatprep.subr.bf16.mxu1 %v6220_v1 }
  0x41   : > { %5361 = vmatpush3.bf16.msra.mxu0 %v6026_v4  ;;  %v6044_v4 = vld [vmem:[%s8061_s1 + $0x120] sm:$0xff]   ;;  %v959_v14 = vsel %vm924_vm3, %v949_v54, %v958_v6 }
  0x42   : > { %5362 = vmatprep.subr.bf16.mxu0 %v6220_v1 }
  0x43   : > { %5397 = vmatpush3.bf16.msra.mxu1 %v6029_v8  ;;  %v6047_v8 = vld [vmem:[%s8061_s1 + $0x118] sm:$0xff]  }
  0x44   : > { %5307 = vmatmul.mubr.bf16.gmra.mxu0 %v372_v15  ;;  %5398 = vmatprep.subr.bf16.mxu1 %v6220_v1  ;;  %v966_v15 = vrot.slane %v964_v7, 2 }
  0x45   : > { %5343 = vmatmul.mubr.bf16.gmra.mxu1 %v565_v17  ;;  %5310 = vmatprep.mubr.msk.bf16.mxu0 %vm6221_vm0, %v6220_v1  ;;  %v6560_v17 = vld [vmem:[%s6320_s28 + $0x6c] ss:$0 sps:$4 sm:$0x33]  }
  0x46   : > { %5346 = vmatprep.mubr.msk.bf16.mxu1 %vm6221_vm0, %v6220_v1  ;;  %5363 = vmatpush3.bf16.msra.mxu0 %v6028_v11  ;;  %v963_v11 = vrot.slane %v961_v5, 1  ;;  %v970_v24 = vshrl.u32 %v6560_v17, 16  ;;  %v973_v56 = vshll.u32 %v6560_v17, 16  ;;  %v1348_v53 = vrot.slane %v6560_v17, 2  ;;  %v6651_v5 = vld [vmem:[%s6320_s28 + $0xd4] sm:$0xff]  }
  0x47   : > { %5364 = vmatprep.subr.bf16.mxu0 %v6220_v1  ;;  %5399 = vmatpush3.bf16.msra.mxu1 %v6032_v20  ;;  %v6050_v20 = vld [vmem:[%s8061_s1 + $0x110] sm:$0xff]  }
  0x48   : > { %5400 = vmatprep.subr.bf16.mxu1 %v6220_v1 }
  0x4a   : > { %5365 = vmatpush3.bf16.msra.mxu0 %v6033_v23  ;;  %v967_v23 = vor.u32 %v966_v15, %v963_v11  ;;  %v1560_v11 = vshrl.u32 %v6645_v2, 16  ;;  %v1569_v15 = vshrl.u32 %v6651_v5, 16 }
  0x4b   : > { %5401 = vmatpush3.bf16.msra.mxu1 %v6034_v26  ;;  %5422 = vmatprep.subr.bf16.mxu0 %v6220_v1  ;;  %v1486_v26 = vld [vmem:[%s6320_s28 + $0xbc] sm:$0xe] }
  0x4c   : > { %5311 = vmatmul.mubr.bf16.gmra.mxu0 %v374_v33  ;;  %5458 = vmatprep.subr.bf16.mxu1 %v6220_v1  ;;  %v968_v30 = vsel %vm924_vm3, %v958_v6, %v967_v23  ;;  %v972_v33 = vrot.slane %v970_v24, 1  ;;  %v4650_v13 = vcombine.low %v1486_v26, %v6585_v27  ;;  %v6655_v6 = vld [vmem:[%s6320_s28 + $0x80] sm:$0xfc]  }
  0x4d   : > { %5347 = vmatmul.mubr.bf16.gmra.mxu1 %v573_v34  ;;  %5366 = vmatprep.mubr.msk.bf16.mxu0 %vm6221_vm0, %v6220_v1  ;;  %v975_v34 = vrot.slane %v973_v56, 2  ;;  %v1787_v56 = vrot.slane %v6655_v6, 2 }
  0x4e   : > { %5402 = vmatprep.mubr.msk.bf16.mxu1 %vm6221_vm0, %v6220_v1  ;;  %v1543_v54 = vshrl.u32 %v4650_v13, 16 }
  0x54   : > { %5367 = vmatmul.mubr.bf16.vlgmr.msra.gmra.mxu0 %v723_v46  ;;  %v1344_v46 = vrot.slane %v6502_v50, 2  ;;  %v6080_v50 = vld [vmem:[%s8061_s1 + $0x1c0] sm:$0xff]  }
  0x55   : > { %5423 = vmatpush3.bf16.msra.mxu0 %v6036_v47  ;;  %5403 = vmatmul.mubr.bf16.vlgmr.msra.gmra.mxu1 %v941_v48  ;;  %v6626_v47 = vld [vmem:[%s6320_s28 + $0xc4] sm:$0xff]   ;;  %v976_v48 = vor.u32 %v975_v34, %v972_v33  ;;  %v6705_v33 = vrot.slane %v1560_v11, 1 }
  0x56   : > { %5424 = vmatprep.subr.bf16.mxu0 %v6220_v1  ;;  %5370 = vmatprep.mubr.msk.bf16.mxu0 %vm6221_vm0, %v6220_v1  ;;  %v1551_v62 = vshrl.u32 %v6626_v47, 16  ;;  %v1345_v11 = vsel %vm1170_vm4, %v1342_v44, %v1344_v46 }
  0x57   : > { %5406 = vmatprep.mubr.msk.bf16.mxu1 %vm6221_vm0, %v6220_v1  ;;  %5459 = vmatpush3.bf16.msra.mxu1 %v6042_v51  ;;  %v1172_v51 = vrot.slane %v6597_v36, 2  ;;  %v977_v63 = vsel %vm924_vm3, %v967_v23, %v976_v48  ;;  %v6065_v23 = vld [vmem:[%s8061_s1 + $0x1f8] sm:$0xff]   ;;  %v6071_v36 = vld [vmem:[%s8061_s1 + $0x1e0] sm:$0xff]  }
  0x58   : > { %5460 = vmatprep.subr.bf16.mxu1 %v6220_v1 }
  0x59   : > { %5425 = vmatpush3.bf16.msra.mxu0 %v6039_v52  ;;  %v1339_v52 = vrot.slane %v4625_v38, 2  ;;  %v1173_v18 = vsel %vm1170_vm4, %v1171_v49, %v1172_v51  ;;  %v6710_v38 = vrot.slane %v1569_v15, 1  ;;  %v1347_v15 = vsel %vm1170_vm4, %v1344_v46, %v1346_v16 }
  0x5a   : > { %5426 = vmatprep.subr.bf16.mxu0 %v6220_v1 }
  0x5b   : > { %5461 = vmatpush3.bf16.msra.mxu1 %v6043_v58  ;;  %v1176_v58 = vrot.slane %v6605_v40, 2  ;;  %v1341_v26 = vsel %vm1170_vm4, %v1339_v52, %v1340_v39  ;;  %v6064_v52 = vld [vmem:[%s8061_s1 + $0x1a8] sm:$0xff]   ;;  %v6079_v40 = vld [vmem:[%s8061_s1 + $0x180] sm:$0xff]  }
  0x5c   : > { %5371 = vmatmul.mubr.bf16.gmra.mxu0 %v725_v59  ;;  %5462 = vmatprep.subr.bf16.mxu1 %v6220_v1  ;;  %v1180_v59 = vrot.slane %v6608_v41, 2 }
  0x5d   : > { %5407 = vmatmul.mubr.bf16.gmra.mxu1 %v950_v61  ;;  %5427 = vmatpush3.bf16.msra.mxu0 %v6041_v31  ;;  %v1178_v31 = vrot.slane %v6617_v45, 2  ;;  %v1546_v61 = vshll.u32 %v4650_v13, 16 }
  0x5e   : > { %5374 = vmatprep.mubr.msk.bf16.mxu0 %vm6221_vm0, %v6220_v1  ;;  %5428 = vmatprep.subr.bf16.mxu0 %v6220_v1 }
  0x5f   : > { %5410 = vmatprep.mubr.msk.bf16.mxu1 %vm6221_vm0, %v6220_v1  ;;  %5463 = vmatpush3.bf16.msra.mxu1 %v6046_v0  ;;  %v1554_v0 = vshll.u32 %v6626_v47, 16  ;;  %v6659_v7 = vrot.slane %v1546_v61, 2  ;;  %v1175_v61 = vsel %vm1170_vm4, %v1172_v51, %v1174_v57  ;;  %v6074_v51 = vld [vmem:[%s8061_s1 + $0x1d8] sm:$0xff]   ;;  %v1181_v46 = vsel %vm1170_vm4, %v1178_v31, %v1180_v59  ;;  %v6089_v59 = vld [vmem:[%s8061_s1 + $0x228] sm:$0xff]  }
  0x60   : > { %5464 = vmatprep.subr.bf16.mxu1 %v6220_v1 }
  0x61   : > { %5429 = vmatpush3.bf16.msra.mxu0 %v6044_v4  ;;  %v6648_v4 = vrot.slane %v1543_v54, 1  ;;  %v6690_v24 = vrot.slane %v1554_v0, 2  ;;  %v6068_v0 = vld [vmem:[%s8061_s1 + $0x1a0] sm:$0xff]  }
  0x62   : > { %5430 = vmatprep.subr.bf16.mxu0 %v6220_v1 }
  0x63   : > { %5465 = vmatpush3.bf16.msra.mxu1 %v6048_v43  ;;  %v6662_v43 = vld [vmem:[%s6320_s28 + $0xdc] sm:$0xff]   ;;  %v1549_v41 = vor.u32 %v6659_v7, %v6648_v4 }
  0x64   : > { %5375 = vmatmul.mubr.bf16.gmra.mxu0 %v727_v9  ;;  %5466 = vmatprep.subr.bf16.mxu1 %v6220_v1  ;;  %v6669_v9 = vld [vmem:[%s6320_s28 + $0x88] sm:$0xff]   ;;  %v1578_v25 = vshrl.u32 %v6662_v43, 16  ;;  %v6091_v7 = vld [vmem:[%s8061_s1 + $0x220] sm:$0xff]  }
  0x65   : > { %5411 = vmatmul.mubr.bf16.gmra.mxu1 %v959_v14  ;;  %5431 = vmatpush3.bf16.msra.mxu0 %v6047_v8  ;;  %v6666_v8 = vrot.slane %v1551_v62, 1  ;;  %v6674_v14 = vld [vmem:[%s6320_s28 + $0x90] sm:$0xff]   ;;  %v6069_v62 = vld [vmem:[%s8061_s1 + $0x1e8] sm:$0xff]  }
  0x66   : > { %5378 = vmatprep.mubr.msk.bf16.mxu0 %vm6221_vm0, %v6220_v1  ;;  %5414 = vmatprep.mubr.msk.bf16.mxu1 %vm6221_vm0, %v6220_v1  ;;  %v1790_v34 = vrot.slane %v6674_v14, 2  ;;  %v6718_v48 = vrot.slane %v1578_v25, 1 }
  0x67   : > { %5432 = vmatprep.subr.bf16.mxu0 %v6220_v1  ;;  %5467 = vmatpush3.bf16.msra.mxu1 %v6051_v12  ;;  %v1563_v12 = vshll.u32 %v6645_v2, 16  ;;  %v1557_v17 = vor.u32 %v6690_v24, %v6666_v8 }
  0x68   : > { %5468 = vmatprep.subr.bf16.mxu1 %v6220_v1 }
  0x69   : > { %5433 = vmatpush3.bf16.msra.mxu0 %v6050_v20  ;;  %v1572_v20 = vshll.u32 %v6651_v5, 16  ;;  %v6708_v35 = vrot.slane %v1563_v12, 2  ;;  %v6078_v12 = vld [vmem:[%s8061_s1 + $0x1c8] sm:$0xff]   ;;  %v1558_v45 = vsel %vm924_vm3, %v1549_v41, %v1557_v17 }
  0x6a   : > { %5434 = vmatprep.subr.bf16.mxu0 %v6220_v1 }
  0x6b   : > { %5469 = vmatpush3.bf16.msra.mxu1 %v6053_v21  ;;  %v6682_v21 = vld [vmem:[%s6320_s28 + $0x98] sm:$0xff]   ;;  %v6712_v13 = vrot.slane %v1572_v20, 2 }
  0x6c   : > { %5379 = vmatmul.mubr.bf16.gmra.mxu0 %v729_v28  ;;  %5470 = vmatprep.subr.bf16.mxu1 %v6220_v1  ;;  %v1788_v28 = vrot.slane %v6669_v9, 2  ;;  %v6093_v9 = vld [vmem:[%s8061_s1 + $0x218] sm:$0xff]  }
  0x6d   : > { %5415 = vmatmul.mubr.bf16.gmra.mxu1 %v968_v30  ;;  %5382 = vmatprep.mubr.msk.bf16.mxu0 %vm6221_vm0, %v6220_v1  ;;  %v6062_v30 = vld [vmem:[%s8061_s1 + $0x1b0] sm:$0xff]   ;;  %v1575_v8 = vor.u32 %v6712_v13, %v6710_v38 }
  0x6e   : > { %5435 = vmatpush3.bf16.msra.mxu0 %v6052_v3  ;;  %5418 = vmatprep.mubr.msk.bf16.mxu1 %vm6221_vm0, %v6220_v1  ;;  %v1581_v3 = vshll.u32 %v6662_v43, 16  ;;  %v1791_v6 = vsel %vm1170_vm4, %v1788_v28, %v1790_v34 }
  0x6f   : > { %5436 = vmatprep.subr.bf16.mxu0 %v6220_v1  ;;  %5471 = vmatpush3.bf16.msra.mxu1 %v6055_v29  ;;  %v6700_v29 = vld [vmem:[%s6320_s28 + $0xe4] ss:$0 sps:$4 sm:$0x33]  }
  0x70   : > { %5472 = vmatprep.subr.bf16.mxu1 %v6220_v1  ;;  %v6720_v49 = vrot.slane %v1581_v3, 2  ;;  %v1587_v54 = vshrl.u32 %v6700_v29, 16 }
  0x72   : > { %5437 = vmatpush3.bf16.msra.mxu0 %v6056_v42  ;;  %v1792_v42 = vrot.slane %v6682_v21, 2  ;;  %v1584_v24 = vor.u32 %v6720_v49, %v6718_v48  ;;  %v1589_v25 = vrot.slane %v1587_v54, 1  ;;  %v1956_v48 = vrot.slane %v6626_v47, 2 }
  0x73   : > { %5473 = vmatpush3.bf16.msra.mxu1 %v6057_v10  ;;  %5494 = vmatprep.subr.bf16.mxu0 %v6220_v1  ;;  %v6066_v10 = vld [vmem:[%s8061_s1 + $0x1f0] sm:$0xff]   ;;  %v1960_v54 = vrot.slane %v6651_v5, 2 }
  0x74   : > { %5383 = vmatmul.mubr.bf16.gmra.mxu0 %v731_v55  ;;  %5530 = vmatprep.subr.bf16.mxu1 %v6220_v1  ;;  %v1590_v55 = vshll.u32 %v6700_v29, 16 }
  0x75   : > { %5419 = vmatmul.mubr.bf16.gmra.mxu1 %v977_v63  ;;  %5438 = vmatprep.mubr.msk.bf16.mxu0 %vm6221_vm0, %v6220_v1  ;;  %v1343_v63 = vsel %vm1170_vm4, %v1340_v39, %v1342_v44  ;;  %v1177_v39 = vsel %vm1170_vm4, %v1174_v57, %v1176_v58  ;;  %v6076_v57 = vld [vmem:[%s8061_s1 + $0x1d0] sm:$0xff]   ;;  %v1179_v44 = vsel %vm1170_vm4, %v1176_v58, %v1178_v31 }
  0x76   : > { %5474 = vmatprep.mubr.msk.bf16.mxu1 %vm6221_vm0, %v6220_v1  ;;  %v1349_v58 = vsel %vm1170_vm4, %v1346_v16, %v1348_v53  ;;  %v1789_v16 = vsel %vm1170_vm4, %v1787_v56, %v1788_v28  ;;  %v6086_v53 = vld [vmem:[%s8061_s1 + $0x230] sm:$0xff]   ;;  %v1566_v31 = vor.u32 %v6708_v35, %v6705_v33  ;;  %v1585_v56 = vsel %vm924_vm3, %v1575_v8, %v1584_v24  ;;  %v6097_v28 = vld [vmem:[%s8061_s1 + $0x208] sm:$0xff]   ;;  %v1934_v35 = vld [vmem:[%s6320_s28 + $0xbc] sm:$0xc] }
  0x77   : > { %v1592_v3 = vrot.slane %v1590_v55, 2  ;;  %v4710_v13 = vcombine.low %v1934_v35, %v6585_v27  ;;  %v1958_v27 = vrot.slane %v6645_v2, 2  ;;  %v1962_v55 = vrot.slane %v6662_v43, 2 }
  0x78   : > { %v1567_v4 = vsel %vm924_vm3, %v1557_v17, %v1566_v31  ;;  %v1576_v20 = vsel %vm924_vm3, %v1566_v31, %v1575_v8  ;;  %v1964_v2 = vrot.slane %v6700_v29, 2 }
  0x79   : > { %v1593_v33 = vor.u32 %v1592_v3, %v1589_v25  ;;  %v1961_v47 = vsel %vm1170_vm4, %v1958_v27, %v1960_v54 }
  0x7b   : > { %v1594_v38 = vsel %vm924_vm3, %v1584_v24, %v1593_v33 }
  0x7c   : > { %5439 = vmatmul.mubr.bf16.vlgmr.msra.gmra.mxu0 %v1173_v18  ;;  %v6095_v18 = vld [vmem:[%s6320_s28 + $0xa0] sm:$0xff]  }
  0x7d   : > { %5495 = vmatpush3.bf16.msra.mxu0 %v6060_v22  ;;  %5475 = vmatmul.mubr.bf16.vlgmr.msra.gmra.mxu1 %v1341_v26  ;;  %v1793_v22 = vsel %vm1170_vm4, %v1790_v34, %v1792_v42  ;;  %v1794_v14 = vrot.slane %v6095_v18, 2  ;;  %v6100_v34 = vld [vmem:[%s8061_s1 + $0x200] sm:$0xff]  }
  0x7e   : > { %5496 = vmatprep.subr.bf16.mxu0 %v6220_v1  ;;  %5442 = vmatprep.mubr.msk.bf16.mxu0 %vm6221_vm0, %v6220_v1 }
  0x7f   : > { %5478 = vmatprep.mubr.msk.bf16.mxu1 %vm6221_vm0, %v6220_v1  ;;  %5531 = vmatpush3.bf16.msra.mxu1 %v6065_v23  ;;  %v6096_v23 = vld [vmem:[%s8061_s1 + $0x210] sm:$0xff]   ;;  %v1795_v26 = vsel %vm1170_vm4, %v1792_v42, %v1794_v14 }
  0x80   : > { %5532 = vmatprep.subr.bf16.mxu1 %v6220_v1 }
  0x81   : > { %5497 = vmatpush3.bf16.msra.mxu0 %v6062_v30  ;;  %v6099_v30 = vld [vmem:[%s6320_s28 + $0xa8] ss:$0 sps:$4 sm:$0x33]  }
  0x82   : > { %5498 = vmatprep.subr.bf16.mxu0 %v6220_v1  ;;  %v1796_v21 = vrot.slane %v6099_v30, 2 }
  0x83   : > { %5533 = vmatpush3.bf16.msra.mxu1 %v6066_v10  ;;  %v1955_v10 = vrot.slane %v4710_v13, 2 }
  0x84   : > { %5443 = vmatmul.mubr.bf16.gmra.mxu0 %v1175_v61  ;;  %5534 = vmatprep.subr.bf16.mxu1 %v6220_v1  ;;  %v1797_v42 = vsel %vm1170_vm4, %v1794_v14, %v1796_v21  ;;  %v1963_v61 = vsel %vm1170_vm4, %v1960_v54, %v1962_v55  ;;  %v6105_v21 = vld [vmem:[%s8063_s3 + $0x38] sm:$0xff]   ;;  %v6104_v54 = vld [vmem:[%s8063_s3 + $0x68] sm:$0xff]  }
  0x85   : > { %5479 = vmatmul.mubr.bf16.gmra.mxu1 %v1343_v63  ;;  %5499 = vmatpush3.bf16.msra.mxu0 %v6064_v52  ;;  %v1957_v49 = vsel %vm1170_vm4, %v1955_v10, %v1956_v48  ;;  %v1959_v52 = vsel %vm1170_vm4, %v1956_v48, %v1958_v27  ;;  %v6106_v48 = vld [vmem:[%s8063_s3 + $0x30] sm:$0xff]  }
  0x86   : > { %5446 = vmatprep.mubr.msk.bf16.mxu0 %vm6221_vm0, %v6220_v1  ;;  %5500 = vmatprep.subr.bf16.mxu0 %v6220_v1 }
  0x87   : > { %5482 = vmatprep.mubr.msk.bf16.mxu1 %vm6221_vm0, %v6220_v1  ;;  %5535 = vmatpush3.bf16.msra.mxu1 %v6069_v62  ;;  %v1965_v62 = vsel %vm1170_vm4, %v1962_v55, %v1964_v2  ;;  %v6108_v2 = vld [vmem:[%s8063_s3 + $0x28] sm:$0xff]  }
  0x88   : > { %5536 = vmatprep.subr.bf16.mxu1 %v6220_v1 }
  0x89   : > { %5501 = vmatpush3.bf16.msra.mxu0 %v6068_v0 }
  0x8a   : > { %5502 = vmatprep.subr.bf16.mxu0 %v6220_v1 }
  0x8b   : > { %5537 = vmatpush3.bf16.msra.mxu1 %v6071_v36 }
  0x8c   : > { %5447 = vmatmul.mubr.bf16.gmra.mxu0 %v1177_v39  ;;  %5538 = vmatprep.subr.bf16.mxu1 %v6220_v1 }
  0x8d   : > { %5483 = vmatmul.mubr.bf16.gmra.mxu1 %v1345_v11  ;;  %5503 = vmatpush3.bf16.msra.mxu0 %v6070_v19 }
  0x8e   : > { %5450 = vmatprep.mubr.msk.bf16.mxu0 %vm6221_vm0, %v6220_v1  ;;  %5486 = vmatprep.mubr.msk.bf16.mxu1 %vm6221_vm0, %v6220_v1 }
  0x8f   : > { %5504 = vmatprep.subr.bf16.mxu0 %v6220_v1  ;;  %5539 = vmatpush3.bf16.msra.mxu1 %v6074_v51 }
  0x90   : > { %5540 = vmatprep.subr.bf16.mxu1 %v6220_v1 }
  0x91   : > { %5505 = vmatpush3.bf16.msra.mxu0 %v6073_v37 }
  0x92   : > { %5506 = vmatprep.subr.bf16.mxu0 %v6220_v1 }
  0x93   : > { %5541 = vmatpush3.bf16.msra.mxu1 %v6076_v57 }
  0x94   : > { %5451 = vmatmul.mubr.bf16.gmra.mxu0 %v1179_v44  ;;  %5542 = vmatprep.subr.bf16.mxu1 %v6220_v1 }
  0x95   : > { %5487 = vmatmul.mubr.bf16.gmra.mxu1 %v1347_v15  ;;  %5454 = vmatprep.mubr.msk.bf16.mxu0 %vm6221_vm0, %v6220_v1 }
  0x96   : > { %5507 = vmatpush3.bf16.msra.mxu0 %v6075_v32  ;;  %5490 = vmatprep.mubr.msk.bf16.mxu1 %vm6221_vm0, %v6220_v1 }
  0x97   : > { %5508 = vmatprep.subr.bf16.mxu0 %v6220_v1  ;;  %5543 = vmatpush3.bf16.msra.mxu1 %v6078_v12 }
  0x98   : > { %5544 = vmatprep.subr.bf16.mxu1 %v6220_v1 }
  0x9a   : > { %5509 = vmatpush3.bf16.msra.mxu0 %v6079_v40 }
  0x9b   : > { %5545 = vmatpush3.bf16.msra.mxu1 %v6080_v50  ;;  %5566 = vmatprep.subr.bf16.mxu0 %v6220_v1 }
  0x9c   : > { %5455 = vmatmul.mubr.bf16.gmra.mxu0 %v1181_v46  ;;  %5602 = vmatprep.subr.bf16.mxu1 %v6220_v1 }
  0x9d   : > { %5491 = vmatmul.mubr.bf16.gmra.mxu1 %v1349_v58  ;;  %5510 = vmatprep.mubr.msk.bf16.mxu0 %vm6221_vm0, %v6220_v1 }
  0x9e   : > { %5546 = vmatprep.mubr.msk.bf16.mxu1 %vm6221_vm0, %v6220_v1 }
  0xa4   : > { %5511 = vmatmul.mubr.bf16.vlgmr.msra.gmra.mxu0 %v1558_v45 }
  0xa5   : > { %5567 = vmatpush3.bf16.msra.mxu0 %v6083_v60  ;;  %5547 = vmatmul.mubr.bf16.vlgmr.msra.gmra.mxu1 %v1789_v16 }
  0xa6   : > { %5568 = vmatprep.subr.bf16.mxu0 %v6220_v1  ;;  %5514 = vmatprep.mubr.msk.bf16.mxu0 %vm6221_vm0, %v6220_v1 }
  0xa7   : > { %5550 = vmatprep.mubr.msk.bf16.mxu1 %vm6221_vm0, %v6220_v1 }
  0xa9   : > { %5569 = vmatpush3.bf16.msra.mxu0 %v6086_v53 }
  0xaa   : > { %5570 = vmatprep.subr.bf16.mxu0 %v6220_v1 }
  0xac   : > { %5515 = vmatmul.mubr.bf16.gmra.mxu0 %v1567_v4 }
  0xad   : > { %5551 = vmatmul.mubr.bf16.gmra.mxu1 %v1791_v6  ;;  %5571 = vmatpush3.bf16.msra.mxu0 %v6089_v59 }
  0xae   : > { %5518 = vmatprep.mubr.msk.bf16.mxu0 %vm6221_vm0, %v6220_v1  ;;  %5572 = vmatprep.subr.bf16.mxu0 %v6220_v1 }
  0xaf   : > { %5554 = vmatprep.mubr.msk.bf16.mxu1 %vm6221_vm0, %v6220_v1 }
  0xb1   : > { %5573 = vmatpush3.bf16.msra.mxu0 %v6091_v7 }
  0xb2   : > { %5574 = vmatprep.subr.bf16.mxu0 %v6220_v1 }
  0xb4   : > { %5519 = vmatmul.mubr.bf16.gmra.mxu0 %v1576_v20 }
  0xb5   : > { %5555 = vmatmul.mubr.bf16.gmra.mxu1 %v1793_v22  ;;  %5575 = vmatpush3.bf16.msra.mxu0 %v6093_v9  ;;  %v6102_v22 = vld [vmem:[%s8063_s3 + $0x78] sm:$0xff]  }
  0xb6   : > { %5522 = vmatprep.mubr.msk.bf16.mxu0 %vm6221_vm0, %v6220_v1  ;;  %5558 = vmatprep.mubr.msk.bf16.mxu1 %vm6221_vm0, %v6220_v1 }
  0xb7   : > { %5576 = vmatprep.subr.bf16.mxu0 %v6220_v1  ;;  %5603 = vmatpush3.bf16.msra.mxu1 %v6102_v22 }
  0xb8   : > { %5604 = vmatprep.subr.bf16.mxu1 %v6220_v1 }
  0xb9   : > { %5577 = vmatpush3.bf16.msra.mxu0 %v6096_v23 }
  0xba   : > { %5578 = vmatprep.subr.bf16.mxu0 %v6220_v1 }
  0xbc   : > { %5523 = vmatmul.mubr.bf16.gmra.mxu0 %v1585_v56 }
  0xbd   : > { %5559 = vmatmul.mubr.bf16.gmra.mxu1 %v1795_v26  ;;  %5526 = vmatprep.mubr.msk.bf16.mxu0 %vm6221_vm0, %v6220_v1 }
  0xbe   : > { %5579 = vmatpush3.bf16.msra.mxu0 %v6097_v28  ;;  %5562 = vmatprep.mubr.msk.bf16.mxu1 %vm6221_vm0, %v6220_v1 }
  0xbf   : > { %5580 = vmatprep.subr.bf16.mxu0 %v6220_v1 }
  0xc2   : > { %5581 = vmatpush3.bf16.msra.mxu0 %v6100_v34 }
  0xc3   : > { %5638 = vmatprep.subr.bf16.mxu0 %v6220_v1 }
  0xc4   : > { %5527 = vmatmul.mubr.bf16.gmra.mxu0 %v1594_v38  ;;  %v6103_v38 = vld [vmem:[%s8063_s3 + $0x70] sm:$0xff]  }
  0xc5   : > { %5563 = vmatmul.mubr.bf16.gmra.mxu1 %v1797_v42  ;;  %5582 = vmatprep.mubr.msk.bf16.mxu0 %vm6221_vm0, %v6220_v1 }
  0xc6   : > { %5618 = vmatprep.mubr.msk.bf16.mxu1 %vm6221_vm0, %v6220_v1  ;;  %5605 = vmatpush3.bf16.msra.mxu1 %v6103_v38 }
  0xc7   : > { %5606 = vmatprep.subr.bf16.mxu1 %v6220_v1 }
  0xca   : > { %5607 = vmatpush3.bf16.msra.mxu1 %v6104_v54 }
  0xcb   : > { %5608 = vmatprep.subr.bf16.mxu1 %v6220_v1 }
  0xcc   : > { %5583 = vmatmul.mubr.bf16.vlgmr.msra.gmra.mxu0 %v1957_v49 }
  0xcd   : > { %5586 = vmatprep.mubr.msk.bf16.mxu0 %vm6221_vm0, %v6220_v1  ;;  %5639 = vmatpush3.bf16.msra.mxu0 %v6105_v21 }
  0xce   : > { %5640 = vmatprep.subr.bf16.mxu0 %v6220_v1 }
  0xd1   : > { %5641 = vmatpush3.bf16.msra.mxu0 %v6106_v48 }
  0xd2   : > { %5642 = vmatprep.subr.bf16.mxu0 %v6220_v1 }
  0xd4   : > { %5587 = vmatmul.mubr.bf16.gmra.mxu0 %v1959_v52 }
  0xd5   : > { %5590 = vmatprep.mubr.msk.bf16.mxu0 %vm6221_vm0, %v6220_v1  ;;  %5643 = vmatpush3.bf16.msra.mxu0 %v6108_v2 }
  0xd6   : > { %5644 = vmatprep.subr.bf16.mxu0 %v6220_v1 }
  0xdc   : > { %5591 = vmatmul.mubr.bf16.gmra.mxu0 %v1961_v47 }
  0xdd   : > { %5594 = vmatprep.mubr.msk.bf16.mxu0 %vm6221_vm0, %v6220_v1 }
  0xe4   : > { %5595 = vmatmul.mubr.bf16.gmra.mxu0 %v1963_v61 }
  0xe5   : > { %5598 = vmatprep.mubr.msk.bf16.mxu0 %vm6221_vm0, %v6220_v1 }
  0xec   : > { %v462_v63 = vpop.f32.mrf.mxu0  ;;  %5599 = vmatmul.mubr.bf16.gmra.mxu0 %v1965_v62 }
  0xed   : > { %v661_v5 = vpop.f32.mrf.mxu1  ;;  %5654 = vmatprep.mubr.msk.bf16.mxu0 %vm6221_vm0, %v6220_v1 }
  0xee   : > { %v662_v0 = vadd.f32 %v661_v5, %v462_v63  ;;  %v5296_v36 = vpop.f32.mrf.mxu0 }
  0xef   : > { %v5332_v19 = vpop.f32.mrf.mxu1 }
  0xf0   : > { %v465_v43 = vpop.f32.mrf.mxu0  ;;  %v6222_v19 = vmov 0  }
  0xf1   : > { %v664_v39 = vpop.f32.mrf.mxu1  ;;  %2261 = vst [vmem:[#allocation2 + $0x4] sm:$0xf] %v6222_v19  ;;  %2262 = vst [vmem:[#allocation2 + $0x8] sm:$0x3] %v6222_v19 }
  0xf2   : > { %v6950_v51 = vadd.f32 %v664_v39, %v465_v43  ;;  %v5297_v11 = vpop.f32.mrf.mxu0  ;;  %2263 = vst [vmem:[#allocation2 + $0x30] sm:$0xc] %v6222_v19  ;;  %2264 = vst [vmem:[#allocation2 + $0x34] sm:$0xf] %v6222_v19 }
  0xf3   : > { %v5333_v37 = vpop.f32.mrf.mxu1 }
  0xf4   : > { %v470_v57 = vpop.f32.mrf.mxu0 }
  0xf5   : > { %v669_v32 = vpop.f32.mrf.mxu1 }
  0xf6   : > { %v6952_v29 = vadd.f32 %v669_v32, %v470_v57  ;;  %v5300_v44 = vpop.f32.mrf.mxu0  ;;  %v6109_v32 = vld [vmem:[%s8063_s3 + $0x58] sm:$0xff]  }
  0xf7   : > { %v5336_v12 = vpop.f32.mrf.mxu1 }
  0xf8   : > { %v473_v15 = vpop.f32.mrf.mxu0 }
  0xf9   : > { %v672_v40 = vpop.f32.mrf.mxu1 }
  0xfa   : > { %v6954_v50 = vadd.f32 %v672_v40, %v473_v15  ;;  %v5301_v46 = vpop.f32.mrf.mxu0  ;;  %v6112_v40 = vld [vmem:[%s8063_s3 + $0x18] sm:$0xff]  }
  0xfb   : > { %v5337_v58 = vpop.f32.mrf.mxu1 }
  0xfc   : > { %v478_v41 = vpop.f32.mrf.mxu0 }
  0xfd   : > { %v677_v17 = vpop.f32.mrf.mxu1 }
  0xfe   : > { %v6956_v60 = vadd.f32 %v677_v17, %v478_v41  ;;  %v5304_v45 = vpop.f32.mrf.mxu0  ;;  %v6111_v41 = vld [vmem:[%s8063_s3 + $0x50] sm:$0xff]  }
  0xff   : > { %v5340_v16 = vpop.f32.mrf.mxu1 }
 0x100   : > { %v481_v53 = vpop.f32.mrf.mxu0 }
 0x101   : > { %v680_v31 = vpop.f32.mrf.mxu1 }
 0x102   : > { %v6958_v59 = vadd.f32 %v680_v31, %v481_v53  ;;  %v5305_v4 = vpop.f32.mrf.mxu0  ;;  %v6114_v53 = vld [vmem:[%s8063_s3 + $0x10] sm:$0xff]  }
 0x103   : > { %v5341_v6 = vpop.f32.mrf.mxu1 }
 0x104   : > { %v486_v7 = vpop.f32.mrf.mxu0  ;;  %v6113_v6 = vld [vmem:[%s8063_s3 + $0x48] sm:$0xff]  }
 0x105   : > { %v685_v8 = vpop.f32.mrf.mxu1 }
 0x106   : > { %v6960_v9 = vadd.f32 %v685_v8, %v486_v7  ;;  %v5308_v18 = vpop.f32.mrf.mxu0 }
 0x107   : > { %v5344_v20 = vpop.f32.mrf.mxu1 }
 0x108   : > { %v489_v23 = vpop.f32.mrf.mxu0  ;;  %v6115_v20 = vld [vmem:[%s8063_s3 + $0x8] sm:$0xff]  }
 0x109   : > { %v688_v24 = vpop.f32.mrf.mxu1 }
 0x10a   : > { %v6965_v14 = vadd.f32 %v688_v24, %v489_v23  ;;  %v5309_v56 = vpop.f32.mrf.mxu0  ;;  %v6116_v24 = vld [vmem:[%s8063_s3 + $0x40] sm:$0xff]  }
 0x10b   : > { %v5345_v25 = vpop.f32.mrf.mxu1 }
 0x10c   : > { %v494_v3 = vpop.f32.mrf.mxu0 }
 0x10d   : > { %v693_v26 = vpop.f32.mrf.mxu1 }
 0x10e   : > { %v6968_v28 = vadd.f32 %v693_v26, %v494_v3  ;;  %v5312_v30 = vpop.f32.mrf.mxu0  ;;  %v6117_v26 = vld [vmem:[%s8063_s3] sm:$0xff]  }
 0x10f   : > { %v5348_v33 = vpop.f32.mrf.mxu1 }
 0x110   : > { %v497_v34 = vpop.f32.mrf.mxu0 }
 0x111   : > { %v696_v35 = vpop.f32.mrf.mxu1 }
 0x112   : > { %v6976_v13 = vadd.f32 %v696_v35, %v497_v34  ;;  %v5313_v42 = vpop.f32.mrf.mxu0 }
 0x113   : > { %v5349_v10 = vpop.f32.mrf.mxu1 }
 0x114   : > { %v819_v49 = vpop.f32.mrf.mxu0 }
 0x115   : > { %v858_v27 = vadd.f32 %v819_v49, %v662_v0  ;;  %v1065_v52 = vpop.f32.mrf.mxu1  ;;  %v6107_v0 = vld [vmem:[%s8063_s3 + $0x60] sm:$0xff]  }
 0x116   : > { %v5368_v47 = vpop.f32.mrf.mxu0  ;;  %5609 = vmatpush3.bf16.msra.mxu1 %v6107_v0 }
 0x117   : > { %v6987_v55 = vadd.f32 %v1065_v52, %v858_v27  ;;  %v5404_v61 = vpop.f32.mrf.mxu1  ;;  %5610 = vmatprep.subr.bf16.mxu1 %v6220_v1 }
 0x118   : > { %v822_v62 = vpop.f32.mrf.mxu0 }
 0x119   : > { %v859_v63 = vadd.f32 %v822_v62, %v6950_v51  ;;  %v1068_v5 = vpop.f32.mrf.mxu1  ;;  %v6110_v51 = vld [vmem:[%s8063_s3 + $0x20] sm:$0xff]  }
 0x11a   : > { %v5369_v36 = vpop.f32.mrf.mxu0  ;;  %5645 = vmatpush3.bf16.msra.mxu0 %v6110_v51  ;;  %5611 = vmatpush3.bf16.msra.mxu1 %v6109_v32 }
 0x11b   : > { %v6998_v43 = vadd.f32 %v1068_v5, %v859_v63  ;;  %v5405_v39 = vpop.f32.mrf.mxu1  ;;  %5646 = vmatprep.subr.bf16.mxu0 %v6220_v1  ;;  %5612 = vmatprep.subr.bf16.mxu1 %v6220_v1 }
 0x11c   : > { %v827_v11 = vpop.f32.mrf.mxu0 }
 0x11d   : > { %v860_v37 = vadd.f32 %v827_v11, %v6952_v29  ;;  %v1073_v57 = vpop.f32.mrf.mxu1 }
 0x11e   : > { %v5372_v44 = vpop.f32.mrf.mxu0  ;;  %5647 = vmatpush3.bf16.msra.mxu0 %v6112_v40  ;;  %5613 = vmatpush3.bf16.msra.mxu1 %v6111_v41 }
 0x11f   : > { %v7009_v12 = vadd.f32 %v1073_v57, %v860_v37  ;;  %v5408_v15 = vpop.f32.mrf.mxu1  ;;  %5648 = vmatprep.subr.bf16.mxu0 %v6220_v1  ;;  %5614 = vmatprep.subr.bf16.mxu1 %v6220_v1 }
 0x120   : > { %v830_v46 = vpop.f32.mrf.mxu0 }
 0x121   : > { %v861_v29 = vadd.f32 %v830_v46, %v6954_v50  ;;  %v1076_v58 = vpop.f32.mrf.mxu1 }
 0x122   : > { %v5373_v17 = vpop.f32.mrf.mxu0  ;;  %5649 = vmatpush3.bf16.msra.mxu0 %v6114_v53  ;;  %5615 = vmatpush3.bf16.msra.mxu1 %v6113_v6 }
 0x123   : > { %v7020_v45 = vadd.f32 %v1076_v58, %v861_v29  ;;  %v5409_v16 = vpop.f32.mrf.mxu1  ;;  %5650 = vmatprep.subr.bf16.mxu0 %v6220_v1  ;;  %5616 = vmatprep.subr.bf16.mxu1 %v6220_v1 }
 0x124   : > { %v835_v31 = vpop.f32.mrf.mxu0 }
 0x125   : > { %v862_v50 = vadd.f32 %v835_v31, %v6956_v60  ;;  %v1081_v4 = vpop.f32.mrf.mxu1 }
 0x126   : > { %v5376_v7 = vpop.f32.mrf.mxu0  ;;  %5651 = vmatpush3.bf16.msra.mxu0 %v6115_v20  ;;  %5617 = vmatpush3.bf16.msra.mxu1 %v6116_v24 }
 0x127   : > { %v7031_v8 = vadd.f32 %v1081_v4, %v862_v50  ;;  %v5412_v18 = vpop.f32.mrf.mxu1  ;;  %5652 = vmatprep.subr.bf16.mxu0 %v6220_v1  ;;  %5674 = vmatprep.subr.bf16.mxu1 %v6220_v1 }
 0x128   : > { %v838_v22 = vpop.f32.mrf.mxu0 }
 0x129   : > { %v863_v60 = vadd.f32 %v838_v22, %v6958_v59  ;;  %v1084_v23 = vpop.f32.mrf.mxu1 }
 0x12a   : > { %v5377_v56 = vpop.f32.mrf.mxu0  ;;  %5653 = vmatpush3.bf16.msra.mxu0 %v6117_v26 }
 0x12b   : > { %v1109_v25 = vadd.f32 %v1084_v23, %v863_v60  ;;  %v5413_v3 = vpop.f32.mrf.mxu1  ;;  %5710 = vmatprep.subr.bf16.mxu0 %v6220_v1 }
 0x12c   : > { %v843_v30 = vpop.f32.mrf.mxu0 }
 0x12d   : > { %v864_v59 = vadd.f32 %v843_v30, %v6960_v9  ;;  %v1089_v33 = vpop.f32.mrf.mxu1 }
 0x12e   : > { %v5380_v21 = vpop.f32.mrf.mxu0 }
 0x12f   : > { %v1110_v34 = vadd.f32 %v1089_v33, %v864_v59  ;;  %v5416_v35 = vpop.f32.mrf.mxu1 }
 0x130   : > { %v846_v38 = vpop.f32.mrf.mxu0 }
 0x131   : > { %v865_v42 = vadd.f32 %v846_v38, %v6965_v14  ;;  %v1092_v10 = vpop.f32.mrf.mxu1 }
 0x132   : > { %v5381_v48 = vpop.f32.mrf.mxu0 }
 0x133   : > { %v1111_v49 = vadd.f32 %v1092_v10, %v865_v42  ;;  %v5417_v27 = vpop.f32.mrf.mxu1 }
 0x134   : > { %v851_v52 = vpop.f32.mrf.mxu0 }
 0x135   : > { %v866_v54 = vadd.f32 %v851_v52, %v6968_v28  ;;  %v1097_v47 = vpop.f32.mrf.mxu1 }
 0x136   : > { %v5384_v61 = vpop.f32.mrf.mxu0 }
 0x137   : > { %v1112_v9 = vadd.f32 %v1097_v47, %v866_v54  ;;  %v5420_v2 = vpop.f32.mrf.mxu1 }
 0x138   : > { %v854_v62 = vpop.f32.mrf.mxu0 }
 0x139   : > { %v867_v63 = vadd.f32 %v854_v62, %v6976_v13  ;;  %v1100_v5 = vpop.f32.mrf.mxu1 }
 0x13a   : > { %v5385_v0 = vpop.f32.mrf.mxu0 }
 0x13b   : > { %v1113_v36 = vadd.f32 %v1100_v5, %v867_v63  ;;  %v5421_v19 = vpop.f32.mrf.mxu1 }
 0x13c   : > { %v1269_v39 = vpop.f32.mrf.mxu0 }
 0x13d   : > { %v1308_v14 = vadd.f32 %v1269_v39, %v6987_v55  ;;  %v1437_v51 = vpop.f32.mrf.mxu1 }
 0x13e   : > { %v5440_v11 = vpop.f32.mrf.mxu0 }
 0x13f   : > { %v7052_v37 = vadd.f32 %v1437_v51, %v1308_v14  ;;  %v5476_v57 = vpop.f32.mrf.mxu1 }
 0x140   : > { %v1272_v28 = vpop.f32.mrf.mxu0 }
 0x141   : > { %v1309_v32 = vadd.f32 %v1272_v28, %v6998_v43  ;;  %v1440_v44 = vpop.f32.mrf.mxu1 }
 0x142   : > { %v5441_v15 = vpop.f32.mrf.mxu0 }
 0x143   : > { %v7055_v40 = vadd.f32 %v1440_v44, %v1309_v32  ;;  %v5477_v13 = vpop.f32.mrf.mxu1 }
 0x144   : > { %v1277_v46 = vpop.f32.mrf.mxu0 }
 0x145   : > { %v1310_v29 = vadd.f32 %v1277_v46, %v7009_v12  ;;  %v1445_v58 = vpop.f32.mrf.mxu1 }
 0x146   : > { %v5444_v41 = vpop.f32.mrf.mxu0 }
 0x147   : > { %v7058_v17 = vadd.f32 %v1445_v58, %v1310_v29  ;;  %v5480_v55 = vpop.f32.mrf.mxu1 }
 0x148   : > { %v1280_v16 = vpop.f32.mrf.mxu0 }
 0x149   : > { %v1311_v53 = vadd.f32 %v1280_v16, %v7020_v45  ;;  %v1448_v31 = vpop.f32.mrf.mxu1 }
 0x14a   : > { %v5445_v50 = vpop.f32.mrf.mxu0 }
 0x14b   : > { %v7061_v4 = vadd.f32 %v1448_v31, %v1311_v53  ;;  %v5481_v43 = vpop.f32.mrf.mxu1 }
 0x14c   : > { %v1285_v6 = vpop.f32.mrf.mxu0 }
 0x14d   : > { %v1312_v7 = vadd.f32 %v1285_v6, %v7031_v8  ;;  %v1453_v18 = vpop.f32.mrf.mxu1 }
 0x14e   : > { %v5448_v20 = vpop.f32.mrf.mxu0 }
 0x14f   : > { %v7064_v22 = vadd.f32 %v1453_v18, %v1312_v7  ;;  %v5484_v12 = vpop.f32.mrf.mxu1 }
 0x150   : > { %v1288_v60 = vpop.f32.mrf.mxu0 }
 0x151   : > { %v1313_v23 = vadd.f32 %v1288_v60, %v1109_v25  ;;  %v1456_v24 = vpop.f32.mrf.mxu1 }
 0x152   : > { %v5449_v56 = vpop.f32.mrf.mxu0 }
 0x153   : > { %v7066_v3 = vadd.f32 %v1456_v24, %v1313_v23  ;;  %v5485_v45 = vpop.f32.mrf.mxu1 }
 0x154   : > { %v1293_v26 = vpop.f32.mrf.mxu0 }
 0x155   : > { %v1314_v30 = vadd.f32 %v1293_v26, %v1110_v34  ;;  %v1461_v59 = vpop.f32.mrf.mxu1 }
 0x156   : > { %v5452_v33 = vpop.f32.mrf.mxu0 }
 0x157   : > { %v7068_v21 = vadd.f32 %v1461_v59, %v1314_v30  ;;  %v5488_v35 = vpop.f32.mrf.mxu1 }
 0x158   : > { %v1296_v8 = vpop.f32.mrf.mxu0 }
 0x159   : > { %v1315_v38 = vadd.f32 %v1296_v8, %v1111_v49  ;;  %v1464_v42 = vpop.f32.mrf.mxu1 }
 0x15a   : > { %v5453_v10 = vpop.f32.mrf.mxu0 }
 0x15b   : > { %v7070_v48 = vadd.f32 %v1464_v42, %v1315_v38  ;;  %v5489_v27 = vpop.f32.mrf.mxu1 }
 0x15c   : > { %v1301_v25 = vpop.f32.mrf.mxu0 }
 0x15d   : > { %v1316_v52 = vadd.f32 %v1301_v25, %v1112_v9  ;;  %v1469_v54 = vpop.f32.mrf.mxu1 }
 0x15e   : > { %v5456_v47 = vpop.f32.mrf.mxu0 }
 0x15f   : > { %v7072_v61 = vadd.f32 %v1469_v54, %v1316_v52  ;;  %v5492_v2 = vpop.f32.mrf.mxu1 }
 0x160   : > { %v1304_v34 = vpop.f32.mrf.mxu0 }
 0x161   : > { %v1317_v62 = vadd.f32 %v1304_v34, %v1113_v36  ;;  %v1472_v63 = vpop.f32.mrf.mxu1  ;;  %v2102_v36 = vlaneseq }
 0x162   : > { %v5457_v5 = vpop.f32.mrf.mxu0 }
 0x163   : > { %v7074_v0 = vadd.f32 %v1472_v63, %v1317_v62  ;;  %v5493_v19 = vpop.f32.mrf.mxu1  ;;  %v7090_v29 = vshrl.u32 %v2102_v36, 7 }
 0x164   : > { %v7076_v49 = vpop.f32.mrf.mxu0 }
 0x165   : > { %v7078_v39 = vpop.f32.mrf.mxu1  ;;  %v2104_v55 = vadd.s32 8, %v7090_v29  ;;  %v2113_v31 = vcvt.s32.f32 %v7090_v29  ;;  %v7101_v7 = vadd.s32 16, %v7090_v29  ;;  %v7108_v23 = vadd.s32 24, %v7090_v29 }
 0x166   : > { %v5512_v14 = vpop.f32.mrf.mxu0  ;;  %v7114_v33 = vadd.s32 32, %v7090_v29  ;;  %v7127_v34 = vadd.s32 40, %v7090_v29 }
 0x167   : > { %v5548_v51 = vpop.f32.mrf.mxu1  ;;  %v2114_v6 = vcvt.s32.f32 %v2104_v55  ;;  %v2123_v12 = vadd.f32 0.5, %v2113_v31  ;;  %v2115_v45 = vcvt.s32.f32 %v7101_v7  ;;  %v2116_v8 = vcvt.s32.f32 %v7108_v23 }
 0x168   : > { %v7080_v11 = vpop.f32.mrf.mxu0  ;;  %v2117_v54 = vcvt.s32.f32 %v7114_v33  ;;  %v1721_v7 = vadd.f32 %v7076_v49, %v7052_v37  ;;  %v7153_v37 = vadd.s32 64, %v7090_v29 }
 0x169   : > { %v7082_v9 = vpop.f32.mrf.mxu1  ;;  %v2124_v56 = vadd.f32 0.5, %v2114_v6  ;;  %v2133_v59 = vmul.f32 0.1, %v2123_v12  ;;  %v2125_v10 = vadd.f32 0.5, %v2115_v45  ;;  %v2126_v2 = vadd.f32 0.5, %v2116_v8 }
 0x16a   : > { %v5513_v57 = vpop.f32.mrf.mxu0  ;;  %v1924_v49 = vadd.f32 %v7078_v39, %v1721_v7 }
 0x16b   : > { %v5549_v28 = vpop.f32.mrf.mxu1  ;;  %v2134_v42 = vmul.f32 0.1, %v2124_v56  ;;  %v2143_v52 = vfloor.f32 %v2133_v59  ;;  %v2135_v5 = vmul.f32 0.1, %v2125_v10  ;;  %v2127_v57 = vadd.f32 0.5, %v2117_v54 }
 0x16c   : > { %v7084_v32 = vpop.f32.mrf.mxu0  ;;  %v7134_v28 = vadd.s32 48, %v7090_v29 }
 0x16d   : > { %v7086_v44 = vpop.f32.mrf.mxu1  ;;  %v2144_v63 = vfloor.f32 %v2134_v42  ;;  %v2153_v51 = vmul.f32 10.0, %v2143_v52  ;;  %v2137_v56 = vmul.f32 0.1, %v2127_v57 }
 0x16e   : > { %v5516_v15 = vpop.f32.mrf.mxu0 }
 0x16f   : > { %v5552_v13 = vpop.f32.mrf.mxu1  ;;  %v2136_v15 = vmul.f32 0.1, %v2126_v2  ;;  %v2154_v55 = vmul.f32 10.0, %v2144_v63 }
 0x170   : > { %v7088_v46 = vpop.f32.mrf.mxu0  ;;  %v2118_v13 = vcvt.s32.f32 %v7127_v34 }
 0x171   : > { %v7092_v58 = vpop.f32.mrf.mxu1 }
 0x172   : > { %v5517_v41 = vpop.f32.mrf.mxu0  ;;  %v2128_v42 = vadd.f32 0.5, %v2118_v13 }
 0x173   : > { %v5553_v16 = vpop.f32.mrf.mxu1 }
 0x174   : > { %v7095_v53 = vpop.f32.mrf.mxu0  ;;  %v2145_v16 = vfloor.f32 %v2135_v5  ;;  %v7161_v5 = vld [vmem:[%s8062_s2] ss:$0 sm:$0xff] }
 0x175   : > { %v7098_v50 = vpop.f32.mrf.mxu1 }
 0x176   : > { %v5520_v43 = vpop.f32.mrf.mxu0  ;;  %v2155_v52 = vmul.f32 10.0, %v2145_v16  ;;  %v1723_v16 = vadd.f32 %v7084_v32, %v7058_v17 }
 0x177   : > { %v5556_v18 = vpop.f32.mrf.mxu1  ;;  %v7140_v43 = vadd.s32 56, %v7090_v29 }
 0x178   : > { %v7103_v20 = vpop.f32.mrf.mxu0 }
 0x179   : > { %v7105_v60 = vpop.f32.mrf.mxu1  ;;  %v2120_v2 = vcvt.s32.f32 %v7140_v43 }
 0x17a   : > { %v5521_v24 = vpop.f32.mrf.mxu0 }
 0x17b   : > { %v5557_v26 = vpop.f32.mrf.mxu1  ;;  %v2163_v24 = vsub.f32 %v2113_v31, %v2153_v51  ;;  %v1722_v31 = vadd.f32 %v7080_v11, %v7055_v40  ;;  %v2130_v40 = vadd.f32 0.5, %v2120_v2  ;;  %v2121_v11 = vcvt.s32.f32 %v7153_v37 }
 0x17c   : > { %v7111_v30 = vpop.f32.mrf.mxu0  ;;  %v2119_v26 = vcvt.s32.f32 %v7134_v28 }
 0x17d   : > { %v7116_v35 = vpop.f32.mrf.mxu1  ;;  %vm2173_vm5 = vcmp.gt.f32.partialorder %v2163_v24, 0.5  ;;  %vm2183_vm6 = vcmp.lt.f32.partialorder %v2163_v24, 8.5  ;;  %v2140_v32 = vmul.f32 0.1, %v2130_v40  ;;  %v2131_v24 = vadd.f32 0.5, %v2121_v11 }
 0x17e   : > { %v5524_v38 = vpop.f32.mrf.mxu0  ;;  %vm7173_vm9 = vmand %vm2173_vm5, %vm2183_vm6 }
 0x17f   : > { %v5560_v27 = vpop.f32.mrf.mxu1  ;;  %v2146_v38 = vfloor.f32 %v2136_v15  ;;  %v2138_v15 = vmul.f32 0.1, %v2128_v42  ;;  %v2141_v40 = vmul.f32 0.1, %v2131_v24  ;;  %v1726_v24 = vadd.f32 %v7103_v20, %v7066_v3 }
 0x180   : > { %v7119_v25 = vpop.f32.mrf.mxu0  ;;  %v2164_v27 = vsub.f32 %v2114_v6, %v2154_v55  ;;  %v2147_v6 = vfloor.f32 %v2137_v56  ;;  %v1925_v55 = vadd.f32 %v7082_v9, %v1722_v31  ;;  %v1724_v31 = vadd.f32 %v7088_v46, %v7061_v4 }
 0x181   : > { %v7122_v47 = vpop.f32.mrf.mxu1  ;;  %v2156_v57 = vmul.f32 10.0, %v2146_v38  ;;  %v1929_v28 = vadd.f32 %v7105_v60, %v1726_v24 }
 0x182   : > { %v5525_v62 = vpop.f32.mrf.mxu0  ;;  %vm2174_vm7 = vcmp.gt.f32.partialorder %v2164_v27, 0.5  ;;  %vm2184_vm8 = vcmp.lt.f32.partialorder %v2164_v27, 8.5  ;;  %v2150_v27 = vfloor.f32 %v2140_v32 }
 0x183   : > { %v5561_v19 = vpop.f32.mrf.mxu1  ;;  %v2166_v9 = vsub.f32 %v2116_v8, %v2156_v57  ;;  %vm7189_vm14 = vmand %vm2174_vm7, %vm2184_vm8 }
 0x184   : > { %v7129_v14 = vpop.f32.mrf.mxu0  ;;  %v2129_v19 = vadd.f32 0.5, %v2119_v26  ;;  %vm7213_vm8 = vmor %vm2296_vm10, %vm2297_vm11 }
 0x185   : > { %v7136_v36 = vpop.f32.mrf.mxu1  ;;  %vm2176_vm15 = vcmp.gt.f32.partialorder %v2166_v9, 0.5  ;;  %vm2186_vm5 = vcmp.lt.f32.partialorder %v2166_v9, 8.5 }
 0x186   : > { %v5528_v41 = vpop.f32.mrf.mxu0  ;;  %v2139_v38 = vmul.f32 0.1, %v2129_v19  ;;  %vm7229_vm10 = vmand %vm2176_vm15, %vm2186_vm5 }
 0x187   : > { %v5564_v18 = vpop.f32.mrf.mxu1  ;;  %v2165_v41 = vsub.f32 %v2115_v45, %v2155_v52  ;;  %v2157_v45 = vmul.f32 10.0, %v2147_v6  ;;  %v2148_v52 = vfloor.f32 %v2138_v15 }
 0x188   : > { %v7144_v12 = vpop.f32.mrf.mxu0 }
 0x189   : > { %v7147_v59 = vpop.f32.mrf.mxu1  ;;  %vm2175_vm12 = vcmp.gt.f32.partialorder %v2165_v41, 0.5  ;;  %vm2185_vm13 = vcmp.lt.f32.partialorder %v2165_v41, 8.5  ;;  %v2167_v19 = vsub.f32 %v2117_v54, %v2157_v45  ;;  %v2158_v57 = vmul.f32 10.0, %v2148_v52 }
 0x18a   : > { %v5529_v10 = vpop.f32.mrf.mxu0  ;;  %vm7206_vm6 = vmand %vm2175_vm12, %vm2185_vm13  ;;  %v2160_v52 = vmul.f32 10.0, %v2150_v27 }
 0x18b   : > { %v5565_v62 = vpop.f32.mrf.mxu1  ;;  %vm2177_vm7 = vcmp.gt.f32.partialorder %v2167_v19, 0.5  ;;  %v2168_v41 = vsub.f32 %v2118_v13, %v2158_v57 }
 0x18c   : > { %v2053_v63 = vpop.f32.mrf.mxu0  ;;  %v7239_v9 = vsub.f32 %v2120_v2, %v2160_v52 }
 0x18d   : > { %v2092_v51 = vadd.f32 %v2053_v63, %v1924_v49  ;;  %v1926_v49 = vadd.f32 %v7086_v44, %v1723_v16  ;;  %v2149_v44 = vfloor.f32 %v2139_v38  ;;  %v1725_v16 = vadd.f32 %v7095_v53, %v7064_v22  ;;  %v6133_v22 = vld [vmem:[%s8063_s3 + $0x90] sm:$0xff]  }
 0x18e   : > { %v5584_v39 = vpop.f32.mrf.mxu0  ;;  %vm2178_vm11 = vcmp.gt.f32.partialorder %v2168_v41, 0.5  ;;  %vm2188_vm12 = vcmp.lt.f32.partialorder %v2168_v41, 8.5  ;;  %vm2180_vm5 = vcmp.gt.f32.partialorder %v7239_v9, 0.5 }
 0x18f   : > { %v2210_v7 = vadd.f32 %v7161_v5, %v2092_v51  ;;  %v7196_v51 = vadd.s32 72, %v7090_v29  ;;  %v1928_v32 = vadd.f32 %v7098_v50, %v1725_v16 }
 0x190   : > { %v2056_v56 = vpop.f32.mrf.mxu0 }
 0x191   : > { %v2220_v42 = vmax.f32 %v2210_v7, 0.0  ;;  %v2093_v10 = vadd.f32 %v2056_v56, %v1925_v55  ;;  %v1927_v55 = vadd.f32 %v7092_v58, %v1724_v31  ;;  %v2159_v56 = vmul.f32 10.0, %v2149_v44 }
 0x192   : > { %v5585_v17 = vpop.f32.mrf.mxu0  ;;  %v2122_v58 = vcvt.s32.f32 %v7196_v51  ;;  %v6122_v51 = vld [vmem:[%s8063_s3 + $0xb0] sm:$0xff]  }
 0x193   : > { %v2250_v62 = vsel %vm7173_vm9, %v2220_v42, 0.0  ;;  %v2211_v63 = vadd.f32 %v7161_v5, %v2093_v10  ;;  %vm2187_vm9 = vcmp.lt.f32.partialorder %v2167_v19, 8.5  ;;  %v2151_v17 = vfloor.f32 %v2141_v40 }
 0x194   : > { %v4982_v23 = vpack.c.bf16 %v2250_v62, %v2250_v62  ;;  %v2061_v6 = vpop.f32.mrf.mxu0  ;;  %v2169_v50 = vsub.f32 %v2119_v26, %v2159_v56  ;;  %v2132_v3 = vadd.f32 0.5, %v2122_v58  ;;  %v1727_v26 = vadd.f32 %v7111_v30, %v7068_v21  ;;  %vm7251_vm13 = vmand %vm2177_vm7, %vm2187_vm9 }
 0x195   : > { %v2221_v4 = vmax.f32 %v2211_v63, 0.0  ;;  %v2094_v46 = vadd.f32 %v2061_v6, %v1926_v49  ;;  %vm2190_vm7 = vcmp.lt.f32.partialorder %v7239_v9, 8.5  ;;  %v6125_v9 = vld [vmem:[%s8063_s3 + $0xf8] sm:$0xff]  }
 0x196   : > { %v2299_v15 = vrot.slane %v4982_v23, 6  ;;  %v5588_v39 = vpop.f32.mrf.mxu0  ;;  %v2142_v2 = vmul.f32 0.1, %v2132_v3  ;;  %vm2189_vm15 = vcmp.lt.f32.partialorder %v2169_v50, 8.5  ;;  %v1930_v7 = vadd.f32 %v7116_v35, %v1727_v26 }
 0x197   : > { %v2251_v33 = vsel %vm7189_vm14, %v2221_v4, 0.0  ;;  %v2212_v29 = vadd.f32 %v7161_v5, %v2094_v46  ;;  %v2161_v4 = vmul.f32 10.0, %v2151_v17  ;;  %v2350_v46 = vld [vmem:[#allocation2 + $0x4] sm:$0xf]  ;;  %vm2179_vm14 = vcmp.gt.f32.partialorder %v2169_v50, 0.5 }
 0x198   : > { %2339 = vst [vmem:[#allocation2 + $0x8] sm:$0xc] %v2299_v15  ;;  %v4983_v54 = vpack.c.bf16 %v2251_v33, %v2251_v33  ;;  %v2064_v18 = vpop.f32.mrf.mxu0  ;;  %v2300_v38 = vrot.slane %v2299_v15, 4  ;;  %v2152_v35 = vfloor.f32 %v2142_v2 }
 0x199   : > { %v2222_v53 = vmax.f32 %v2212_v29, 0.0  ;;  %v2095_v45 = vadd.f32 %v2064_v18, %v1927_v55  ;;  %v7260_v19 = vsub.f32 %v2121_v11, %v2161_v4  ;;  %v1728_v18 = vadd.f32 %v7119_v25, %v7070_v48 }
 0x19a   : > { %v2301_v42 = vrot.slane %v4983_v54, 6  ;;  %v5589_v10 = vpop.f32.mrf.mxu0  ;;  %v2377_v54 = vld [vmem:[#allocation2 + $0x4] sm:$0xe] }
 0x19b   : > { %v2252_v49 = vsel %vm7206_vm6, %v2222_v53, 0.0  ;;  %v2213_v31 = vadd.f32 %v7161_v5, %v2095_v45  ;;  %v1729_v45 = vadd.f32 %v7129_v14, %v7072_v61  ;;  %vm2198_vm6 = vmand %vm2178_vm11, %vm2188_vm12  ;;  %vm2181_vm9 = vcmp.gt.f32.partialorder %v7260_v19, 0.5 }
 0x19c   : > { %v2302_v62 = vsel %vm7213_vm8, %v2300_v38, %v2301_v42  ;;  %v4984_v34 = vpack.c.bf16 %v2252_v49, %v2252_v49  ;;  %v2069_v63 = vpop.f32.mrf.mxu0  ;;  %v2303_v8 = vrot.slane %v2301_v42, 4  ;;  %v1931_v61 = vadd.f32 %v7122_v47, %v1728_v18  ;;  %vm7311_vm12 = vmand %vm2180_vm5, %vm2190_vm7 }
 0x19d   : > { %2340 = vst [vmem:[#allocation2 + $0xc] sm:$0xf] %v2302_v62  ;;  %v2223_v20 = vmax.f32 %v2213_v31, 0.0  ;;  %v2096_v23 = vadd.f32 %v2069_v63, %v1928_v32  ;;  %vm2191_vm11 = vcmp.lt.f32.partialorder %v7260_v19, 8.5  ;;  %v1932_v49 = vadd.f32 %v7136_v36, %v1729_v45  ;;  %v6120_v36 = vld [vmem:[%s8063_s3 + $0xb8] sm:$0xff]  }
 0x19e   : > { %v2304_v6 = vrot.slane %v4984_v34, 6  ;;  %v5592_v44 = vpop.f32.mrf.mxu0  ;;  %v2162_v47 = vmul.f32 10.0, %v2152_v35 }
 0x19f   : > { %v2253_v57 = vsel %vm7229_vm10, %v2223_v20, 0.0  ;;  %v2214_v15 = vadd.f32 %v7161_v5, %v2096_v23  ;;  %v2351_v39 = vld [vmem:[#allocation2 + $0x8] sm:$0xf]  ;;  %vm7282_vm10 = vmand %vm2179_vm14, %vm2189_vm15 }
 0x1a0   : > { %v2305_v27 = vsel %vm7213_vm8, %v2303_v8, %v2304_v6  ;;  %v4985_v40 = vpack.c.bf16 %v2253_v57, %v2253_v57  ;;  %v2072_v60 = vpop.f32.mrf.mxu0  ;;  %v7255_v55 = vcombine.low %v2350_v46, %v2351_v39  ;;  %v2306_v16 = vrot.slane %v2304_v6, 4 }
 0x1a1   : > { %2341 = vst [vmem:[#allocation2 + $0x10] sm:$0xf] %v2305_v27  ;;  %v2224_v21 = vmax.f32 %v2214_v15, 0.0  ;;  %v2097_v30 = vadd.f32 %v2072_v60, %v1929_v28  ;;  %v7274_v25 = vcombine.low %v2377_v54, %v2351_v39  ;;  %v1730_v46 = vadd.f32 %v7144_v12, %v7074_v0 }
 0x1a2   : > { %v2307_v33 = vrot.slane %v4985_v40, 6  ;;  %v5593_v29 = vpop.f32.mrf.mxu0  ;;  %v2566_v10 = vshll.u32 %v7255_v55, 16  ;;  %v2564_v57 = vshrl.u32 %v7255_v55, 16  ;;  %v2172_v40 = vsub.f32 %v2122_v58, %v2162_v47  ;;  %v6128_v47 = vld [vmem:[%s8063_s3 + $0xa0] sm:$0xff]  }
 0x1a3   : > { %v2254_v56 = vsel %vm7251_vm13, %v2224_v21, 0.0  ;;  %v2215_v53 = vadd.f32 %v7161_v5, %v2097_v30  ;;  %v2423_v3 = vrot.slane %v7274_v25, 1  ;;  %v1933_v58 = vadd.f32 %v7147_v59, %v1730_v46  ;;  %vm7335_vm13 = vmand %vm2181_vm9, %vm2191_vm11  ;;  %v6139_v29 = vld [vmem:[%s8063_s3 + $0x80] sm:$0xff]  }
 0x1a4   : > { %v2308_v38 = vsel %vm7213_vm8, %v2306_v16, %v2307_v33  ;;  %v4986_v37 = vpack.c.bf16 %v2254_v56, %v2254_v56  ;;  %v2077_v11 = vpop.f32.mrf.mxu0  ;;  %v2309_v52 = vrot.slane %v2307_v33, 4  ;;  %v2568_v20 = vrot.slane %v2566_v10, 1  ;;  %v6124_v10 = vld [vmem:[%s8063_s3 + $0xa8] sm:$0xff]  }
 0x1a5   : > { %2342 = vst [vmem:[#allocation2 + $0x14] sm:$0xf] %v2308_v38  ;;  %v2225_v42 = vmax.f32 %v2215_v53, 0.0  ;;  %v2098_v48 = vadd.f32 %v2077_v11, %v1930_v7  ;;  %vm2182_vm14 = vcmp.gt.f32.partialorder %v2172_v40, 0.5  ;;  %vm2192_vm15 = vcmp.lt.f32.partialorder %v2172_v40, 8.5  ;;  %v6126_v38 = vld [vmem:[%s8063_s3 + $0xf0] sm:$0xff]  }
 0x1a6   : > { %v2310_v17 = vrot.slane %v4986_v37, 6  ;;  %v5596_v32 = vpop.f32.mrf.mxu0  ;;  %v2569_v2 = vor.u32 %v2568_v20, %v2564_v57  ;;  %vm2202_vm5 = vmand %vm2182_vm14, %vm2192_vm15 }
 0x1a7   : > { %v2255_v14 = vsel %vm2198_vm6, %v2225_v42, 0.0  ;;  %v2216_v24 = vadd.f32 %v7161_v5, %v2098_v48 }
 0x1a8   : > { %v2311_v31 = vsel %vm7213_vm8, %v2309_v52, %v2310_v17  ;;  %v4987_v62 = vpack.c.bf16 %v2255_v14, %v2255_v14  ;;  %v2080_v34 = vpop.f32.mrf.mxu0  ;;  %v7291_v13 = vld [vmem:[#allocation2 + $0xc] sm:$0xff]   ;;  %v2312_v23 = vrot.slane %v2310_v17, 4 }
 0x1a9   : > { %2343 = vst [vmem:[#allocation2 + $0x18] sm:$0xf] %v2311_v31  ;;  %v2226_v63 = vmax.f32 %v2216_v24, 0.0  ;;  %v2099_v50 = vadd.f32 %v2080_v34, %v1931_v61  ;;  %v2424_v44 = vrot.slane %v7291_v13, 1  ;;  %v2571_v4 = vshll.u32 %v7291_v13, 16  ;;  %v6129_v31 = vld [vmem:[%s8063_s3 + $0xe8] sm:$0xff]  }
 0x1aa   : > { %v2313_v8 = vrot.slane %v4987_v62, 6  ;;  %v5597_v6 = vpop.f32.mrf.mxu0  ;;  %v2575_v32 = vshrl.u32 %v7291_v13, 16 }
 0x1ab   : > { %v2256_v28 = vsel %vm7282_vm10, %v2226_v63, 0.0  ;;  %v2217_v26 = vadd.f32 %v7161_v5, %v2099_v50  ;;  %v2425_v12 = vsel %vm363_vm1, %v2423_v3, %v2424_v44  ;;  %v2573_v21 = vrot.slane %v2571_v4, 1  ;;  %v6131_v6 = vld [vmem:[%s8063_s3 + $0xe0] sm:$0xff]  }
 0x1ac   : > { %v2314_v15 = vsel %vm7213_vm8, %v2312_v23, %v2313_v8  ;;  %v4988_v39 = vpack.c.bf16 %v2256_v28, %v2256_v28  ;;  %v2085_v0 = vpop.f32.mrf.mxu0  ;;  %5619 = vmatmul.mubr.bf16.vlgmr.msra.gmra.mxu1 %v2425_v12  ;;  %v2315_v30 = vrot.slane %v2313_v8, 4  ;;  %v6134_v12 = vld [vmem:[%s8063_s3 + $0xd8] sm:$0xff]  }
 0x1ad   : > { %2344 = vst [vmem:[#allocation2 + $0x1c] sm:$0xf] %v2314_v15  ;;  %v2227_v43 = vmax.f32 %v2217_v26, 0.0  ;;  %v2100_v60 = vadd.f32 %v2085_v0, %v1932_v49  ;;  %5675 = vmatpush3.bf16.msra.mxu1 %v6120_v36  ;;  %5622 = vmatprep.mubr.msk.bf16.mxu1 %vm6221_vm0, %v6220_v1  ;;  %v2574_v7 = vsel %vm529_vm2, %v2569_v2, %v2573_v21  ;;  %v6130_v26 = vld [vmem:[%s8063_s3 + $0x98] sm:$0xff]  }
 0x1ae   : > { %v2316_v55 = vrot.slane %v4988_v39, 6  ;;  %v5600_v16 = vpop.f32.mrf.mxu0  ;;  %5676 = vmatprep.subr.bf16.mxu1 %v6220_v1  ;;  %5655 = vmatmul.mubr.bf16.vlgmr.msra.gmra.mxu0 %v2574_v7  ;;  %v2577_v49 = vor.u32 %v2575_v32, %v2573_v21 }
 0x1af   : > { %v2257_v33 = vsel %vm7311_vm12, %v2227_v43, 0.0  ;;  %v2218_v54 = vadd.f32 %v7161_v5, %v2100_v60  ;;  %5658 = vmatprep.mubr.msk.bf16.mxu0 %vm6221_vm0, %v6220_v1  ;;  %5711 = vmatpush3.bf16.msra.mxu0 %v6125_v9  ;;  %v6136_v60 = vld [vmem:[%s8063_s3 + $0xd0] sm:$0xff]  }
 0x1b0   : > { %v2317_v59 = vsel %vm7213_vm8, %v2315_v30, %v2316_v55  ;;  %v4989_v18 = vpack.c.bf16 %v2257_v33, %v2257_v33  ;;  %v2088_v56 = vpop.f32.mrf.mxu0  ;;  %v7344_v53 = vld [vmem:[#allocation2 + $0x14] sm:$0xff]   ;;  %v2318_v37 = vrot.slane %v2316_v55, 4  ;;  %5712 = vmatprep.subr.bf16.mxu0 %v6220_v1  ;;  %v6135_v30 = vld [vmem:[%s8063_s3 + $0x88] sm:$0xff]  }
 0x1b1   : > { %2345 = vst [vmem:[#allocation2 + $0x20] sm:$0xf] %v2317_v59  ;;  %v2228_v19 = vmax.f32 %v2218_v54, 0.0  ;;  %v2101_v45 = vadd.f32 %v2088_v56, %v1933_v58  ;;  %5677 = vmatpush3.bf16.msra.mxu1 %v6122_v51  ;;  %v2426_v42 = vrot.slane %v7344_v53, 1  ;;  %v2579_v48 = vshll.u32 %v7344_v53, 16  ;;  %v6138_v55 = vld [vmem:[%s8063_s3 + $0xc8] sm:$0xff]  }
 0x1b2   : > { %v2319_v11 = vrot.slane %v4989_v18, 6  ;;  %v5601_v35 = vpop.f32.mrf.mxu0  ;;  %5678 = vmatprep.subr.bf16.mxu1 %v6220_v1  ;;  %v2583_v8 = vshrl.u32 %v7344_v53, 16  ;;  %v7443_v54 = vld [vmem:[#allocation2 + $0xc] sm:$0xf]  ;;  %v7448_v59 = vld [vmem:[#allocation2 + $0x10] sm:$0xff]  }
 0x1b3   : > { %v2258_v52 = vsel %vm7335_vm13, %v2228_v19, 0.0  ;;  %v2219_v17 = vadd.f32 %v7161_v5, %v2101_v45  ;;  %v2427_v41 = vsel %vm363_vm1, %v2424_v44, %v2426_v42  ;;  %v2581_v5 = vrot.slane %v2579_v48, 1  ;;  %5713 = vmatpush3.bf16.msra.mxu0 %v6126_v38  ;;  %v2923_v19 = vld [vmem:[#allocation2 + $0x8] sm:$0xe]  ;;  %v6140_v45 = vld [vmem:[%s8063_s3 + $0xc0] sm:$0xff]  }
 0x1b4   : > { %v2320_v61 = vsel %vm7213_vm8, %v2318_v37, %v2319_v11  ;;  %v4990_v14 = vpack.c.bf16 %v2258_v52, %v2258_v52  ;;  %5623 = vmatmul.mubr.bf16.gmra.mxu1 %v2427_v41  ;;  %v2321_v62 = vrot.slane %v2319_v11, 4  ;;  %5714 = vmatprep.subr.bf16.mxu0 %v6220_v1  ;;  %v4810_v38 = vcombine.low %v2923_v19, %v7443_v54 }
 0x1b5   : > { %2346 = vst [vmem:[#allocation2 + $0x24] sm:$0xf] %v2320_v61  ;;  %v2229_v24 = vmax.f32 %v2219_v17, 0.0  ;;  %5679 = vmatpush3.bf16.msra.mxu1 %v6124_v10  ;;  %5626 = vmatprep.mubr.msk.bf16.mxu1 %vm6221_vm0, %v6220_v1  ;;  %v2582_v50 = vsel %vm529_vm2, %v2577_v49, %v2581_v5  ;;  %v2585_v57 = vor.u32 %v2583_v8, %v2581_v5  ;;  %v2755_v37 = vshrl.u32 %v7274_v25, 16 }
 0x1b6   : > { %v2322_v34 = vrot.slane %v4990_v14, 6  ;;  %5680 = vmatprep.subr.bf16.mxu1 %v6220_v1  ;;  %5659 = vmatmul.mubr.bf16.gmra.mxu0 %v2582_v50  ;;  %v2758_v11 = vshll.u32 %v7274_v25, 16  ;;  %v2988_v35 = vshrl.u32 %v7448_v59, 16  ;;  %v2762_v17 = vrot.slane %v2575_v32, 1  ;;  %v6141_v50 = vld [vmem:[%s8063_s3 + $0x138] sm:$0xff]  }
 0x1b7   : > { %v2259_v63 = vsel %vm2202_vm5, %v2229_v24, 0.0  ;;  %5662 = vmatprep.mubr.msk.bf16.mxu0 %vm6221_vm0, %v6220_v1  ;;  %5715 = vmatpush3.bf16.msra.mxu0 %v6129_v31  ;;  %v2763_v14 = vrot.slane %v2571_v4, 2  ;;  %v2980_v41 = vshrl.u32 %v4810_v38, 16  ;;  %v2983_v24 = vshll.u32 %v4810_v38, 16  ;;  %v7480_v31 = vld [vmem:[#allocation2 + $0x18] sm:$0xff]  }
 0x1b8   : > { %v2323_v3 = vsel %vm7213_vm8, %v2321_v62, %v2322_v34  ;;  %v4991_v20 = vpack.c.bf16 %v2259_v63, %v2259_v63  ;;  %v7384_v23 = vld [vmem:[#allocation2 + $0x1c] sm:$0xff]   ;;  %v2324_v44 = vrot.slane %v2322_v34, 4  ;;  %5716 = vmatprep.subr.bf16.mxu0 %v6220_v1  ;;  %v2757_v49 = vrot.slane %v2755_v37, 1 }
 0x1b9   : > { %2347 = vst [vmem:[#allocation2 + $0x28] sm:$0xf] %v2323_v3  ;;  %v2428_v46 = vrot.slane %v7384_v23, 1  ;;  %5681 = vmatpush3.bf16.msra.mxu1 %v6128_v47  ;;  %v2587_v28 = vshll.u32 %v7384_v23, 16  ;;  %v2591_v21 = vshrl.u32 %v7384_v23, 16  ;;  %v2760_v5 = vrot.slane %v2758_v11, 2 }
 0x1ba   : > { %v2325_v36 = vrot.slane %v4991_v20, 6  ;;  %5682 = vmatprep.subr.bf16.mxu1 %v6220_v1  ;;  %v2990_v13 = vrot.slane %v2988_v35, 1  ;;  %v2764_v62 = vor.u32 %v2763_v14, %v2762_v17  ;;  %v2982_v34 = vrot.slane %v2980_v41, 1  ;;  %v6155_v17 = vld [vmem:[%s8063_s3 + $0x110] sm:$0xff]  }
 0x1bb   : > { %v2429_v27 = vsel %vm363_vm1, %v2426_v42, %v2428_v46  ;;  %v2589_v0 = vrot.slane %v2587_v28, 1  ;;  %5717 = vmatpush3.bf16.msra.mxu0 %v6131_v6  ;;  %v2991_v42 = vshll.u32 %v7448_v59, 16  ;;  %v2985_v47 = vrot.slane %v2983_v24, 2  ;;  %v6158_v24 = vld [vmem:[%s8063_s3 + $0x150] sm:$0xff]  }
 0x1bc   : > { %v2326_v15 = vsel %vm7213_vm8, %v2324_v44, %v2325_v36  ;;  %v2327_v39 = vrot.slane %v2325_v36, 4  ;;  %5627 = vmatmul.mubr.bf16.gmra.mxu1 %v2429_v27  ;;  %5718 = vmatprep.subr.bf16.mxu0 %v6220_v1  ;;  %v2761_v63 = vor.u32 %v2760_v5, %v2757_v49  ;;  %v2997_v20 = vshrl.u32 %v7480_v31, 16  ;;  %v6157_v49 = vld [vmem:[%s8063_s3 + $0x108] sm:$0xff]  }
 0x1bd   : > { %2348 = vst [vmem:[#allocation2 + $0x2c] sm:$0xf] %v2326_v15  ;;  %v2590_v40 = vsel %vm529_vm2, %v2585_v57, %v2589_v0  ;;  %5683 = vmatpush3.bf16.msra.mxu1 %v6130_v26  ;;  %5630 = vmatprep.mubr.msk.bf16.mxu1 %vm6221_vm0, %v6220_v1  ;;  %v2593_v51 = vor.u32 %v2591_v21, %v2589_v0  ;;  %v2993_v4 = vrot.slane %v2991_v42, 2  ;;  %v3000_v6 = vshll.u32 %v7480_v31, 16  ;;  %v6147_v57 = vld [vmem:[%s8063_s3 + $0x178] sm:$0xff]   ;;  %v6144_v15 = vld [vmem:[%s8063_s3 + $0x130] sm:$0xff]  }
 0x1be   : > { %2349 = vst [vmem:[#allocation2 + $0x30] sm:$0x3] %v2327_v39  ;;  %5684 = vmatprep.subr.bf16.mxu1 %v6220_v1  ;;  %5663 = vmatmul.mubr.bf16.gmra.mxu0 %v2590_v40  ;;  %v2765_v44 = vsel %vm924_vm3, %v2761_v63, %v2764_v62  ;;  %v2766_v36 = vrot.slane %v2583_v8, 1  ;;  %v2986_v26 = vor.u32 %v2985_v47, %v2982_v34  ;;  %v2999_v53 = vrot.slane %v2997_v20, 1  ;;  %v7508_v8 = vld [vmem:[#allocation2 + $0x20] sm:$0xff]   ;;  %v6148_v0 = vld [vmem:[%s8063_s3 + $0x170] sm:$0xff]  }
 0x1bf   : > { %5666 = vmatprep.mubr.msk.bf16.mxu0 %vm6221_vm0, %v6220_v1  ;;  %5719 = vmatpush3.bf16.msra.mxu0 %v6134_v12  ;;  %v2994_v3 = vor.u32 %v2993_v4, %v2990_v13  ;;  %v6146_v12 = vld [vmem:[%s8063_s3 + $0x128] sm:$0xff]   ;;  %v6162_v63 = vld [vmem:[%s8063_s3 + $0x100] sm:$0xff]  }
 0x1c0   : > { %v7417_v43 = vld [vmem:[#allocation2 + $0x24] sm:$0xff]   ;;  %5720 = vmatprep.subr.bf16.mxu0 %v6220_v1 }
 0x1c1   : > { %v2430_v2 = vrot.slane %v7417_v43, 1  ;;  %v2595_v9 = vshll.u32 %v7417_v43, 16  ;;  %5685 = vmatpush3.bf16.msra.mxu1 %v6133_v22  ;;  %v2599_v10 = vshrl.u32 %v7417_v43, 16  ;;  %v2995_v39 = vsel %vm924_vm3, %v2986_v26, %v2994_v3  ;;  %v6161_v47 = vld [vmem:[%s8063_s3 + $0x148] sm:$0xff]   ;;  %v6163_v26 = vld [vmem:[%s8063_s3 + $0x140] sm:$0xff]  }
 0x1c2   : > { %5686 = vmatprep.subr.bf16.mxu1 %v6220_v1  ;;  %v3006_v22 = vshrl.u32 %v7508_v8, 16 }
 0x1c3   : > { %v2431_v16 = vsel %vm363_vm1, %v2428_v46, %v2430_v2  ;;  %v2597_v58 = vrot.slane %v2595_v9, 1  ;;  %5721 = vmatpush3.bf16.msra.mxu0 %v6136_v60  ;;  %v2767_v46 = vrot.slane %v2579_v48, 2  ;;  %v3002_v48 = vrot.slane %v3000_v6, 2 }
 0x1c4   : > { %v6137_v33 = vld [vmem:[#allocation2 + $0x2c] ss:$0 sps:$4 sm:$0x11]   ;;  %5631 = vmatmul.mubr.bf16.gmra.mxu1 %v2431_v16  ;;  %5722 = vmatprep.subr.bf16.mxu0 %v6220_v1  ;;  %v3009_v60 = vshll.u32 %v7508_v8, 16  ;;  %v3008_v23 = vrot.slane %v3006_v22, 1  ;;  %v2774_v38 = vrot.slane %v2599_v10, 1 }
 0x1c5   : > { %v2598_v7 = vsel %vm529_vm2, %v2593_v51, %v2597_v58  ;;  %5634 = vmatprep.mubr.msk.bf16.mxu1 %vm6221_vm0, %v6220_v1  ;;  %5687 = vmatpush3.bf16.msra.mxu1 %v6135_v30  ;;  %v2603_v18 = vshll.u32 %v6137_v33, 16  ;;  %v2432_v56 = vrot.slane %v6137_v33, 1  ;;  %v2601_v25 = vor.u32 %v2599_v10, %v2597_v58  ;;  %v6151_v16 = vld [vmem:[%s8063_s3 + $0x168] sm:$0xff]   ;;  %v6149_v51 = vld [vmem:[%s8063_s3 + $0x120] sm:$0xff]  }
 0x1c6   : > { %5688 = vmatprep.subr.bf16.mxu1 %v6220_v1  ;;  %5667 = vmatmul.mubr.bf16.gmra.mxu0 %v2598_v7  ;;  %v2768_v27 = vor.u32 %v2767_v46, %v2766_v36  ;;  %v3003_v40 = vor.u32 %v3002_v48, %v2999_v53  ;;  %v2770_v30 = vrot.slane %v2591_v21, 1  ;;  %v7542_v21 = vld [vmem:[#allocation2 + $0x28] sm:$0xff]   ;;  %v6152_v7 = vld [vmem:[%s8063_s3 + $0x118] sm:$0xff]   ;;  %v2775_v37 = vrot.slane %v2595_v9, 2 }
 0x1c7   : > { %5670 = vmatprep.mubr.msk.bf16.mxu0 %vm6221_vm0, %v6220_v1  ;;  %5723 = vmatpush3.bf16.msra.mxu0 %v6138_v55  ;;  %v2605_v52 = vrot.slane %v2603_v18, 1  ;;  %v2433_v61 = vsel %vm363_vm1, %v2430_v2, %v2432_v56  ;;  %v2771_v55 = vrot.slane %v2587_v28, 2  ;;  %v3011_v28 = vrot.slane %v3009_v60, 2  ;;  %v6159_v11 = vld [vmem:[#allocation2 + $0x2c] ss:$0 sps:$4 sm:$0x33]  }
 0x1c8   : > { %5724 = vmatprep.subr.bf16.mxu0 %v6220_v1  ;;  %v2769_v2 = vsel %vm924_vm3, %v2764_v62, %v2768_v27  ;;  %v3004_v58 = vsel %vm924_vm3, %v2994_v3, %v3003_v40  ;;  %v3015_v56 = vshrl.u32 %v7542_v21, 16  ;;  %v3018_v19 = vshll.u32 %v7542_v21, 16  ;;  %v3168_v46 = vld [vmem:[#allocation2 + $0x8] sm:$0xc] }
 0x1c9   : > { %5689 = vmatpush3.bf16.msra.mxu1 %v6139_v29  ;;  %v2606_v32 = vsel %vm529_vm2, %v2601_v25, %v2605_v52  ;;  %v2772_v33 = vor.u32 %v2771_v55, %v2770_v30  ;;  %v6153_v29 = vld [vmem:[%s8063_s3 + $0x160] sm:$0xff]   ;;  %v3012_v18 = vor.u32 %v3011_v28, %v3008_v23  ;;  %v6156_v52 = vld [vmem:[%s8063_s3 + $0x158] sm:$0xff]   ;;  %v2776_v14 = vor.u32 %v2775_v37, %v2774_v38 }
 0x1ca   : > { %5746 = vmatprep.subr.bf16.mxu1 %v6220_v1  ;;  %v3017_v43 = vrot.slane %v3015_v56, 1  ;;  %v3020_v9 = vrot.slane %v3018_v19, 2  ;;  %v2779_v25 = vshrl.u32 %v6159_v11, 16  ;;  %v2782_v41 = vshll.u32 %v6159_v11, 16  ;;  %v6165_v55 = vld [vmem:[%s8063_s3 + $0x1b8] sm:$0xff]  }
 0x1cb   : > { %5725 = vmatpush3.bf16.msra.mxu0 %v6140_v45  ;;  %v2773_v45 = vsel %vm924_vm3, %v2768_v27, %v2772_v33  ;;  %v3013_v10 = vsel %vm924_vm3, %v3003_v40, %v3012_v18  ;;  %v2777_v4 = vsel %vm924_vm3, %v2772_v33, %v2776_v14  ;;  %vm3357_vm1 = vsmask.f32 5376 }
 0x1cc   : > { %5635 = vmatmul.mubr.bf16.gmra.mxu1 %v2433_v61  ;;  %5782 = vmatprep.subr.bf16.mxu0 %v6220_v1  ;;  %v7576_v61 = vld [vmem:[#allocation2 + $0x30] ss:$0 sps:$4 sm:$0x33]   ;;  %v3021_v5 = vor.u32 %v3020_v9, %v3017_v43  ;;  %v2781_v62 = vrot.slane %v2779_v25, 1  ;;  %v2784_v34 = vrot.slane %v2782_v41, 2  ;;  %v3370_v23 = vrot.slane %v2997_v20, 2 }
 0x1cd   : > { %5690 = vmatprep.mubr.msk.bf16.mxu1 %vm6221_vm0, %v6220_v1  ;;  %v3027_v13 = vshll.u32 %v7576_v61, 16  ;;  %v3371_v28 = vrot.slane %v3000_v6, 3  ;;  %v3192_v33 = vrot.slane %v7480_v31, 2  ;;  %v6171_v6 = vld [vmem:[%s8063_s3 + $0x1e8] sm:$0xff]   ;;  %v3374_v38 = vrot.slane %v3006_v22, 2  ;;  %v6172_v22 = vld [vmem:[%s8063_s3 + $0x198] sm:$0xff]  }
 0x1ce   : > { %5671 = vmatmul.mubr.bf16.gmra.mxu0 %v2606_v32  ;;  %v3024_v32 = vshrl.u32 %v7576_v61, 16  ;;  %v2785_v36 = vor.u32 %v2784_v34, %v2781_v62  ;;  %v3375_v37 = vrot.slane %v3009_v60, 3  ;;  %v3194_v11 = vrot.slane %v7508_v8, 2  ;;  %v6178_v25 = vld [vmem:[#allocation2 + $0x30] ss:$0 sps:$4 sm:$0x77]  }
 0x1cf   : > { %5726 = vmatprep.mubr.msk.bf16.mxu0 %vm6221_vm0, %v6220_v1  ;;  %v3372_v20 = vor.u32 %v3371_v28, %v3370_v23  ;;  %v3378_v9 = vrot.slane %v3015_v56, 2  ;;  %v3196_v41 = vrot.slane %v7542_v21, 2  ;;  %v6176_v56 = vld [vmem:[%s8063_s3 + $0x188] sm:$0xff]   ;;  %v3386_v21 = vshll.u32 %v6178_v25, 16  ;;  %v6180_v34 = vld [vmem:[%s8063_s3 + $0x180] sm:$0xff]  }
 0x1d0   : > { %v3026_v3 = vrot.slane %v3024_v32, 1  ;;  %v3376_v60 = vor.u32 %v3375_v37, %v3374_v38  ;;  %v3195_v8 = vsel %vm1170_vm4, %v3192_v33, %v3194_v11  ;;  %v3527_v62 = vld [vmem:[#allocation2 + $0xc] sm:$0xc]  ;;  %vm3793_vm2 = vcmask 1044480   ;;  %v7755_v28 = vld [vmem:[#allocation2 + $0x24] sm:$0xff]  }
 0x1d1   : > { %v3197_v32 = vsel %vm1170_vm4, %v3194_v11, %v3196_v41  ;;  %v6188_v38 = vld [vmem:[%s8063_s3 + $0x228] sm:$0xff]  }
 0x1d2   : > { %v3377_v43 = vsel %vm3357_vm1, %v3372_v20, %v3376_v60 }
 0x1d4   : > { %5691 = vmatmul.mubr.bf16.vlgmr.msra.gmra.mxu1 %v2765_v44  ;;  %v3029_v44 = vrot.slane %v3027_v13, 2  ;;  %v7706_v13 = vld [vmem:[#allocation2 + $0x14] sm:$0xff]  }
 0x1d5   : > { %5747 = vmatpush3.bf16.msra.mxu1 %v6141_v50  ;;  %5694 = vmatprep.mubr.msk.bf16.mxu1 %vm6221_vm0, %v6220_v1  ;;  %v3022_v50 = vsel %vm924_vm3, %v3012_v18, %v3021_v5  ;;  %v6170_v18 = vld [vmem:[%s8063_s3 + $0x1a0] sm:$0xff]  }
 0x1d6   : > { %5748 = vmatprep.subr.bf16.mxu1 %v6220_v1  ;;  %5727 = vmatmul.mubr.bf16.vlgmr.msra.gmra.mxu0 %v2995_v39  ;;  %v2786_v39 = vsel %vm924_vm3, %v2776_v14, %v2785_v36  ;;  %v3379_v14 = vrot.slane %v3018_v19, 3  ;;  %v3592_v36 = vshrl.u32 %v7706_v13, 16 }
 0x1d7   : > { %5730 = vmatprep.mubr.msk.bf16.mxu0 %vm6221_vm0, %v6220_v1  ;;  %5783 = vmatpush3.bf16.msra.mxu0 %v6147_v57  ;;  %v4840_v57 = vcombine.low %v3168_v46, %v7443_v54  ;;  %v3366_v54 = vrot.slane %v2988_v35, 2  ;;  %v3595_v46 = vshll.u32 %v7706_v13, 16 }
 0x1d8   : > { %5784 = vmatprep.subr.bf16.mxu0 %v6220_v1  ;;  %v3380_v19 = vor.u32 %v3379_v14, %v3378_v9 }
 0x1d9   : > { %5749 = vmatpush3.bf16.msra.mxu1 %v6144_v15  ;;  %v3030_v15 = vor.u32 %v3029_v44, %v3026_v3  ;;  %v3359_v53 = vshrl.u32 %v4840_v57, 16  ;;  %v3362_v48 = vshll.u32 %v4840_v57, 16  ;;  %v3189_v30 = vrot.slane %v4840_v57, 2 }
 0x1da   : > { %5750 = vmatprep.subr.bf16.mxu1 %v6220_v1  ;;  %v3388_v3 = vrot.slane %v3386_v21, 3  ;;  %v3198_v44 = vrot.slane %v7576_v61, 2  ;;  %v6201_v21 = vld [vmem:[#allocation2 + $0x34] ss:$0 sps:$4 sm:$0x77]  }
 0x1db   : > { %5785 = vmatpush3.bf16.msra.mxu0 %v6148_v0  ;;  %v3031_v27 = vsel %vm924_vm3, %v3021_v5, %v3030_v15  ;;  %v3367_v0 = vrot.slane %v2991_v42, 3  ;;  %v3361_v40 = vrot.slane %v3359_v53, 2  ;;  %v6166_v42 = vld [vmem:[%s8063_s3 + $0x1b0] sm:$0xff]   ;;  %v3594_v53 = vrot.slane %v3592_v36, 2 }
 0x1dc   : > { %5695 = vmatmul.mubr.bf16.gmra.mxu1 %v2769_v2  ;;  %5786 = vmatprep.subr.bf16.mxu0 %v6220_v1  ;;  %v3364_v2 = vrot.slane %v3362_v48, 3  ;;  %v3528_v5 = vld [vmem:[#allocation2 + $0x10] sm:$0xf]  ;;  %v3199_v61 = vsel %vm1170_vm4, %v3196_v41, %v3198_v44  ;;  %v3597_v48 = vrot.slane %v3595_v46, 3  ;;  %v6194_v41 = vld [vmem:[%s8063_s3 + $0x218] sm:$0xff]  }
 0x1dd   : > { %5751 = vmatpush3.bf16.msra.mxu1 %v6146_v12  ;;  %5698 = vmatprep.mubr.msk.bf16.mxu1 %vm6221_vm0, %v6220_v1  ;;  %v3190_v12 = vrot.slane %v7448_v59, 2  ;;  %v6168_v59 = vld [vmem:[%s8063_s3 + $0x1f8] sm:$0xff]   ;;  %vm3962_vm3 = vsmask.f32 4352 }
 0x1de   : > { %5752 = vmatprep.subr.bf16.mxu1 %v6220_v1  ;;  %5731 = vmatmul.mubr.bf16.gmra.mxu0 %v3004_v58  ;;  %v3365_v35 = vor.u32 %v3364_v2, %v3361_v40  ;;  %v3598_v40 = vor.u32 %v3597_v48, %v3594_v53  ;;  %v3772_v2 = vld [vmem:[#allocation2 + $0xc] sm:$0x8]  ;;  %v7877_v48 = vld [vmem:[%s8065_s5] sm:$0xff]  }
 0x1df   : > { %5734 = vmatprep.mubr.msk.bf16.mxu0 %vm6221_vm0, %v6220_v1  ;;  %5787 = vmatpush3.bf16.msra.mxu0 %v6151_v16  ;;  %v3368_v16 = vor.u32 %v3367_v0, %v3366_v54  ;;  %v3193_v31 = vsel %vm1170_vm4, %v3190_v12, %v3192_v33 }
 0x1e0   : > { %5788 = vmatprep.subr.bf16.mxu0 %v6220_v1 }
 0x1e1   : > { %5753 = vmatpush3.bf16.msra.mxu1 %v6149_v51  ;;  %v3191_v51 = vsel %vm1170_vm4, %v3189_v30, %v3190_v12  ;;  %v3369_v58 = vsel %vm3357_vm1, %v3365_v35, %v3368_v16  ;;  %v6184_v35 = vld [vmem:[%s8063_s3 + $0x238] sm:$0xff]  }
 0x1e2   : > { %5754 = vmatprep.subr.bf16.mxu1 %v6220_v1 }
 0x1e3   : > { %5789 = vmatpush3.bf16.msra.mxu0 %v6153_v29  ;;  %v6169_v29 = vld [vmem:[%s8063_s3 + $0x1f0] sm:$0xff]  }
 0x1e4   : > { %5699 = vmatmul.mubr.bf16.gmra.mxu1 %v2773_v45  ;;  %5790 = vmatprep.subr.bf16.mxu0 %v6220_v1  ;;  %v3373_v45 = vsel %vm3357_vm1, %v3368_v16, %v3372_v20  ;;  %v7744_v16 = vcombine.low %v3772_v2, %v3528_v5  ;;  %v3971_v2 = vrot.slane %v3592_v36, 3 }
 0x1e5   : > { %5755 = vmatpush3.bf16.msra.mxu1 %v6152_v7  ;;  %5702 = vmatprep.mubr.msk.bf16.mxu1 %vm6221_vm0, %v6220_v1  ;;  %v6167_v7 = vld [vmem:[%s8063_s3 + $0x1a8] sm:$0xff]  }
 0x1e6   : > { %5756 = vmatprep.subr.bf16.mxu1 %v6220_v1  ;;  %5735 = vmatmul.mubr.bf16.gmra.mxu0 %v3013_v10  ;;  %v6174_v10 = vld [vmem:[%s8063_s3 + $0x190] sm:$0xff]   ;;  %v3794_v33 = vrot.slane %v7744_v16, 3 }
 0x1e7   : > { %5738 = vmatprep.mubr.msk.bf16.mxu0 %vm6221_vm0, %v6220_v1  ;;  %5791 = vmatpush3.bf16.msra.mxu0 %v6156_v52  ;;  %v6173_v52 = vld [vmem:[%s8063_s3 + $0x1e0] sm:$0xff]  }
 0x1e8   : > { %5792 = vmatprep.subr.bf16.mxu0 %v6220_v1 }
 0x1e9   : > { %5757 = vmatpush3.bf16.msra.mxu1 %v6155_v17  ;;  %v6175_v17 = vld [vmem:[%s8063_s3 + $0x1d8] sm:$0xff]  }
 0x1ea   : > { %5758 = vmatprep.subr.bf16.mxu1 %v6220_v1 }
 0x1eb   : > { %5793 = vmatpush3.bf16.msra.mxu0 %v6158_v24  ;;  %v6177_v24 = vld [vmem:[%s8063_s3 + $0x1d0] sm:$0xff]  }
 0x1ec   : > { %5703 = vmatmul.mubr.bf16.gmra.mxu1 %v2777_v4  ;;  %5794 = vmatprep.subr.bf16.mxu0 %v6220_v1  ;;  %v6179_v4 = vld [vmem:[%s8063_s3 + $0x1c8] sm:$0xff]  }
 0x1ed   : > { %5706 = vmatprep.mubr.msk.bf16.mxu1 %vm6221_vm0, %v6220_v1  ;;  %5759 = vmatpush3.bf16.msra.mxu1 %v6157_v49  ;;  %v3383_v49 = vshrl.u32 %v6178_v25, 16  ;;  %v7815_v25 = vld [vmem:[%s8065_s5 + $0x20] sm:$0xff]  }
 0x1ee   : > { %5760 = vmatprep.subr.bf16.mxu1 %v6220_v1  ;;  %5739 = vmatmul.mubr.bf16.gmra.mxu0 %v3022_v50 }
 0x1ef   : > { %5742 = vmatprep.mubr.msk.bf16.mxu0 %vm6221_vm0, %v6220_v1  ;;  %5795 = vmatpush3.bf16.msra.mxu0 %v6161_v47  ;;  %v4890_v47 = vcombine.low %v3527_v62, %v3528_v5  ;;  %v3385_v50 = vrot.slane %v3383_v49, 2  ;;  %v7832_v5 = vld [vmem:[%s8065_s5 + $0x18] sm:$0xff]  }
 0x1f0   : > { %5796 = vmatprep.subr.bf16.mxu0 %v6220_v1 }
 0x1f1   : > { %5761 = vmatpush3.bf16.msra.mxu1 %v6162_v63  ;;  %v3381_v63 = vsel %vm3357_vm1, %v3376_v60, %v3380_v19  ;;  %v3584_v57 = vshrl.u32 %v4890_v47, 16  ;;  %v3587_v15 = vshll.u32 %v4890_v47, 16  ;;  %v7791_v60 = vld [vmem:[#allocation2 + $0x2c] sm:$0xff]   ;;  %v3631_v47 = vshll.u32 %v6201_v21, 16 }
 0x1f2   : > { %5818 = vmatprep.subr.bf16.mxu1 %v6220_v1  ;;  %v3619_v9 = vshrl.u32 %v7791_v60, 16  ;;  %v3622_v14 = vshll.u32 %v7791_v60, 16 }
 0x1f3   : > { %5797 = vmatpush3.bf16.msra.mxu0 %v6163_v26  ;;  %v6181_v26 = vld [vmem:[%s8063_s3 + $0x1c0] sm:$0xff]   ;;  %v3586_v54 = vrot.slane %v3584_v57, 2  ;;  %v3589_v0 = vrot.slane %v3587_v15, 3  ;;  %v3633_v57 = vrot.slane %v3631_v47, 3  ;;  %v7861_v15 = vld [vmem:[%s8065_s5 + $0x8] sm:$0xff]  }
 0x1f4   : > { %5707 = vmatmul.mubr.bf16.gmra.mxu1 %v2786_v39  ;;  %5854 = vmatprep.subr.bf16.mxu0 %v6220_v1  ;;  %v3389_v39 = vor.u32 %v3388_v3, %v3385_v50  ;;  %v3624_v49 = vrot.slane %v3622_v14, 3  ;;  %v6199_v50 = vld [vmem:[%s8063_s3 + $0x208] sm:$0xff]   ;;  %v3801_v3 = vrot.slane %v7791_v60, 3  ;;  %v6211_v47 = vld [vmem:[%s6320_s28 + $0x30] ss:$0 sps:$4 sm:$0x33]  }
 0x1f5   : > { %5762 = vmatprep.mubr.msk.bf16.mxu1 %vm6221_vm0, %v6220_v1 }
 0x1f6   : > { %5743 = vmatmul.mubr.bf16.gmra.mxu0 %v3031_v27  ;;  %v7734_v27 = vld [vmem:[#allocation2 + $0x1c] sm:$0xff]   ;;  %v3390_v12 = vsel %vm3357_vm1, %v3380_v19, %v3389_v39  ;;  %v3621_v19 = vrot.slane %v3619_v9, 2 }
 0x1f7   : > { %5798 = vmatprep.mubr.msk.bf16.mxu0 %vm6221_vm0, %v6220_v1  ;;  %v3601_v30 = vshrl.u32 %v7734_v27, 16  ;;  %v3797_v37 = vrot.slane %v7734_v27, 3  ;;  %v6203_v39 = vld [vmem:[%s8063_s3 + $0x200] sm:$0xff]  }
 0x1f8   : > { %v3625_v62 = vor.u32 %v3624_v49, %v3621_v19 }
 0x1fc   : > { %5763 = vmatmul.mubr.bf16.vlgmr.msra.gmra.mxu1 %v3191_v51  ;;  %v3590_v51 = vor.u32 %v3589_v0, %v3586_v54  ;;  %v3964_v54 = vshrl.u32 %v7744_v16, 16  ;;  %v3967_v0 = vshll.u32 %v7744_v16, 16 }
 0x1fd   : > { %5819 = vmatpush3.bf16.msra.mxu1 %v6165_v55  ;;  %5766 = vmatprep.mubr.msk.bf16.mxu1 %vm6221_vm0, %v6220_v1  ;;  %v3604_v55 = vshll.u32 %v7734_v27, 16 }
 0x1fe   : > { %5820 = vmatprep.subr.bf16.mxu1 %v6220_v1  ;;  %5799 = vmatmul.mubr.bf16.vlgmr.msra.gmra.mxu0 %v3369_v58  ;;  %v3603_v58 = vrot.slane %v3601_v30, 2  ;;  %v3966_v16 = vrot.slane %v3964_v54, 3 }
 0x1ff   : > { %5802 = vmatprep.mubr.msk.bf16.mxu0 %vm6221_vm0, %v6220_v1  ;;  %5855 = vmatpush3.bf16.msra.mxu0 %v6168_v59  ;;  %v3795_v59 = vrot.slane %v7706_v13, 3  ;;  %v3606_v23 = vrot.slane %v3604_v55, 3 }
 0x200   : > { %5856 = vmatprep.subr.bf16.mxu0 %v6220_v1 }
 0x201   : > { %5821 = vmatpush3.bf16.msra.mxu1 %v6166_v42  ;;  %v3599_v42 = vsel %vm3357_vm1, %v3590_v51, %v3598_v40  ;;  %v3796_v20 = vsel %vm3793_vm2, %v3794_v33, %v3795_v59  ;;  %v3972_v51 = vrot.slane %v3595_v46, 4 }
 0x202   : > { %5822 = vmatprep.subr.bf16.mxu1 %v6220_v1 }
 0x203   : > { %5857 = vmatpush3.bf16.msra.mxu0 %v6169_v29  ;;  %v7761_v29 = vld [vmem:[%s8065_s5 + $0x38] sm:$0xff]  }
 0x204   : > { %5767 = vmatmul.mubr.bf16.gmra.mxu1 %v3193_v31  ;;  %5858 = vmatprep.subr.bf16.mxu0 %v6220_v1  ;;  %v3607_v31 = vor.u32 %v3606_v23, %v3603_v58  ;;  %v3973_v23 = vor.u32 %v3972_v51, %v3971_v2 }
 0x205   : > { %5823 = vmatpush3.bf16.msra.mxu1 %v6167_v7  ;;  %5770 = vmatprep.mubr.msk.bf16.mxu1 %vm6221_vm0, %v6220_v1  ;;  %v6186_v7 = vld [vmem:[%s8063_s3 + $0x230] sm:$0xff]  }
 0x206   : > { %5824 = vmatprep.subr.bf16.mxu1 %v6220_v1  ;;  %5803 = vmatmul.mubr.bf16.gmra.mxu0 %v3373_v45  ;;  %v7778_v45 = vld [vmem:[%s8065_s5 + $0x30] sm:$0xff]   ;;  %v3608_v11 = vsel %vm3357_vm1, %v3598_v40, %v3607_v31 }
 0x207   : > { %5806 = vmatprep.mubr.msk.bf16.mxu0 %vm6221_vm0, %v6220_v1  ;;  %5859 = vmatpush3.bf16.msra.mxu0 %v6171_v6  ;;  %v3610_v6 = vshrl.u32 %v7755_v28, 16 }
 0x208   : > { %5860 = vmatprep.subr.bf16.mxu0 %v6220_v1 }
 0x209   : > { %5825 = vmatpush3.bf16.msra.mxu1 %v6170_v18  ;;  %v3613_v18 = vshll.u32 %v7755_v28, 16 }
 0x20a   : > { %5826 = vmatprep.subr.bf16.mxu1 %v6220_v1 }
 0x20b   : > { %5861 = vmatpush3.bf16.msra.mxu0 %v6173_v52  ;;  %v3612_v52 = vrot.slane %v3610_v6, 2 }
 0x20c   : > { %5771 = vmatmul.mubr.bf16.gmra.mxu1 %v3195_v8  ;;  %5862 = vmatprep.subr.bf16.mxu0 %v6220_v1  ;;  %v7797_v8 = vld [vmem:[%s8065_s5 + $0x28] sm:$0xff]  }
 0x20d   : > { %5827 = vmatpush3.bf16.msra.mxu1 %v6172_v22  ;;  %5774 = vmatprep.mubr.msk.bf16.mxu1 %vm6221_vm0, %v6220_v1  ;;  %v3615_v22 = vrot.slane %v3613_v18, 3 }
 0x20e   : > { %5828 = vmatprep.subr.bf16.mxu1 %v6220_v1  ;;  %5807 = vmatmul.mubr.bf16.gmra.mxu0 %v3377_v43 }
 0x20f   : > { %5810 = vmatprep.mubr.msk.bf16.mxu0 %vm6221_vm0, %v6220_v1  ;;  %5863 = vmatpush3.bf16.msra.mxu0 %v6175_v17  ;;  %v6192_v17 = vld [vmem:[%s8063_s3 + $0x220] sm:$0xff]   ;;  %v3616_v43 = vor.u32 %v3615_v22, %v3612_v52  ;;  %v3984_v22 = vrot.slane %v3622_v14, 4 }
 0x210   : > { %5864 = vmatprep.subr.bf16.mxu0 %v6220_v1  ;;  %v6208_v52 = vld [vmem:[%s6320_s28 + $0x20] sm:$0xff]  }
 0x211   : > { %5829 = vmatpush3.bf16.msra.mxu1 %v6174_v10  ;;  %v3798_v10 = vsel %vm3793_vm2, %v3795_v59, %v3797_v37  ;;  %v3626_v44 = vsel %vm3357_vm1, %v3616_v43, %v3625_v62  ;;  %v6206_v59 = vld [vmem:[%s6320_s28 + $0x10] sm:$0xff]  }
 0x212   : > { %5830 = vmatprep.subr.bf16.mxu1 %v6220_v1  ;;  %v4212_v36 = vrot.slane %v6206_v59, 2 }
 0x213   : > { %5865 = vmatpush3.bf16.msra.mxu0 %v6177_v24  ;;  %v3799_v24 = vrot.slane %v7755_v28, 3 }
 0x214   : > { %5775 = vmatmul.mubr.bf16.gmra.mxu1 %v3197_v32  ;;  %5866 = vmatprep.subr.bf16.mxu0 %v6220_v1  ;;  %v6197_v32 = vld [vmem:[%s8063_s3 + $0x210] sm:$0xff]  }
 0x215   : > { %5778 = vmatprep.mubr.msk.bf16.mxu1 %vm6221_vm0, %v6220_v1  ;;  %5831 = vmatpush3.bf16.msra.mxu1 %v6176_v56  ;;  %v3617_v56 = vsel %vm3357_vm1, %v3607_v31, %v3616_v43 }
 0x216   : > { %5832 = vmatprep.subr.bf16.mxu1 %v6220_v1  ;;  %5811 = vmatmul.mubr.bf16.gmra.mxu0 %v3381_v63  ;;  %v7848_v63 = vld [vmem:[%s8065_s5 + $0x10] sm:$0xff]  }
 0x217   : > { %5814 = vmatprep.mubr.msk.bf16.mxu0 %vm6221_vm0, %v6220_v1  ;;  %5867 = vmatpush3.bf16.msra.mxu0 %v6179_v4  ;;  %v3800_v4 = vsel %vm3793_vm2, %v3797_v37, %v3799_v24 }
 0x218   : > { %5868 = vmatprep.subr.bf16.mxu0 %v6220_v1 }
 0x219   : > { %5833 = vmatpush3.bf16.msra.mxu1 %v6180_v34  ;;  %v3628_v34 = vshrl.u32 %v6201_v21, 16 }
 0x21a   : > { %5890 = vmatprep.subr.bf16.mxu1 %v6220_v1 }
 0x21b   : > { %5869 = vmatpush3.bf16.msra.mxu0 %v6181_v26  ;;  %v3630_v26 = vrot.slane %v3628_v34, 2 }
 0x21c   : > { %5779 = vmatmul.mubr.bf16.gmra.mxu1 %v3199_v61  ;;  %5926 = vmatprep.subr.bf16.mxu0 %v6220_v1  ;;  %v3802_v61 = vsel %vm3793_vm2, %v3799_v24, %v3801_v3  ;;  %v6210_v24 = vld [vmem:[%s6320_s28 + $0x28] sm:$0xff]  }
 0x21d   : > { %5834 = vmatprep.mubr.msk.bf16.mxu1 %vm6221_vm0, %v6220_v1  ;;  %v3634_v53 = vor.u32 %v3633_v57, %v3630_v26  ;;  %v4218_v49 = vrot.slane %v6210_v24, 2  ;;  %v4220_v57 = vrot.slane %v6211_v47, 2 }
 0x21e   : > { %5815 = vmatmul.mubr.bf16.gmra.mxu0 %v3390_v12  ;;  %v3803_v12 = vrot.slane %v6201_v21, 3 }
 0x21f   : > { %5870 = vmatprep.mubr.msk.bf16.mxu0 %vm6221_vm0, %v6220_v1  ;;  %v3635_v40 = vsel %vm3357_vm1, %v3625_v62, %v3634_v53  ;;  %v4221_v54 = vsel %vm1170_vm4, %v4218_v49, %v4220_v57 }
 0x220   : > { %v3804_v58 = vsel %vm3793_vm2, %v3801_v3, %v3803_v12 }
 0x224   : > { %5835 = vmatmul.mubr.bf16.vlgmr.msra.gmra.mxu1 %v3599_v42  ;;  %v3969_v42 = vrot.slane %v3967_v0, 4 }
 0x225   : > { %5891 = vmatpush3.bf16.msra.mxu1 %v6184_v35  ;;  %5838 = vmatprep.mubr.msk.bf16.mxu1 %vm6221_vm0, %v6220_v1  ;;  %v6205_v35 = vld [vmem:[%s6320_s28 + $0x8] sm:$0xfc]  }
 0x226   : > { %5892 = vmatprep.subr.bf16.mxu1 %v6220_v1  ;;  %5871 = vmatmul.mubr.bf16.vlgmr.msra.gmra.mxu0 %v3796_v20  ;;  %v4211_v13 = vrot.slane %v6205_v35, 2  ;;  %v3970_v46 = vor.u32 %v3969_v42, %v3966_v16  ;;  %v3976_v20 = vrot.slane %v3604_v55, 4  ;;  %v3979_v55 = vrot.slane %v3610_v6, 3 }
 0x227   : > { %5874 = vmatprep.mubr.msk.bf16.mxu0 %vm6221_vm0, %v6220_v1  ;;  %5927 = vmatpush3.bf16.msra.mxu0 %v7761_v29  ;;  %v4216_v6 = vrot.slane %v6208_v52, 2 }
 0x228   : > { %5928 = vmatprep.subr.bf16.mxu0 %v6220_v1  ;;  %v3974_v33 = vsel %vm3962_vm3, %v3970_v46, %v3973_v23  ;;  %v4213_v31 = vsel %vm1170_vm4, %v4211_v13, %v4212_v36 }
 0x229   : > { %5893 = vmatpush3.bf16.msra.mxu1 %v6186_v7  ;;  %v3975_v7 = vrot.slane %v3601_v30, 3  ;;  %v4219_v34 = vsel %vm1170_vm4, %v4216_v6, %v4218_v49 }
 0x22a   : > { %5894 = vmatprep.subr.bf16.mxu1 %v6220_v1 }
 0x22b   : > { %5929 = vmatpush3.bf16.msra.mxu0 %v7778_v45  ;;  %v3977_v37 = vor.u32 %v3976_v20, %v3975_v7 }
 0x22c   : > { %5839 = vmatmul.mubr.bf16.gmra.mxu1 %v3608_v11  ;;  %5930 = vmatprep.subr.bf16.mxu0 %v6220_v1 }
 0x22d   : > { %5895 = vmatpush3.bf16.msra.mxu1 %v6188_v38  ;;  %5842 = vmatprep.mubr.msk.bf16.mxu1 %vm6221_vm0, %v6220_v1  ;;  %v6207_v38 = vld [vmem:[%s6320_s28 + $0x18] sm:$0xff]   ;;  %v3978_v27 = vsel %vm3962_vm3, %v3973_v23, %v3977_v37 }
 0x22e   : > { %5896 = vmatprep.subr.bf16.mxu1 %v6220_v1  ;;  %5875 = vmatmul.mubr.bf16.gmra.mxu0 %v3798_v10  ;;  %v4214_v30 = vrot.slane %v6207_v38, 2 }
 0x22f   : > { %5878 = vmatprep.mubr.msk.bf16.mxu0 %vm6221_vm0, %v6220_v1  ;;  %5931 = vmatpush3.bf16.msra.mxu0 %v7797_v8 }
 0x230   : > { %5932 = vmatprep.subr.bf16.mxu0 %v6220_v1  ;;  %v4215_v11 = vsel %vm1170_vm4, %v4212_v36, %v4214_v30 }
 0x231   : > { %5897 = vmatpush3.bf16.msra.mxu1 %v6192_v17  ;;  %v4217_v17 = vsel %vm1170_vm4, %v4214_v30, %v4216_v6 }
 0x232   : > { %5898 = vmatprep.subr.bf16.mxu1 %v6220_v1 }
 0x233   : > { %5933 = vmatpush3.bf16.msra.mxu0 %v7815_v25 }
 0x234   : > { %5843 = vmatmul.mubr.bf16.gmra.mxu1 %v3617_v56  ;;  %5934 = vmatprep.subr.bf16.mxu0 %v6220_v1 }
 0x235   : > { %5899 = vmatpush3.bf16.msra.mxu1 %v6194_v41  ;;  %5846 = vmatprep.mubr.msk.bf16.mxu1 %vm6221_vm0, %v6220_v1 }
 0x236   : > { %5900 = vmatprep.subr.bf16.mxu1 %v6220_v1  ;;  %5879 = vmatmul.mubr.bf16.gmra.mxu0 %v3800_v4 }
 0x237   : > { %5882 = vmatprep.mubr.msk.bf16.mxu0 %vm6221_vm0, %v6220_v1  ;;  %5935 = vmatpush3.bf16.msra.mxu0 %v7832_v5 }
 0x238   : > { %5936 = vmatprep.subr.bf16.mxu0 %v6220_v1 }
 0x239   : > { %5901 = vmatpush3.bf16.msra.mxu1 %v6197_v32 }
 0x23a   : > { %5902 = vmatprep.subr.bf16.mxu1 %v6220_v1 }
 0x23b   : > { %5937 = vmatpush3.bf16.msra.mxu0 %v7848_v63 }
 0x23c   : > { %5847 = vmatmul.mubr.bf16.gmra.mxu1 %v3626_v44  ;;  %5938 = vmatprep.subr.bf16.mxu0 %v6220_v1 }
 0x23d   : > { %5850 = vmatprep.mubr.msk.bf16.mxu1 %vm6221_vm0, %v6220_v1  ;;  %5903 = vmatpush3.bf16.msra.mxu1 %v6199_v50 }
 0x23e   : > { %5904 = vmatprep.subr.bf16.mxu1 %v6220_v1  ;;  %5883 = vmatmul.mubr.bf16.gmra.mxu0 %v3802_v61 }
 0x23f   : > { %5886 = vmatprep.mubr.msk.bf16.mxu0 %vm6221_vm0, %v6220_v1  ;;  %5939 = vmatpush3.bf16.msra.mxu0 %v7861_v15 }
 0x240   : > { %5940 = vmatprep.subr.bf16.mxu0 %v6220_v1 }
 0x241   : > { %5905 = vmatpush3.bf16.msra.mxu1 %v6203_v39 }
 0x242   : > { %5962 = vmatprep.subr.bf16.mxu1 %v6220_v1 }
 0x243   : > { %5941 = vmatpush3.bf16.msra.mxu0 %v7877_v48 }
 0x244   : > { %5851 = vmatmul.mubr.bf16.gmra.mxu1 %v3635_v40 }
 0x245   : > { %5906 = vmatprep.mubr.msk.bf16.mxu1 %vm6221_vm0, %v6220_v1 }
 0x246   : > { %5887 = vmatmul.mubr.bf16.gmra.mxu0 %v3804_v58 }
 0x247   : > { %5942 = vmatprep.mubr.msk.bf16.mxu0 %vm6221_vm0, %v6220_v1 }
 0x24c   : > { %5907 = vmatmul.mubr.bf16.vlgmr.msra.gmra.mxu1 %v3974_v33 }
 0x24d   : > { %5970 = vmatpush3.bf16.msra.mxu1 %v7761_v29  ;;  %5910 = vmatprep.mubr.msk.bf16.mxu1 %vm6221_vm0, %v6220_v1  ;;  %v3980_v29 = vrot.slane %v3613_v18, 4  ;;  %v3983_v18 = vrot.slane %v3619_v9, 3 }
 0x24e   : > { %5963 = vmatprep.subr.bf16.mxu1 %v6220_v1  ;;  %5943 = vmatmul.mubr.bf16.vlgmr.msra.gmra.mxu0 %v4213_v31 }
 0x24f   : > { %5946 = vmatprep.mubr.msk.bf16.mxu0 %vm6221_vm0, %v6220_v1  ;;  %v3985_v10 = vor.u32 %v3984_v22, %v3983_v18 }
 0x251   : > { %5971 = vmatpush3.bf16.msra.mxu1 %v7778_v45  ;;  %v3981_v45 = vor.u32 %v3980_v29, %v3979_v55 }
 0x252   : > { %5964 = vmatprep.subr.bf16.mxu1 %v6220_v1 }
 0x253   : > { %v3982_v28 = vsel %vm3962_vm3, %v3977_v37, %v3981_v45  ;;  %v3986_v60 = vsel %vm3962_vm3, %v3981_v45, %v3985_v10 }
 0x254   : > { %5911 = vmatmul.mubr.bf16.gmra.mxu1 %v3978_v27 }
 0x255   : > { %5972 = vmatpush3.bf16.msra.mxu1 %v7797_v8  ;;  %5914 = vmatprep.mubr.msk.bf16.mxu1 %vm6221_vm0, %v6220_v1  ;;  %v6209_v8 = vld [vmem:[#allocation2 + $0x34] ss:$0 sps:$4 sm:$0xff]  }
 0x256   : > { %5965 = vmatprep.subr.bf16.mxu1 %v6220_v1  ;;  %5947 = vmatmul.mubr.bf16.gmra.mxu0 %v4215_v11  ;;  %v3988_v43 = vshrl.u32 %v6209_v8, 16 }
 0x257   : > { %5950 = vmatprep.mubr.msk.bf16.mxu0 %vm6221_vm0, %v6220_v1 }
 0x258   : > { %v3990_v9 = vrot.slane %v3988_v43, 3 }
 0x259   : > { %5973 = vmatpush3.bf16.msra.mxu1 %v7815_v25  ;;  %v3991_v25 = vshll.u32 %v6209_v8, 16 }
 0x25a   : > { %5966 = vmatprep.subr.bf16.mxu1 %v6220_v1 }
 0x25b   : > { %v3993_v14 = vrot.slane %v3991_v25, 4 }
 0x25c   : > { %5915 = vmatmul.mubr.bf16.gmra.mxu1 %v3982_v28 }
 0x25d   : > { %5974 = vmatpush3.bf16.msra.mxu1 %v7832_v5  ;;  %5918 = vmatprep.mubr.msk.bf16.mxu1 %vm6221_vm0, %v6220_v1  ;;  %v3994_v41 = vor.u32 %v3993_v14, %v3990_v9 }
 0x25e   : > { %5967 = vmatprep.subr.bf16.mxu1 %v6220_v1  ;;  %5951 = vmatmul.mubr.bf16.gmra.mxu0 %v4217_v17 }
 0x25f   : > { %v3995_v56 = vsel %vm3962_vm3, %v3985_v10, %v3994_v41 }
 0x261   : > { %5975 = vmatpush3.bf16.msra.mxu1 %v7848_v63 }
 0x262   : > { %5968 = vmatprep.subr.bf16.mxu1 %v6220_v1 }
 0x264   : > { %5919 = vmatmul.mubr.bf16.gmra.mxu1 %v3986_v60 }
 0x265   : > { %5922 = vmatprep.mubr.msk.bf16.mxu1 %vm6221_vm0, %v6220_v1  ;;  %5976 = vmatpush3.bf16.msra.mxu1 %v7861_v15 }
 0x266   : > { %5969 = vmatprep.subr.bf16.mxu1 %v6220_v1 }
 0x269   : > { %5977 = vmatpush3.bf16.msra.mxu1 %v7877_v48 }
 0x26c   : > { %v2521_v19 = vpop.f32.mrf.mxu1  ;;  %5923 = vmatmul.mubr.bf16.gmra.mxu1 %v3995_v56 }
 0x26d   : > { %5954 = vmatprep.mubr.msk.bf16.mxu1 %vm6221_vm0, %v6220_v1 }
 0x26e   : > { %v5620_v21 = vpop.f32.mrf.mxu1  ;;  %v2694_v5 = vpop.f32.mrf.mxu0 }
 0x26f   : > { %v2695_v32 = vadd.f32 %v2694_v5, %v2521_v19 }
 0x270   : > { %v2524_v4 = vpop.f32.mrf.mxu1  ;;  %v5656_v62 = vpop.f32.mrf.mxu0 }
 0x272   : > { %v5621_v63 = vpop.f32.mrf.mxu1  ;;  %v2697_v50 = vpop.f32.mrf.mxu0 }
 0x273   : > { %v2698_v3 = vadd.f32 %v2697_v50, %v2524_v4 }
 0x274   : > { %v2529_v44 = vpop.f32.mrf.mxu1  ;;  %5955 = vmatmul.mubr.bf16.vlgmr.msra.gmra.mxu1 %v4219_v34  ;;  %v5657_v26 = vpop.f32.mrf.mxu0 }
 0x275   : > { %5958 = vmatprep.mubr.msk.bf16.mxu1 %vm6221_vm0, %v6220_v1 }
 0x276   : > { %v5624_v15 = vpop.f32.mrf.mxu1  ;;  %v2702_v39 = vpop.f32.mrf.mxu0 }
 0x277   : > { %v2703_v61 = vadd.f32 %v2702_v39, %v2529_v44 }
 0x278   : > { %v2532_v53 = vpop.f32.mrf.mxu1  ;;  %v5660_v48 = vpop.f32.mrf.mxu0 }
 0x27a   : > { %v5625_v0 = vpop.f32.mrf.mxu1  ;;  %v2705_v12 = vpop.f32.mrf.mxu0 }
 0x27b   : > { %v2706_v40 = vadd.f32 %v2705_v12, %v2532_v53 }
 0x27c   : > { %v2537_v2 = vpop.f32.mrf.mxu1  ;;  %5959 = vmatmul.mubr.bf16.gmra.mxu1 %v4221_v54  ;;  %v5661_v51 = vpop.f32.mrf.mxu0 }
 0x27e   : > { %v5628_v35 = vpop.f32.mrf.mxu1  ;;  %v2710_v59 = vpop.f32.mrf.mxu0 }
 0x27f   : > { %v2711_v16 = vadd.f32 %v2710_v59, %v2537_v2 }
 0x280   : > { %v2540_v42 = vpop.f32.mrf.mxu1  ;;  %v5664_v58 = vpop.f32.mrf.mxu0 }
 0x282   : > { %v5629_v1 = vpop.f32.mrf.mxu1  ;;  %v2713_v23 = vpop.f32.mrf.mxu0 }
 0x283   : > { %v2714_v13 = vadd.f32 %v2713_v23, %v2540_v42 }
 0x284   : > { %v2545_v36 = vpop.f32.mrf.mxu1  ;;  %v5665_v46 = vpop.f32.mrf.mxu0 }
 0x286   : > { %v5632_v33 = vpop.f32.mrf.mxu1  ;;  %v2718_v7 = vpop.f32.mrf.mxu0 }
 0x287   : > { %v2719_v20 = vadd.f32 %v2718_v7, %v2545_v36 }
 0x288   : > { %v2548_v31 = vpop.f32.mrf.mxu1  ;;  %v5668_v38 = vpop.f32.mrf.mxu0 }
 0x28a   : > { %v5633_v37 = vpop.f32.mrf.mxu1  ;;  %v2721_v30 = vpop.f32.mrf.mxu0 }
 0x28b   : > { %v2722_v27 = vadd.f32 %v2721_v30, %v2548_v31 }
 0x28c   : > { %v2553_v55 = vpop.f32.mrf.mxu1  ;;  %v5669_v29 = vpop.f32.mrf.mxu0 }
 0x28e   : > { %v5636_v11 = vpop.f32.mrf.mxu1  ;;  %v2726_v52 = vpop.f32.mrf.mxu0 }
 0x28f   : > { %v2727_v45 = vadd.f32 %v2726_v52, %v2553_v55 }
 0x290   : > { %v2556_v6 = vpop.f32.mrf.mxu1  ;;  %v5672_v28 = vpop.f32.mrf.mxu0 }
 0x292   : > { %v5637_v18 = vpop.f32.mrf.mxu1  ;;  %v2729_v22 = vpop.f32.mrf.mxu0 }
 0x293   : > { %v2730_v8 = vadd.f32 %v2729_v22, %v2556_v6 }
 0x294   : > { %v2874_v17 = vpop.f32.mrf.mxu1  ;;  %v5673_v10 = vpop.f32.mrf.mxu0 }
 0x295   : > { %v2913_v43 = vadd.f32 %v2874_v17, %v2695_v32 }
 0x296   : > { %v5692_v25 = vpop.f32.mrf.mxu1  ;;  %v3119_v60 = vpop.f32.mrf.mxu0 }
 0x297   : > { %v3158_v9 = vadd.f32 %v3119_v60, %v2913_v43 }
 0x298   : > { %v2877_v14 = vpop.f32.mrf.mxu1  ;;  %v5728_v24 = vpop.f32.mrf.mxu0 }
 0x299   : > { %v2914_v41 = vadd.f32 %v2877_v14, %v2698_v3 }
 0x29a   : > { %v5693_v56 = vpop.f32.mrf.mxu1  ;;  %v3122_v19 = vpop.f32.mrf.mxu0 }
 0x29b   : > { %v3159_v49 = vadd.f32 %v3122_v19, %v2914_v41 }
 0x29c   : > { %v2882_v21 = vpop.f32.mrf.mxu1  ;;  %v5729_v4 = vpop.f32.mrf.mxu0 }
 0x29d   : > { %v2915_v5 = vadd.f32 %v2882_v21, %v2703_v61 }
 0x29e   : > { %v5696_v62 = vpop.f32.mrf.mxu1  ;;  %v3127_v34 = vpop.f32.mrf.mxu0 }
 0x29f   : > { %v3160_v47 = vadd.f32 %v3127_v34, %v2915_v5 }
 0x2a0   : > { %v2885_v63 = vpop.f32.mrf.mxu1  ;;  %v5732_v44 = vpop.f32.mrf.mxu0 }
 0x2a1   : > { %v2916_v50 = vadd.f32 %v2885_v63, %v2706_v40 }
 0x2a2   : > { %v5697_v26 = vpop.f32.mrf.mxu1  ;;  %v3130_v32 = vpop.f32.mrf.mxu0 }
 0x2a3   : > { %v3161_v57 = vadd.f32 %v3130_v32, %v2916_v50 }
 0x2a4   : > { %v2890_v15 = vpop.f32.mrf.mxu1  ;;  %v5733_v53 = vpop.f32.mrf.mxu0 }
 0x2a5   : > { %v2917_v39 = vadd.f32 %v2890_v15, %v2711_v16 }
 0x2a6   : > { %v5700_v3 = vpop.f32.mrf.mxu1  ;;  %v3135_v48 = vpop.f32.mrf.mxu0 }
 0x2a7   : > { %v3162_v54 = vadd.f32 %v3135_v48, %v2917_v39 }
 0x2a8   : > { %v2893_v0 = vpop.f32.mrf.mxu1  ;;  %v5736_v2 = vpop.f32.mrf.mxu0 }
 0x2a9   : > { %v2918_v12 = vadd.f32 %v2893_v0, %v2714_v13 }
 0x2aa   : > { %v5701_v61 = vpop.f32.mrf.mxu1  ;;  %v3138_v51 = vpop.f32.mrf.mxu0 }
 0x2ab   : > { %v3163_v35 = vadd.f32 %v3138_v51, %v2918_v12 }
 0x2ac   : > { %v2898_v59 = vpop.f32.mrf.mxu1  ;;  %v5737_v58 = vpop.f32.mrf.mxu0 }
 0x2ad   : > { %v2919_v42 = vadd.f32 %v2898_v59, %v2719_v20 }
 0x2ae   : > { %v5704_v40 = vpop.f32.mrf.mxu1  ;;  %v3143_v1 = vpop.f32.mrf.mxu0 }
 0x2af   : > { %v3164_v23 = vadd.f32 %v3143_v1, %v2919_v42 }
 0x2b0   : > { %v2901_v36 = vpop.f32.mrf.mxu1  ;;  %v5740_v33 = vpop.f32.mrf.mxu0 }
 0x2b1   : > { %v2920_v46 = vadd.f32 %v2901_v36, %v2722_v27 }
 0x2b2   : > { %v5705_v16 = vpop.f32.mrf.mxu1  ;;  %v3146_v7 = vpop.f32.mrf.mxu0 }
 0x2b3   : > { %v3165_v31 = vadd.f32 %v3146_v7, %v2920_v46 }
 0x2b4   : > { %v2906_v38 = vpop.f32.mrf.mxu1  ;;  %v5741_v30 = vpop.f32.mrf.mxu0 }
 0x2b5   : > { %v2921_v37 = vadd.f32 %v2906_v38, %v2727_v45 }
 0x2b6   : > { %v5708_v13 = vpop.f32.mrf.mxu1  ;;  %v3151_v55 = vpop.f32.mrf.mxu0 }
 0x2b7   : > { %v3166_v29 = vadd.f32 %v3151_v55, %v2921_v37 }
 0x2b8   : > { %v2909_v11 = vpop.f32.mrf.mxu1  ;;  %v5744_v6 = vpop.f32.mrf.mxu0 }
 0x2b9   : > { %v2922_v52 = vadd.f32 %v2909_v11, %v2730_v8 }
 0x2ba   : > { %v5709_v20 = vpop.f32.mrf.mxu1  ;;  %v3154_v28 = vpop.f32.mrf.mxu0 }
 0x2bb   : > { %v3167_v18 = vadd.f32 %v3154_v28, %v2922_v52 }
 0x2bc   : > { %v3287_v22 = vpop.f32.mrf.mxu1  ;;  %v5745_v17 = vpop.f32.mrf.mxu0 }
 0x2bd   : > { %v3326_v10 = vadd.f32 %v3287_v22, %v3158_v9 }
 0x2be   : > { %v5764_v27 = vpop.f32.mrf.mxu1  ;;  %v3478_v43 = vpop.f32.mrf.mxu0 }
 0x2bf   : > { %v7953_v25 = vadd.f32 %v3478_v43, %v3326_v10 }
 0x2c0   : > { %v3290_v60 = vpop.f32.mrf.mxu1  ;;  %v5800_v45 = vpop.f32.mrf.mxu0 }
 0x2c1   : > { %v3327_v14 = vadd.f32 %v3290_v60, %v3159_v49 }
 0x2c2   : > { %v5765_v41 = vpop.f32.mrf.mxu1  ;;  %v3481_v24 = vpop.f32.mrf.mxu0 }
 0x2c3   : > { %v7955_v56 = vadd.f32 %v3481_v24, %v3327_v14 }
 0x2c4   : > { %v3295_v19 = vpop.f32.mrf.mxu1  ;;  %v5801_v21 = vpop.f32.mrf.mxu0 }
 0x2c5   : > { %v3328_v8 = vadd.f32 %v3295_v19, %v3160_v47 }
 0x2c6   : > { %v5768_v5 = vpop.f32.mrf.mxu1  ;;  %v3486_v4 = vpop.f32.mrf.mxu0 }
 0x2c7   : > { %v7957_v62 = vadd.f32 %v3486_v4, %v3328_v8 }
 0x2c8   : > { %v3298_v34 = vpop.f32.mrf.mxu1  ;;  %v5804_v63 = vpop.f32.mrf.mxu0 }
 0x2c9   : > { %v3329_v9 = vadd.f32 %v3298_v34, %v3161_v57 }
 0x2ca   : > { %v5769_v50 = vpop.f32.mrf.mxu1  ;;  %v3489_v44 = vpop.f32.mrf.mxu0 }
 0x2cb   : > { %v7959_v26 = vadd.f32 %v3489_v44, %v3329_v9 }
 0x2cc   : > { %v3303_v49 = vpop.f32.mrf.mxu1  ;;  %v5805_v15 = vpop.f32.mrf.mxu0 }
 0x2cd   : > { %v3330_v32 = vadd.f32 %v3303_v49, %v3162_v54 }
 0x2ce   : > { %v5772_v39 = vpop.f32.mrf.mxu1  ;;  %v3494_v53 = vpop.f32.mrf.mxu0 }
 0x2cf   : > { %v7961_v3 = vadd.f32 %v3494_v53, %v3330_v32 }
 0x2d0   : > { %v3306_v47 = vpop.f32.mrf.mxu1  ;;  %v5808_v0 = vpop.f32.mrf.mxu0 }
 0x2d1   : > { %v3331_v48 = vadd.f32 %v3306_v47, %v3163_v35 }
 0x2d2   : > { %v5773_v12 = vpop.f32.mrf.mxu1  ;;  %v3497_v2 = vpop.f32.mrf.mxu0 }
 0x2d3   : > { %v7963_v61 = vadd.f32 %v3497_v2, %v3331_v48 }
 0x2d4   : > { %v3311_v57 = vpop.f32.mrf.mxu1  ;;  %v5809_v59 = vpop.f32.mrf.mxu0 }
 0x2d5   : > { %v3332_v51 = vadd.f32 %v3311_v57, %v3164_v23 }
 0x2d6   : > { %v5776_v42 = vpop.f32.mrf.mxu1  ;;  %v3502_v58 = vpop.f32.mrf.mxu0 }
 0x2d7   : > { %v7965_v40 = vadd.f32 %v3502_v58, %v3332_v51 }
 0x2d8   : > { %v3314_v54 = vpop.f32.mrf.mxu1  ;;  %v5812_v36 = vpop.f32.mrf.mxu0 }
 0x2d9   : > { %v3333_v1 = vadd.f32 %v3314_v54, %v3165_v31 }
 0x2da   : > { %v5777_v46 = vpop.f32.mrf.mxu1  ;;  %v3505_v33 = vpop.f32.mrf.mxu0 }
 0x2db   : > { %v7967_v16 = vadd.f32 %v3505_v33, %v3333_v1 }
 0x2dc   : > { %v3319_v35 = vpop.f32.mrf.mxu1  ;;  %v5813_v38 = vpop.f32.mrf.mxu0 }
 0x2dd   : > { %v3334_v7 = vadd.f32 %v3319_v35, %v3166_v29  ;;  %v8000_v38 = vld [vmem:[%s8064_s4] ss:$0 sm:$0xff] }
 0x2de   : > { %v5780_v37 = vpop.f32.mrf.mxu1  ;;  %v3510_v30 = vpop.f32.mrf.mxu0 }
 0x2df   : > { %v7969_v13 = vadd.f32 %v3510_v30, %v3334_v7 }
 0x2e0   : > { %v3322_v23 = vpop.f32.mrf.mxu1  ;;  %v5816_v11 = vpop.f32.mrf.mxu0 }
 0x2e1   : > { %v3335_v55 = vadd.f32 %v3322_v23, %v3167_v18 }
 0x2e2   : > { %v5781_v52 = vpop.f32.mrf.mxu1  ;;  %v3513_v6 = vpop.f32.mrf.mxu0 }
 0x2e3   : > { %v7971_v20 = vadd.f32 %v3513_v6, %v3335_v55 }
 0x2e4   : > { %v3723_v31 = vpop.f32.mrf.mxu1  ;;  %v5817_v28 = vpop.f32.mrf.mxu0 }
 0x2e5   : > { %v3762_v51 = vadd.f32 %v3723_v31, %v7953_v25  ;;  %v8005_v25 = vld [vmem:[%s8066_s6] ss:$0 sm:$0xff] }
 0x2e6   : > { %v5836_v22 = vpop.f32.mrf.mxu1  ;;  %v3892_v17 = vpop.f32.mrf.mxu0 }
 0x2e7   : > { %v3931_v1 = vadd.f32 %v3892_v17, %v3762_v51 }
 0x2e8   : > { %v3726_v10 = vpop.f32.mrf.mxu1  ;;  %v5872_v27 = vpop.f32.mrf.mxu0 }
 0x2e9   : > { %v3763_v36 = vadd.f32 %v3726_v10, %v7955_v56 }
 0x2ea   : > { %v5837_v43 = vpop.f32.mrf.mxu1  ;;  %v3895_v29 = vpop.f32.mrf.mxu0 }
 0x2eb   : > { %v3932_v30 = vadd.f32 %v3895_v29, %v3763_v36 }
 0x2ec   : > { %v3731_v60 = vpop.f32.mrf.mxu1  ;;  %v5873_v14 = vpop.f32.mrf.mxu0 }
 0x2ed   : > { %v3764_v56 = vadd.f32 %v3731_v60, %v7957_v62 }
 0x2ee   : > { %v5840_v45 = vpop.f32.mrf.mxu1  ;;  %v3900_v41 = vpop.f32.mrf.mxu0 }
 0x2ef   : > { %v3933_v22 = vadd.f32 %v3900_v41, %v3764_v56 }
 0x2f0   : > { %v3734_v24 = vpop.f32.mrf.mxu1  ;;  %v5876_v19 = vpop.f32.mrf.mxu0 }
 0x2f1   : > { %v3765_v17 = vadd.f32 %v3734_v24, %v7959_v26 }
 0x2f2   : > { %v5841_v18 = vpop.f32.mrf.mxu1  ;;  %v3903_v8 = vpop.f32.mrf.mxu0 }
 0x2f3   : > { %v3934_v18 = vadd.f32 %v3903_v8, %v3765_v17 }
 0x2f4   : > { %v3739_v21 = vpop.f32.mrf.mxu1  ;;  %v5877_v5 = vpop.f32.mrf.mxu0 }
 0x2f5   : > { %v3766_v5 = vadd.f32 %v3739_v21, %v7961_v3 }
 0x2f6   : > { %v5844_v4 = vpop.f32.mrf.mxu1  ;;  %v7973_v34 = vpop.f32.mrf.mxu0 }
 0x2f7   : > { %v3935_v3 = vadd.f32 %v7973_v34, %v3766_v5 }
 0x2f8   : > { %v7975_v9 = vpop.f32.mrf.mxu1  ;;  %v5880_v63 = vpop.f32.mrf.mxu0 }
 0x2f9   : > { %v3767_v21 = vadd.f32 %v7975_v9, %v7963_v61 }
 0x2fa   : > { %v5845_v50 = vpop.f32.mrf.mxu1  ;;  %v7977_v44 = vpop.f32.mrf.mxu0 }
 0x2fc   : > { %v7979_v49 = vpop.f32.mrf.mxu1  ;;  %v5881_v32 = vpop.f32.mrf.mxu0 }
 0x2fe   : > { %v5848_v15 = vpop.f32.mrf.mxu1  ;;  %v7981_v39 = vpop.f32.mrf.mxu0 }
 0x300   : > { %v7983_v53 = vpop.f32.mrf.mxu1  ;;  %v5884_v47 = vpop.f32.mrf.mxu0 }
 0x302   : > { %v5849_v48 = vpop.f32.mrf.mxu1  ;;  %v7985_v0 = vpop.f32.mrf.mxu0 }
 0x304   : > { %v7987_v12 = vpop.f32.mrf.mxu1  ;;  %v5885_v2 = vpop.f32.mrf.mxu0 }
 0x306   : > { %v5852_v57 = vpop.f32.mrf.mxu1  ;;  %v7990_v59 = vpop.f32.mrf.mxu0 }
 0x308   : > { %v7992_v42 = vpop.f32.mrf.mxu1  ;;  %v5888_v58 = vpop.f32.mrf.mxu0 }
 0x30a   : > { %v5853_v54 = vpop.f32.mrf.mxu1  ;;  %v7995_v46 = vpop.f32.mrf.mxu0 }
 0x30c   : > { %v4083_v33 = vpop.f32.mrf.mxu1  ;;  %v5889_v35 = vpop.f32.mrf.mxu0 }
 0x30d   : > { %v4122_v7 = vadd.f32 %v4083_v33, %v3931_v1  ;;  %v3936_v35 = vadd.f32 %v7977_v44, %v3767_v21 }
 0x30e   : > { %v5908_v37 = vpop.f32.mrf.mxu1  ;;  %v4309_v23 = vpop.f32.mrf.mxu0 }
 0x30f   : > { %v4139_v55 = vadd.f32 %v8000_v38, %v4122_v7  ;;  %v4310_v11 = vadd.f32 %v8005_v25, %v4309_v23 }
 0x310   : > { %v4086_v52 = vpop.f32.mrf.mxu1  ;;  %v5944_v31 = vpop.f32.mrf.mxu0 }
 0x311   : > { %v4123_v6 = vadd.f32 %v4086_v52, %v3932_v30  ;;  %v4348_v43 = vadd.f32 %v4310_v11, %v4139_v55 }
 0x312   : > { %v5909_v28 = vpop.f32.mrf.mxu1  ;;  %v4312_v27 = vpop.f32.mrf.mxu0 }
 0x313   : > { %v4140_v10 = vadd.f32 %v8000_v38, %v4123_v6  ;;  %v4313_v29 = vadd.f32 %v8005_v25, %v4312_v27  ;;  %v4358_v63 = vmax.f32 %v4348_v43, 0.0 }
 0x314   : > { %v4091_v14 = vpop.f32.mrf.mxu1  ;;  %v5945_v60 = vpop.f32.mrf.mxu0 }
 0x315   : > { %v4124_v62 = vadd.f32 %v4091_v14, %v3933_v22  ;;  %v4349_v45 = vadd.f32 %v4313_v29, %v4140_v10 }
 0x316   : > { %v5912_v19 = vpop.f32.mrf.mxu1  ;;  %v4317_v4 = vpop.f32.mrf.mxu0 }
 0x317   : > { %v4359_v41 = vmax.f32 %v4349_v45, 0.0  ;;  %v4141_v26 = vadd.f32 %v8000_v38, %v4124_v62  ;;  %v4318_v24 = vadd.f32 %v8005_v25, %v4317_v4  ;;  %v3768_v45 = vadd.f32 %v7979_v49, %v7965_v40 }
 0x318   : > { %v4094_v50 = vpop.f32.mrf.mxu1  ;;  %v5948_v15 = vpop.f32.mrf.mxu0  ;;  %v3771_v40 = vadd.f32 %v7992_v42, %v7971_v20 }
 0x319   : > { %v4125_v32 = vadd.f32 %v4094_v50, %v3934_v18  ;;  %v5005_v47 = vpack.c.bf16 %v4359_v41, %v4358_v63  ;;  %v4350_v57 = vadd.f32 %v4318_v24, %v4141_v26  ;;  %v3769_v18 = vadd.f32 %v7983_v53, %v7967_v16 }
 0x31a   : > { %v5913_v8 = vpop.f32.mrf.mxu1  ;;  %v4320_v2 = vpop.f32.mrf.mxu0  ;;  %v3937_v4 = vadd.f32 %v7981_v39, %v3768_v45  ;;  %v3770_v50 = vadd.f32 %v7987_v12, %v7969_v13  ;;  %v3940_v13 = vadd.f32 %v7995_v46, %v3771_v40 }
 0x31b   : > { %v4142_v48 = vadd.f32 %v8000_v38, %v4125_v32  ;;  %5006 = vst [vmem:[%s8020_s18] sm:$0xff] %v5005_v47   ;;  %v4321_v51 = vadd.f32 %v8005_v25, %v4320_v2  ;;  %v4360_v34 = vmax.f32 %v4350_v57, 0.0  ;;  %v3938_v41 = vadd.f32 %v7985_v0, %v3769_v18 }
 0x31c   : > { %v4099_v58 = vpop.f32.mrf.mxu1  ;;  %v5949_v1 = vpop.f32.mrf.mxu0  ;;  %v3939_v39 = vadd.f32 %v7990_v59, %v3770_v50 }
 0x31d   : > { %v4126_v54 = vadd.f32 %v4099_v58, %v3935_v3  ;;  %v4351_v36 = vadd.f32 %v4321_v51, %v4142_v48 }
 0x31e   : > { %v5916_v33 = vpop.f32.mrf.mxu1  ;;  %v4325_v7 = vpop.f32.mrf.mxu0 }
 0x31f   : > { %v4361_v37 = vmax.f32 %v4351_v36, 0.0  ;;  %v4143_v61 = vadd.f32 %v8000_v38, %v4126_v54  ;;  %v4326_v9 = vadd.f32 %v8005_v25, %v4325_v7 }
 0x320   : > { %v4102_v30 = vpop.f32.mrf.mxu1  ;;  %v5952_v23 = vpop.f32.mrf.mxu0 }
 0x321   : > { %v4127_v56 = vadd.f32 %v4102_v30, %v3936_v35  ;;  %v5010_v55 = vpack.c.bf16 %v4361_v37, %v4360_v34  ;;  %v4352_v31 = vadd.f32 %v4326_v9, %v4143_v61 }
 0x322   : > { %v5917_v11 = vpop.f32.mrf.mxu1  ;;  %v4328_v6 = vpop.f32.mrf.mxu0 }
 0x323   : > { %v4144_v52 = vadd.f32 %v8000_v38, %v4127_v56  ;;  %5027 = vst [vmem:[%s8020_s18 + $0x8] sm:$0xff] %v5010_v55   ;;  %v4329_v44 = vadd.f32 %v8005_v25, %v4328_v6  ;;  %v4362_v27 = vmax.f32 %v4352_v31, 0.0 }
 0x324   : > { %v4107_v28 = vpop.f32.mrf.mxu1  ;;  %v5953_v22 = vpop.f32.mrf.mxu0 }
 0x325   : > { %v4353_v17 = vadd.f32 %v4329_v44, %v4144_v52  ;;  %v4128_v26 = vadd.f32 %v4107_v28, %v3937_v4 }
 0x326   : > { %v5920_v10 = vpop.f32.mrf.mxu1 }
 0x327   : > { %v4363_v43 = vmax.f32 %v4353_v17, 0.0  ;;  %v4145_v16 = vadd.f32 %v8000_v38, %v4128_v26 }
 0x328   : > { %v4110_v29 = vpop.f32.mrf.mxu1 }
 0x329   : > { %v5015_v14 = vpack.c.bf16 %v4363_v43, %v4362_v27  ;;  %v4129_v32 = vadd.f32 %v4110_v29, %v3938_v41 }
 0x32a   : > { %v5921_v62 = vpop.f32.mrf.mxu1 }
 0x32b   : > { %5028 = vst [vmem:[%s8020_s18 + $0x10] sm:$0xff] %v5015_v14   ;;  %v4146_v53 = vadd.f32 %v8000_v38, %v4129_v32 }
 0x32c   : > { %v4115_v60 = vpop.f32.mrf.mxu1 }
 0x32d   : > { %v4130_v12 = vadd.f32 %v4115_v60, %v3939_v39 }
 0x32e   : > { %v5924_v19 = vpop.f32.mrf.mxu1 }
 0x32f   : > { %v4147_v59 = vadd.f32 %v8000_v38, %v4130_v12 }
 0x330   : > { %v4118_v5 = vpop.f32.mrf.mxu1 }
 0x331   : > { %v4131_v2 = vadd.f32 %v4118_v5, %v3940_v13 }
 0x332   : > { %v5925_v63 = vpop.f32.mrf.mxu1 }
 0x333   : > { %v4148_v1 = vadd.f32 %v8000_v38, %v4131_v2 }
 0x334   : > { %v4333_v24 = vpop.f32.mrf.mxu1 }
 0x335   : > { %v4334_v15 = vadd.f32 %v8005_v25, %v4333_v24 }
 0x336   : > { %v5956_v47 = vpop.f32.mrf.mxu1 }
 0x337   : > { %v4354_v0 = vadd.f32 %v4334_v15, %v4145_v16 }
 0x338   : > { %v4336_v49 = vpop.f32.mrf.mxu1 }
 0x339   : > { %v4337_v8 = vadd.f32 %v8005_v25, %v4336_v49  ;;  %v4364_v57 = vmax.f32 %v4354_v0, 0.0 }
 0x33a   : > { %v5957_v3 = vpop.f32.mrf.mxu1 }
 0x33b   : > { %v4355_v21 = vadd.f32 %v4337_v8, %v4146_v53 }
 0x33c   : > { %v4341_v48 = vpop.f32.mrf.mxu1 }
 0x33d   : > { %v4365_v20 = vmax.f32 %v4355_v21, 0.0  ;;  %v4342_v42 = vadd.f32 %v8005_v25, %v4341_v48 }
 0x33e   : > { %v5960_v51 = vpop.f32.mrf.mxu1 }
 0x33f   : > { %v5020_v58 = vpack.c.bf16 %v4365_v20, %v4364_v57  ;;  %v4356_v36 = vadd.f32 %v4342_v42, %v4147_v59 }
 0x340   : > { %v4344_v54 = vpop.f32.mrf.mxu1 }
 0x341   : > { %5029 = vst [vmem:[%s8020_s18 + $0x18] sm:$0xff] %v5020_v58   ;;  %v4345_v46 = vadd.f32 %v8005_v25, %v4344_v54  ;;  %v4366_v7 = vmax.f32 %v4356_v36, 0.0 }
 0x342   : > { %v5961_v33 = vpop.f32.mrf.mxu1 }
 0x343   : > { %v4357_v35 = vadd.f32 %v4345_v46, %v4148_v1 }
 0x345   : > { %v4367_v34 = vmax.f32 %v4357_v35, 0.0 }
 0x347   : > { %v5025_v37 = vpack.c.bf16 %v4367_v34, %v4366_v7 }
 0x349   : > { %5030 = vst [vmem:[%s8020_s18 + $0x20] sm:$0xff] %v5025_v37  }
 0x34a PF: > { %s17_s24 = sadd.s32 1, %s6218_s24  }
 0x34b   : > { %p14_p4 = scmp.ge.s32.totalorder %s17_s24, 4  }
 0x34d   :  { %16 = sbr.rel (!%p14_p4) target bundleno = 1 (0x1), region = 94 }

</bundles_post_ra>
